<compile_context>
chip_gen: v7x
topology: tpu7x:2x2x1
jax: 0.10.0
libtpu: 0.0.40
codegen_flags: <defaults>
</compile_context>

<pallas_src>
import jax
import jax.numpy as jnp
import numpy as np
from jax import lax
from jax.experimental import pallas as pl
from jax.experimental.pallas import tpu as pltpu

LANE = 128      # TPU lane width: all kernel operands padded lane-dense
K_TILE = 2048   # reduction (flattened-pixel) tile streamed through VMEM


def _round_up(x, m):
    return ((x + m - 1) // m) * m


def _l2norm(x, eps=1e-12):
    # torch: x / x.norm(2, dim=1, keepdim=True).clamp(min=eps)
    #      == x * rsqrt(max(sum(x*x), eps**2))   (exact; EUP rsqrt, no VPU divide)
    sq = jnp.sum(x * x, axis=-1, keepdims=True)
    return x * lax.rsqrt(jnp.maximum(sq, eps * eps))


def fused_kernel(feat_ref, wcr_ref, bc_ref, br_ref,
                 wv_img_ref, wv_att_ref, bv_ref,
                 txt_ref, wt_ref, bt_ref,
                 vis_out_ref, txt_out_ref, outclass_ref,
                 acc_ref):
    k = pl.program_id(0)

    @pl.when(k == 0)
    def _init():
        acc_ref[...] = jnp.zeros_like(acc_ref)
        # Text path has no dependence on the K-stream: compute it on step 0 so
        # it hides under the streaming weight DMAs (fills MXU/VPU slack).
        txt_pre = (jnp.dot(txt_ref[...], wt_ref[...],
                           preferred_element_type=jnp.float32)
                   + bt_ref[...])
        txt_out_ref[...] = _l2norm(jnp.tanh(txt_pre))

    # K-streamed classifier-head + resnet-stand-in matmul over one concatenated
    # (k_tile, NP+RP) weight block: native bf16 x bf16 MXU, f32 accumulation.
    acc_ref[...] += jnp.dot(feat_ref[...], wcr_ref[...],
                            preferred_element_type=jnp.float32)

    @pl.when(k == pl.num_programs(0) - 1)
    def _finalize():
        n_pad = bc_ref.shape[1]
        acc = acc_ref[...]

        # [outclass, _] = classifier(img); padded lanes carry a -1e30 bias so
        # argmax can never select them.
        outclass = acc[:, :n_pad] + bc_ref[...]
        outclass_ref[...] = outclass

        # _, pred = torch.max(outclass, 1); att_i = one-hot scatter of pred.
        pred = jnp.argmax(outclass, axis=1)                    # first-max, like torch
        bp = outclass.shape[0]
        onehot = (lax.broadcasted_iota(jnp.int32, (bp, n_pad), 1)
                  == pred[:, None]).astype(jnp.bfloat16)       # exact 0/1 in bf16

        # visual_embedding(cat([visfeat, att_i], 1)) as two lane-dense bf16 dots.
        visfeat = (acc[:, n_pad:] + br_ref[...]).astype(jnp.bfloat16)
        vis_pre = (jnp.dot(visfeat, wv_img_ref[...],
                           preferred_element_type=jnp.float32)
                   + jnp.dot(onehot, wv_att_ref[...],
                             preferred_element_type=jnp.float32)
                   + bv_ref[...])
        vis_out_ref[...] = _l2norm(jnp.tanh(vis_pre))


def prepare_params(params, feat_dim):
    """Pad + bf16-cast all weights ONCE (cache this; do NOT redo per forward)."""
    f32, bf16 = jnp.float32, jnp.bfloat16
    n_att = params["wc"].shape[1]
    res_feat = params["wr"].shape[1]
    emb = params["wv_img"].shape[1]

    k_tile = min(K_TILE, _round_up(feat_dim, 512))
    Fp = _round_up(feat_dim, k_tile)
    NP = _round_up(n_att, LANE)
    RP = _round_up(res_feat, LANE)
    EP = _round_up(emb, LANE)

    def pad2(w, r, c):
        w = jnp.asarray(w, f32)
        return jnp.zeros((r, c), f32).at[:w.shape[0], :w.shape[1]].set(w)

    # Concatenate classifier head + resnet stand-in into one streamed weight.
    wcr = jnp.concatenate([pad2(params["wc"], Fp, NP),
                           pad2(params["wr"], Fp, RP)], axis=1).astype(bf16)

    bc = jnp.full((1, NP), -1e30, f32).at[:, :n_att].set(
        jnp.asarray(params["bc"], f32).reshape(1, -1))
    br = pad2(jnp.asarray(params["br"], f32).reshape(1, -1), 1, RP)
    wv_img = pad2(params["wv_img"], RP, EP).astype(bf16)
    wv_att = pad2(params["wv_att"], NP, EP).astype(bf16)
    bv = pad2(jnp.asarray(params["bv"], f32).reshape(1, -1), 1, EP)

    wt_cat = jnp.concatenate([params["wt_com"], params["wt_tit"],
                              params["wt_att"]], axis=0)
    TP = _round_up(wt_cat.shape[0], LANE)
    wt = pad2(wt_cat, TP, EP).astype(bf16)
    bt = pad2(jnp.asarray(params["bt"], f32).reshape(1, -1), 1, EP)

    return {"wcr": wcr, "bc": bc, "br": br, "wv_img": wv_img,
            "wv_att": wv_att, "bv": bv, "wt": wt, "bt": bt}


def cross_retrieval_forward(img, com, tit, att_t, prepped, n_att, emb_size):
    f32, bf16 = jnp.float32, jnp.bfloat16
    B = img.shape[0]

    wcr = prepped["wcr"]
    Fp, NCP = wcr.shape
    NP = prepped["bc"].shape[1]
    RP = prepped["br"].shape[1]
    EP = prepped["bv"].shape[1]
    TP = prepped["wt"].shape[0]
    k_tile = min(K_TILE, Fp)          # Fp is a multiple of k_tile by construction
    nk = Fp // k_tile
    Bp = _round_up(B, 16)             # bf16 sublane packing

    # Activations -> bf16 (halves activation HBM traffic, native bf16 MXU).
    feat = img.reshape(B, -1).astype(bf16)                      # NCHW -> (B, C*H*W)
    F = feat.shape[1]
    feat_p = jnp.zeros((Bp, Fp), bf16).at[:B, :F].set(feat)

    txt = jnp.concatenate([com.reshape(B, -1), tit.reshape(B, -1),
                           att_t.reshape(B, -1)], axis=1).astype(bf16)
    Tk = txt.shape[1]
    txt_p = jnp.zeros((Bp, TP), bf16).at[:B, :Tk].set(txt)

    in_specs = [
        pl.BlockSpec((Bp, k_tile), lambda k: (0, k)),   # feat  (K-streamed, bf16)
        pl.BlockSpec((k_tile, NCP), lambda k: (k, 0)),  # wcr   (K-streamed, bf16)
        pl.BlockSpec((1, NP), lambda k: (0, 0)),        # bc
        pl.BlockSpec((1, RP), lambda k: (0, 0)),        # br
        pl.BlockSpec((RP, EP), lambda k: (0, 0)),       # wv_img
        pl.BlockSpec((NP, EP), lambda k: (0, 0)),       # wv_att
        pl.BlockSpec((1, EP), lambda k: (0, 0)),        # bv
        pl.BlockSpec((Bp, TP), lambda k: (0, 0)),       # txt (pre-concat)
        pl.BlockSpec((TP, EP), lambda k: (0, 0)),       # wt  (pre-concat)
        pl.BlockSpec((1, EP), lambda k: (0, 0)),        # bt
    ]
    out_specs = (
        pl.BlockSpec((Bp, EP), lambda k: (0, 0)),       # visual_emb
        pl.BlockSpec((Bp, EP), lambda k: (0, 0)),       # text_emb
        pl.BlockSpec((Bp, NP), lambda k: (0, 0)),       # outclass
    )
    out_shape = (
        jax.ShapeDtypeStruct((Bp, EP), f32),
        jax.ShapeDtypeStruct((Bp, EP), f32),
        jax.ShapeDtypeStruct((Bp, NP), f32),
    )

    flops = int(2 * Bp * Fp * NCP + 2 * Bp * (RP + NP) * EP + 2 * Bp * TP * EP)
    bytes_accessed = int(
        2 * (Bp * Fp + Fp * NCP + RP * EP + NP * EP + Bp * TP + TP * EP)   # bf16
        + 4 * (NP + RP + 2 * EP + Bp * (2 * EP + NP)))                     # f32
    cost = pl.CostEstimate(flops=flops, transcendentals=int(2 * Bp * EP),
                           bytes_accessed=bytes_accessed)

    vis_p, txt_o, outclass_p = pl.pallas_call(
        fused_kernel,
        out_shape=out_shape,
        grid_spec=pltpu.PrefetchScalarGridSpec(
            num_scalar_prefetch=0,
            grid=(nk,),
            in_specs=in_specs,
            out_specs=out_specs,
            scratch_shapes=[pltpu.VMEM((Bp, NCP), f32)]),
        compiler_params=pltpu.CompilerParams(
            dimension_semantics=("arbitrary",)),
        cost_estimate=cost,
    )(feat_p, wcr, prepped["bc"], prepped["br"],
      prepped["wv_img"], prepped["wv_att"], prepped["bv"],
      txt_p, prepped["wt"], prepped["bt"])

    return [vis_p[:B, :emb_size], txt_o[:B, :emb_size], outclass_p[:B, :n_att]]


def _reference(img, com, tit, att_t, p):
    # Pure-JAX reference with the same bf16 quantization the kernel applies.
    bf = lambda w: jnp.asarray(w, jnp.float32).astype(jnp.bfloat16).astype(jnp.float32)

    def l2n(x, eps=1e-12):
        n = jnp.sqrt(jnp.sum(x * x, axis=-1, keepdims=True))
        return x / jnp.maximum(n, eps)

    B = img.shape[0]
    feat = bf(img.reshape(B, -1))
    outclass = feat @ bf(p["wc"]) + p["bc"]
    pred = jnp.argmax(outclass, axis=1)
    onehot = jax.nn.one_hot(pred, p["wc"].shape[1], dtype=jnp.float32)
    visfeat = bf(feat @ bf(p["wr"]) + p["br"])           # kernel rounds visfeat to bf16
    vis = jnp.tanh(visfeat @ bf(p["wv_img"]) + onehot @ bf(p["wv_att"]) + p["bv"])
    vis = l2n(vis)
    txt = bf(jnp.concatenate([com.reshape(B, -1), tit.reshape(B, -1),
                              att_t.reshape(B, -1)], axis=1))
    wt = jnp.concatenate([p["wt_com"], p["wt_tit"], p["wt_att"]], axis=0)
    txt_e = l2n(jnp.tanh(txt @ bf(wt) + p["bt"]))
    return [vis, txt_e, outclass]


if __name__ == "__main__":
    # small shapes consistent with the module's forward
    B, C, H, W = 2, 3, 16, 16
    n_att = 16            # att_size
    emb_size = 32         # args_dict.emb_size
    cv, tv = 64, 48       # comments / titles vocab sizes
    res_feat = 1000       # resnet50 output dim
    F = C * H * W

    key = jax.random.PRNGKey(0)
    ks = jax.random.split(key, 16)
    f32 = jnp.float32
    params = {
        "wc":     jax.random.normal(ks[0], (F, n_att), f32) * 0.02,
        "bc":     jax.random.normal(ks[1], (1, n_att), f32) * 0.02,
        "wr":     jax.random.normal(ks[2], (F, res_feat), f32) * 0.02,
        "br":     jax.random.normal(ks[3], (1, res_feat), f32) * 0.02,
        "wv_img": jax.random.normal(ks[4], (res_feat, emb_size), f32) * 0.02,
        "wv_att": jax.random.normal(ks[5], (n_att, emb_size), f32) * 0.02,
        "bv":     jax.random.normal(ks[6], (1, emb_size), f32) * 0.02,
        "wt_com": jax.random.normal(ks[7], (cv, emb_size), f32) * 0.02,
        "wt_tit": jax.random.normal(ks[8], (tv, emb_size), f32) * 0.02,
        "wt_att": jax.random.normal(ks[9], (n_att, emb_size), f32) * 0.02,
        "bt":     jax.random.normal(ks[10], (1, emb_size), f32) * 0.02,
    }

    img = jax.random.normal(ks[11], (B, C, H, W), f32)          # NCHW like torch
    com = jax.random.normal(ks[12], (B, 1, cv), f32)
    tit = jax.random.normal(ks[13], (B, 1, tv), f32)
    att_t = (jax.random.uniform(ks[14], (B, 1, n_att)) > 0.5).astype(f32)

    # One-time weight prep (padding + bf16 cast) -- outside the forward path.
    prepped = prepare_params(params, F)
    prepped = jax.tree_util.tree_map(jax.block_until_ready, prepped)

    fwd = jax.jit(lambda i, c, t, a, p: cross_retrieval_forward(
        i, c, t, a, p, n_att=n_att, emb_size=emb_size))
    out = fwd(img, com, tit, att_t, prepped)
    out = [jax.block_until_ready(o) for o in out]

    ref = _reference(img, com, tit, att_t, params)
    for got, exp in zip(out, ref):
        np.testing.assert_allclose(np.asarray(got), np.asarray(exp),
                                   rtol=5e-4, atol=5e-4)

    assert out[0].shape == (B, emb_size)
    assert out[1].shape == (B, emb_size)
    assert out[2].shape == (B, n_att)
    print("KERNEL_OK")
</pallas_src>

<mosaic_0001>
module attributes {stable_mosaic.version = 11 : i64} {
  func.func @fused_kernel(%arg0: i32, %arg1: memref<16x1024xbf16, #tpu.memory_space<vmem>>, %arg2: memref<1024x1152xbf16, #tpu.memory_space<vmem>>, %arg3: memref<1x128xf32, #tpu.memory_space<vmem>>, %arg4: memref<1x1024xf32, #tpu.memory_space<vmem>>, %arg5: memref<1024x128xbf16, #tpu.memory_space<vmem>>, %arg6: memref<128x128xbf16, #tpu.memory_space<vmem>>, %arg7: memref<1x128xf32, #tpu.memory_space<vmem>>, %arg8: memref<16x128xbf16, #tpu.memory_space<vmem>>, %arg9: memref<128x128xbf16, #tpu.memory_space<vmem>>, %arg10: memref<1x128xf32, #tpu.memory_space<vmem>>, %arg11: memref<16x128xf32, #tpu.memory_space<vmem>>, %arg12: memref<16x128xf32, #tpu.memory_space<vmem>>, %arg13: memref<16x128xf32, #tpu.memory_space<vmem>>, %arg14: memref<16x1152xf32, #tpu.memory_space<vmem>>) attributes {dimension_semantics = [#tpu.dimension_semantics<arbitrary>], iteration_bounds = array<i64: 1>, scalar_prefetch = 0 : i64, scratch_operands = 1 : i64, tpu.core_type = #tpu.core_type<tc>, window_params = [{transform_indices = @transform_0, window_bounds = array<i64: 16, 1024>}, {transform_indices = @transform_1, window_bounds = array<i64: 1024, 1152>}, {pipeline_mode = #tpu.pipeline_mode<synchronous>, transform_indices = @transform_2, window_bounds = array<i64: 1, 128>}, {pipeline_mode = #tpu.pipeline_mode<synchronous>, transform_indices = @transform_3, window_bounds = array<i64: 1, 1024>}, {pipeline_mode = #tpu.pipeline_mode<synchronous>, transform_indices = @transform_4, window_bounds = array<i64: 1024, 128>}, {pipeline_mode = #tpu.pipeline_mode<synchronous>, transform_indices = @transform_5, window_bounds = array<i64: 128, 128>}, {pipeline_mode = #tpu.pipeline_mode<synchronous>, transform_indices = @transform_6, window_bounds = array<i64: 1, 128>}, {pipeline_mode = #tpu.pipeline_mode<synchronous>, transform_indices = @transform_7, window_bounds = array<i64: 16, 128>}, {pipeline_mode = #tpu.pipeline_mode<synchronous>, transform_indices = @transform_8, window_bounds = array<i64: 128, 128>}, {pipeline_mode = #tpu.pipeline_mode<synchronous>, transform_indices = @transform_9, window_bounds = array<i64: 1, 128>}, {pipeline_mode = #tpu.pipeline_mode<synchronous>, transform_indices = @transform_10, window_bounds = array<i64: 16, 128>}, {pipeline_mode = #tpu.pipeline_mode<synchronous>, transform_indices = @transform_11, window_bounds = array<i64: 16, 128>}, {pipeline_mode = #tpu.pipeline_mode<synchronous>, transform_indices = @transform_12, window_bounds = array<i64: 16, 128>}]} {
    %c0_i32 = arith.constant 0 : i32
    %0 = arith.cmpi eq, %arg0, %c0_i32 : i32
    %1 = arith.extui %0 : i1 to i32
    %c0_i32_0 = arith.constant 0 : i32
    %2 = arith.cmpi ne, %1, %c0_i32_0 : i32
    scf.if %2 {
      %cst_10 = arith.constant 0.000000e+00 : f32
      %12 = vector.broadcast %cst_10 : f32 to vector<16x1152xf32>
      %c0_11 = arith.constant 0 : index
      %c0_12 = arith.constant 0 : index
      %13 = vector.load %arg14[%c0_11, %c0_12] : memref<16x1152xf32, #tpu.memory_space<vmem>>, vector<16x1152xf32>
      tpu.vector_store %arg14[%c0_11, %c0_12], %12 {strides = array<i32>} : memref<16x1152xf32, #tpu.memory_space<vmem>>, vector<16x1152xf32>,
      %c0_13 = arith.constant 0 : index
      %c0_14 = arith.constant 0 : index
      %14 = vector.load %arg8[%c0_13, %c0_14] : memref<16x128xbf16, #tpu.memory_space<vmem>>, vector<16x128xbf16>
      %c0_15 = arith.constant 0 : index
      %c0_16 = arith.constant 0 : index
      %15 = vector.load %arg9[%c0_15, %c0_16] : memref<128x128xbf16, #tpu.memory_space<vmem>>, vector<128x128xbf16>
      %cst_17 = arith.constant dense<0.000000e+00> : vector<16x128xf32>
      %16 = tpu.matmul %14, %15, %cst_17 {dimension_numbers = #tpu.dot_dimension_numbers<[1], [0], [0], [1], [0, 0, 1, 1], [], []>} : vector<16x128xbf16>, vector<128x128xbf16>, vector<16x128xf32> -> vector<16x128xf32>
      %c0_18 = arith.constant 0 : index
      %c0_19 = arith.constant 0 : index
      %17 = vector.load %arg10[%c0_18, %c0_19] : memref<1x128xf32, #tpu.memory_space<vmem>>, vector<1x128xf32>
      %18 = vector.broadcast %17 : vector<1x128xf32> to vector<16x128xf32>
      %19 = arith.addf %16, %18 : vector<16x128xf32>
      %20 = math.tanh %19 : vector<16x128xf32>
      %21 = arith.mulf %20, %20 : vector<16x128xf32>
      %cst_20 = arith.constant dense<0.000000e+00> : vector<16xf32>
      %22 = vector.multi_reduction <add>, %21, %cst_20 [1] : vector<16x128xf32> to vector<16xf32>
      %23 = vector.shape_cast %22 : vector<16xf32> to vector<16x1xf32>
      %cst_21 = arith.constant 1.000000e-24 : f32
      %24 = vector.broadcast %cst_21 : f32 to vector<16x1xf32>
      %25 = arith.maximumf %23, %24 : vector<16x1xf32>
      %26 = math.rsqrt %25 : vector<16x1xf32>
      %27 = vector.broadcast %26 : vector<16x1xf32> to vector<16x128xf32>
      %28 = arith.mulf %20, %27 : vector<16x128xf32>
      %c0_22 = arith.constant 0 : index
      %c0_23 = arith.constant 0 : index
      %29 = vector.load %arg12[%c0_22, %c0_23] : memref<16x128xf32, #tpu.memory_space<vmem>>, vector<16x128xf32>
      tpu.vector_store %arg12[%c0_22, %c0_23], %28 {strides = array<i32>} : memref<16x128xf32, #tpu.memory_space<vmem>>, vector<16x128xf32>,
    } else {
    }
    %c0 = arith.constant 0 : index
    %c0_1 = arith.constant 0 : index
    %3 = vector.load %arg14[%c0, %c0_1] : memref<16x1152xf32, #tpu.memory_space<vmem>>, vector<16x1152xf32>
    %c0_2 = arith.constant 0 : index
    %c0_3 = arith.constant 0 : index
    %4 = vector.load %arg1[%c0_2, %c0_3] : memref<16x1024xbf16, #tpu.memory_space<vmem>>, vector<16x1024xbf16>
    %c0_4 = arith.constant 0 : index
    %c0_5 = arith.constant 0 : index
    %5 = vector.load %arg2[%c0_4, %c0_5] : memref<1024x1152xbf16, #tpu.memory_space<vmem>>, vector<1024x1152xbf16>
    %cst = arith.constant dense<0.000000e+00> : vector<16x1152xf32>
    %6 = tpu.matmul %4, %5, %cst {dimension_numbers = #tpu.dot_dimension_numbers<[1], [0], [0], [1], [0, 0, 1, 1], [], []>} : vector<16x1024xbf16>, vector<1024x1152xbf16>, vector<16x1152xf32> -> vector<16x1152xf32>
    %7 = arith.addf %3, %6 : vector<16x1152xf32>
    %c0_6 = arith.constant 0 : index
    %c0_7 = arith.constant 0 : index
    %8 = vector.load %arg14[%c0_6, %c0_7] : memref<16x1152xf32, #tpu.memory_space<vmem>>, vector<16x1152xf32>
    tpu.vector_store %arg14[%c0_6, %c0_7], %7 {strides = array<i32>} : memref<16x1152xf32, #tpu.memory_space<vmem>>, vector<16x1152xf32>,
    %c0_i32_8 = arith.constant 0 : i32
    %9 = arith.cmpi eq, %arg0, %c0_i32_8 : i32
    %10 = arith.extui %9 : i1 to i32
    %c0_i32_9 = arith.constant 0 : i32
    %11 = arith.cmpi ne, %10, %c0_i32_9 : i32
    scf.if %11 {
      %c0_10 = arith.constant 0 : index
      %c0_11 = arith.constant 0 : index
      %12 = vector.load %arg14[%c0_10, %c0_11] : memref<16x1152xf32, #tpu.memory_space<vmem>>, vector<16x1152xf32>
      %13 = vector.extract_strided_slice %12 {offsets = [0, 0], sizes = [16, 128], strides = [1, 1]} : vector<16x1152xf32> to vector<16x128xf32>
      %c0_12 = arith.constant 0 : index
      %c0_13 = arith.constant 0 : index
      %14 = vector.load %arg3[%c0_12, %c0_13] : memref<1x128xf32, #tpu.memory_space<vmem>>, vector<1x128xf32>
      %15 = vector.broadcast %14 : vector<1x128xf32> to vector<16x128xf32>
      %16 = arith.addf %13, %15 : vector<16x128xf32>
      %c0_14 = arith.constant 0 : index
      %c0_15 = arith.constant 0 : index
      %17 = vector.load %arg13[%c0_14, %c0_15] : memref<16x128xf32, #tpu.memory_space<vmem>>, vector<16x128xf32>
      tpu.vector_store %arg13[%c0_14, %c0_15], %16 {strides = array<i32>} : memref<16x128xf32, #tpu.memory_space<vmem>>, vector<16x128xf32>,
      %18 = tpu.reduce_index %16 {axis = 1 : i32, kind = #tpu.reduction_kind<arg_max>} : vector<16x128xf32> -> vector<16xi32>
      %19 = tpu.iota {dimensions = array<i32: 1>} : vector<16x128xi32>
      %20 = vector.shape_cast %18 : vector<16xi32> to vector<16x1xi32>
      %21 = vector.broadcast %20 : vector<16x1xi32> to vector<16x128xi32>
      %22 = arith.cmpi eq, %19, %21 : vector<16x128xi32>
      %23 = arith.extui %22 : vector<16x128xi1> to vector<16x128xi32>
      %24 = arith.sitofp %23 : vector<16x128xi32> to vector<16x128xf32>
      %25 = arith.truncf %24 : vector<16x128xf32> to vector<16x128xbf16>
      %26 = vector.extract_strided_slice %12 {offsets = [0, 128], sizes = [16, 1024], strides = [1, 1]} : vector<16x1152xf32> to vector<16x1024xf32>
      %c0_16 = arith.constant 0 : index
      %c0_17 = arith.constant 0 : index
      %27 = vector.load %arg4[%c0_16, %c0_17] : memref<1x1024xf32, #tpu.memory_space<vmem>>, vector<1x1024xf32>
      %28 = vector.broadcast %27 : vector<1x1024xf32> to vector<16x1024xf32>
      %29 = arith.addf %26, %28 : vector<16x1024xf32>
      %30 = arith.truncf %29 : vector<16x1024xf32> to vector<16x1024xbf16>
      %c0_18 = arith.constant 0 : index
      %c0_19 = arith.constant 0 : index
      %31 = vector.load %arg5[%c0_18, %c0_19] : memref<1024x128xbf16, #tpu.memory_space<vmem>>, vector<1024x128xbf16>
      %cst_20 = arith.constant dense<0.000000e+00> : vector<16x128xf32>
      %32 = tpu.matmul %30, %31, %cst_20 {dimension_numbers = #tpu.dot_dimension_numbers<[1], [0], [0], [1], [0, 0, 1, 1], [], []>} : vector<16x1024xbf16>, vector<1024x128xbf16>, vector<16x128xf32> -> vector<16x128xf32>
      %c0_21 = arith.constant 0 : index
      %c0_22 = arith.constant 0 : index
      %33 = vector.load %arg6[%c0_21, %c0_22] : memref<128x128xbf16, #tpu.memory_space<vmem>>, vector<128x128xbf16>
      %cst_23 = arith.constant dense<0.000000e+00> : vector<16x128xf32>
      %34 = tpu.matmul %25, %33, %cst_23 {dimension_numbers = #tpu.dot_dimension_numbers<[1], [0], [0], [1], [0, 0, 1, 1], [], []>} : vector<16x128xbf16>, vector<128x128xbf16>, vector<16x128xf32> -> vector<16x128xf32>
      %35 = arith.addf %32, %34 : vector<16x128xf32>
      %c0_24 = arith.constant 0 : index
      %c0_25 = arith.constant 0 : index
      %36 = vector.load %arg7[%c0_24, %c0_25] : memref<1x128xf32, #tpu.memory_space<vmem>>, vector<1x128xf32>
      %37 = vector.broadcast %36 : vector<1x128xf32> to vector<16x128xf32>
      %38 = arith.addf %35, %37 : vector<16x128xf32>
      %39 = math.tanh %38 : vector<16x128xf32>
      %40 = arith.mulf %39, %39 : vector<16x128xf32>
      %cst_26 = arith.constant dense<0.000000e+00> : vector<16xf32>
      %41 = vector.multi_reduction <add>, %40, %cst_26 [1] : vector<16x128xf32> to vector<16xf32>
      %42 = vector.shape_cast %41 : vector<16xf32> to vector<16x1xf32>
      %cst_27 = arith.constant 1.000000e-24 : f32
      %43 = vector.broadcast %cst_27 : f32 to vector<16x1xf32>
      %44 = arith.maximumf %42, %43 : vector<16x1xf32>
      %45 = math.rsqrt %44 : vector<16x1xf32>
      %46 = vector.broadcast %45 : vector<16x1xf32> to vector<16x128xf32>
      %47 = arith.mulf %39, %46 : vector<16x128xf32>
      %c0_28 = arith.constant 0 : index
      %c0_29 = arith.constant 0 : index
      %48 = vector.load %arg11[%c0_28, %c0_29] : memref<16x128xf32, #tpu.memory_space<vmem>>, vector<16x128xf32>
      tpu.vector_store %arg11[%c0_28, %c0_29], %47 {strides = array<i32>} : memref<16x128xf32, #tpu.memory_space<vmem>>, vector<16x128xf32>,
    } else {
    }
    return
  }
  func.func @transform_0(%arg0: i32) -> (i32, i32) {
    %c0_i32 = arith.constant 0 : i32
    %c0_i32_0 = arith.constant 0 : i32
    return %c0_i32, %arg0 : i32, i32
  }
  func.func @transform_1(%arg0: i32) -> (i32, i32) {
    %c0_i32 = arith.constant 0 : i32
    %c0_i32_0 = arith.constant 0 : i32
    return %arg0, %c0_i32 : i32, i32
  }
  func.func @transform_2(%arg0: i32) -> (i32, i32) {
    %c0_i32 = arith.constant 0 : i32
    %c0_i32_0 = arith.constant 0 : i32
    %c0_i32_1 = arith.constant 0 : i32
    return %c0_i32, %c0_i32_0 : i32, i32
  }
  func.func @transform_3(%arg0: i32) -> (i32, i32) {
    %c0_i32 = arith.constant 0 : i32
    %c0_i32_0 = arith.constant 0 : i32
    %c0_i32_1 = arith.constant 0 : i32
    return %c0_i32, %c0_i32_0 : i32, i32
  }
  func.func @transform_4(%arg0: i32) -> (i32, i32) {
    %c0_i32 = arith.constant 0 : i32
    %c0_i32_0 = arith.constant 0 : i32
    %c0_i32_1 = arith.constant 0 : i32
    return %c0_i32, %c0_i32_0 : i32, i32
  }
  func.func @transform_5(%arg0: i32) -> (i32, i32) {
    %c0_i32 = arith.constant 0 : i32
    %c0_i32_0 = arith.constant 0 : i32
    %c0_i32_1 = arith.constant 0 : i32
    return %c0_i32, %c0_i32_0 : i32, i32
  }
  func.func @transform_6(%arg0: i32) -> (i32, i32) {
    %c0_i32 = arith.constant 0 : i32
    %c0_i32_0 = arith.constant 0 : i32
    %c0_i32_1 = arith.constant 0 : i32
    return %c0_i32, %c0_i32_0 : i32, i32
  }
  func.func @transform_7(%arg0: i32) -> (i32, i32) {
    %c0_i32 = arith.constant 0 : i32
    %c0_i32_0 = arith.constant 0 : i32
    %c0_i32_1 = arith.constant 0 : i32
    return %c0_i32, %c0_i32_0 : i32, i32
  }
  func.func @transform_8(%arg0: i32) -> (i32, i32) {
    %c0_i32 = arith.constant 0 : i32
    %c0_i32_0 = arith.constant 0 : i32
    %c0_i32_1 = arith.constant 0 : i32
    return %c0_i32, %c0_i32_0 : i32, i32
  }
  func.func @transform_9(%arg0: i32) -> (i32, i32) {
    %c0_i32 = arith.constant 0 : i32
    %c0_i32_0 = arith.constant 0 : i32
    %c0_i32_1 = arith.constant 0 : i32
    return %c0_i32, %c0_i32_0 : i32, i32
  }
  func.func @transform_10(%arg0: i32) -> (i32, i32) {
    %c0_i32 = arith.constant 0 : i32
    %c0_i32_0 = arith.constant 0 : i32
    %c0_i32_1 = arith.constant 0 : i32
    return %c0_i32, %c0_i32_0 : i32, i32
  }
  func.func @transform_11(%arg0: i32) -> (i32, i32) {
    %c0_i32 = arith.constant 0 : i32
    %c0_i32_0 = arith.constant 0 : i32
    %c0_i32_1 = arith.constant 0 : i32
    return %c0_i32, %c0_i32_0 : i32, i32
  }
  func.func @transform_12(%arg0: i32) -> (i32, i32) {
    %c0_i32 = arith.constant 0 : i32
    %c0_i32_0 = arith.constant 0 : i32
    %c0_i32_1 = arith.constant 0 : i32
    return %c0_i32, %c0_i32_0 : i32, i32
  }
}

</mosaic_0001>

<bundles_post_ra>
// kernel: _lambda_.1
= control target key start
LH: loop header
LB: loop body
LE: loop exit
PB: predicated region body
PF: predicated region fallthrough
CT: control target
= control target key end

     0   :  { %18 = vsyncpa [#allocation4], 0  ;;  %s8264_s0 = inlined_call_operand.vmem [shape: bf16[16,1024], index: 0, kind: input, shape index: {}]   ;;  %s8265_s1 = inlined_call_operand.hbm [shape: bf16[1024,1152], index: 1, kind: input, shape index: {}]   ;;  %s8266_s2 = inlined_call_operand.hbm [shape: f32[1,128], index: 2, kind: input, shape index: {}]   ;;  %s8267_s3 = inlined_call_operand.hbm [shape: f32[1,1024], index: 3, kind: input, shape index: {}]   ;;  %s8268_s4 = inlined_call_operand.hbm [shape: bf16[1024,128], index: 4, kind: input, shape index: {}]   ;;  %s8269_s5 = inlined_call_operand.hbm [shape: bf16[128,128], index: 5, kind: input, shape index: {}]   ;;  %s8270_s6 = inlined_call_operand.hbm [shape: f32[1,128], index: 6, kind: input, shape index: {}]   ;;  %s8271_s7 = inlined_call_operand.vmem [shape: bf16[16,128], index: 7, kind: input, shape index: {}]   ;;  %s8272_s8 = inlined_call_operand.hbm [shape: bf16[128,128], index: 8, kind: input, shape index: {}]   ;;  %s8273_s9 = inlined_call_operand.hbm [shape: f32[1,128], index: 9, kind: input, shape index: {}]   ;;  %s8274_s10 = inlined_call_operand.vmem [shape: f32[16,128], index: 10, kind: output, shape index: {0}]   ;;  %s8275_s11 = inlined_call_operand.vmem [shape: f32[16,128], index: 11, kind: output, shape index: {1}]   ;;  %s8276_s12 = inlined_call_operand.vmem [shape: f32[16,128], index: 12, kind: output, shape index: {2}]  }
   0x1   :  { %19 = vsyncpa [#allocation6], 0 }
   0x2   :  { %20 = vsyncpa [#allocation9], 0 }
   0x3   :  { %21 = vsyncpa [#allocation12], 0 }
   0x4   :  { %22 = vsyncpa [#allocation15], 0  ;;  %s7854_s21 = smov [#allocation5]   ;;  %s7855_s23 = smov [#allocation8]  }
   0x5   :  { %s43_s22 = sshll.u32 %s7854_s21, 4  ;;  %s62_s24 = sshll.u32 %s7855_s23, 4  ;;  %s44_s22 = int_to_ptr.vmem [resolvable:$true] %s43_s22  ;;  %s7934_s24 = int_to_ptr.vmem [resolvable:$true] %s62_s24 }
   0x6   :  { %s7668_s27 = scalar_lea.hbm %s8266_s2, 16 }
   0x7   :  { %p7669_p0 = scmp.ne.s32.totalorder %s8266_s2, %s7668_s27  ;;  %p7672_p1 = scmp.lt.u32.totalorder %s7668_s27, %s8266_s2 }
   0x9   :  { %p7674_p2 = pnand %p7672_p1, %p7669_p0 }
   0xb   :  { %7677 = shalt.err (!%p7674_p2)
}
   0xc   :  { %s7678_s14 = scalar_lea.vmem %s44_s22, 16  ;;  %s7682_s15 = scalar_lea.vmem %s44_s22, 32 }
   0xd   :  { %p7679_p3 = scmp.ne.s32.totalorder %s44_s22, %s7678_s14  ;;  %p7683_p4 = scmp.lt.s32.totalorder %s44_s22, %s44_s22 }
   0xe   :  { %p7684_p5 = scmp.lt.s32.totalorder %s7682_s15, %s7678_s14 }
  0x10   :  { %p7685_p6 = por %p7684_p5, %p7683_p4 }
  0x12   :  { %p7686_p7 = pnand %p7685_p6, %p7679_p3 }
  0x14   :  { %7689 = shalt.err (!%p7686_p7)
}
  0x15   :  { %46 = dma.hbm_to_vmem [thread:$0]  %s8266_s2, 16, %s44_s22, [#allocation6]  }
  0x16   :  { %s7690_s20 = scalar_lea.hbm %s8268_s4, 8192 }
  0x17   :  { %p7691_p8 = scmp.ne.s32.totalorder %s8268_s4, %s7690_s20  ;;  %p7694_p9 = scmp.lt.u32.totalorder %s7690_s20, %s8268_s4 }
  0x19   :  { %p7696_p10 = pnand %p7694_p9, %p7691_p8 }
  0x1b   :  { %7699 = shalt.err (!%p7696_p10)
}
  0x1c   :  { %s7700_s27 = scalar_lea.vmem %s7934_s24, 8192  ;;  %p7705_p12 = scmp.lt.s32.totalorder %s7934_s24, %s7934_s24 }
  0x1d   :  { %p7701_p11 = scmp.ne.s32.totalorder %s7934_s24, %s7700_s27  ;;  %p7706_p13 = scmp.lt.s32.totalorder %s7700_s27, %s7700_s27 }
  0x1f   :  { %p7707_p0 = por %p7706_p13, %p7705_p12 }
  0x21   :  { %p7708_p1 = pnand %p7707_p0, %p7701_p11 }
  0x23   :  { %7711 = shalt.err (!%p7708_p1)
}
  0x24   :  { %s7856_s2 = smov 64   ;;  %s7857_s22 = smov 4  }
  0x25   :  { %68 = dma.hbm_to_vmem [thread:$0]  %s8268_s4, 8192, %s7934_s24, [#allocation9], %s7856_s2, %s7856_s2, %s7857_s22  }
  0x26   :  { %s7858_s30 = smov [#allocation11]   ;;  %s7859_s14 = smov [#allocation3]  }
  0x27   :  { %s87_s13 = sshll.u32 %s7858_s30, 4  ;;  %s30_s15 = sshll.u32 %s7859_s14, 4  ;;  %s88_s13 = int_to_ptr.vmem [resolvable:$true] %s87_s13  ;;  %s7968_s15 = int_to_ptr.vmem [resolvable:$true] %s30_s15 }
  0x28   :  { %s7712_s18 = scalar_lea.hbm %s8270_s6, 16 }
  0x29   :  { %p7713_p2 = scmp.ne.s32.totalorder %s8270_s6, %s7712_s18  ;;  %p7716_p3 = scmp.lt.u32.totalorder %s7712_s18, %s8270_s6 }
  0x2b   :  { %p7718_p4 = pnand %p7716_p3, %p7713_p2 }
  0x2d   :  { %7721 = shalt.err (!%p7718_p4)
}
  0x2e   :  { %s7722_s4 = scalar_lea.vmem %s88_s13, 16  ;;  %s7726_s24 = scalar_lea.vmem %s88_s13, 32 }
  0x2f   :  { %p7723_p5 = scmp.ne.s32.totalorder %s88_s13, %s7722_s4  ;;  %p7727_p6 = scmp.lt.s32.totalorder %s88_s13, %s88_s13 }
  0x30   :  { %p7728_p7 = scmp.lt.s32.totalorder %s7726_s24, %s7722_s4 }
  0x32   :  { %p7729_p8 = por %p7728_p7, %p7727_p6 }
  0x34   :  { %p7730_p9 = pnand %p7729_p8, %p7723_p5 }
  0x36   :  { %7733 = shalt.err (!%p7730_p9)
}
  0x37   :  { %90 = dma.hbm_to_vmem [thread:$0]  %s8270_s6, 16, %s88_s13, [#allocation12]  }
  0x38   :  { %s7734_s29 = scalar_lea.hbm %s8265_s1, 73728 }
  0x39   :  { %p7735_p10 = scmp.ne.s32.totalorder %s8265_s1, %s7734_s29  ;;  %p7738_p11 = scmp.lt.u32.totalorder %s7734_s29, %s8265_s1 }
  0x3b   :  { %p7740_p12 = pnand %p7738_p11, %p7735_p10 }
  0x3d   :  { %7743 = shalt.err (!%p7740_p12)
}
  0x3e   :  { %s7744_s18 = scalar_lea.vmem %s7968_s15, 73728  ;;  %p7749_p0 = scmp.lt.s32.totalorder %s7968_s15, %s7968_s15 }
  0x3f   :  { %p7745_p13 = scmp.ne.s32.totalorder %s7968_s15, %s7744_s18  ;;  %p7750_p1 = scmp.lt.s32.totalorder %s7744_s18, %s7744_s18 }
  0x41   :  { %p7751_p2 = por %p7750_p1, %p7749_p0 }
  0x43   :  { %p7752_p3 = pnand %p7751_p2, %p7745_p13 }
  0x45   :  { %7755 = shalt.err (!%p7752_p3)
}
  0x46   :  { %s7860_s6 = smov 576   ;;  %s7861_s13 = smov 36  }
  0x47   :  { %36 = dma.hbm_to_vmem [thread:$0]  %s8265_s1, 73728, %s7968_s15, [#allocation4], %s7860_s6, %s7860_s6, %s7861_s13  }
  0x48   :  { %s7862_s21 = smov [#allocation7]   ;;  %s7863_s4 = smov [#allocation10]  }
  0x49   :  { %s53_s23 = sshll.u32 %s7862_s21, 4  ;;  %s74_s24 = sshll.u32 %s7863_s4, 4  ;;  %s54_s23 = int_to_ptr.vmem [resolvable:$true] %s53_s23  ;;  %s7999_s24 = int_to_ptr.vmem [resolvable:$true] %s74_s24 }
  0x4a   :  { %s7756_s27 = scalar_lea.hbm %s8267_s3, 128 }
  0x4b   :  { %p7757_p4 = scmp.ne.s32.totalorder %s8267_s3, %s7756_s27  ;;  %p7760_p5 = scmp.lt.u32.totalorder %s7756_s27, %s8267_s3 }
  0x4d   :  { %p7762_p6 = pnand %p7760_p5, %p7757_p4 }
  0x4f   :  { %7765 = shalt.err (!%p7762_p6)
}
  0x50   :  { %s7766_s1 = scalar_lea.vmem %s54_s23, 128  ;;  %p7771_p8 = scmp.lt.s32.totalorder %s54_s23, %s54_s23 }
  0x51   :  { %p7767_p7 = scmp.ne.s32.totalorder %s54_s23, %s7766_s1  ;;  %p7772_p9 = scmp.lt.s32.totalorder %s7766_s1, %s7766_s1 }
  0x53   :  { %p7773_p10 = por %p7772_p9, %p7771_p8 }
  0x55   :  { %p7774_p11 = pnand %p7773_p10, %p7767_p7 }
  0x57   :  { %7777 = shalt.err (!%p7774_p11)
}
  0x58   :  { %56 = dma.hbm_to_vmem [thread:$0]  %s8267_s3, 128, %s54_s23, [#allocation6]  }
  0x59   :  { %s7778_s6 = scalar_lea.hbm %s8269_s5, 1024 }
  0x5a   :  { %p7779_p12 = scmp.ne.s32.totalorder %s8269_s5, %s7778_s6  ;;  %p7782_p13 = scmp.lt.u32.totalorder %s7778_s6, %s8269_s5 }
  0x5c   :  { %p7784_p0 = pnand %p7782_p13, %p7779_p12 }
  0x5e   :  { %7787 = shalt.err (!%p7784_p0)
}
  0x5f   :  { %s7788_s4 = scalar_lea.vmem %s7999_s24, 1024  ;;  %p7793_p2 = scmp.lt.s32.totalorder %s7999_s24, %s7999_s24 }
  0x60   :  { %p7789_p1 = scmp.ne.s32.totalorder %s7999_s24, %s7788_s4  ;;  %p7794_p3 = scmp.lt.s32.totalorder %s7788_s4, %s7788_s4 }
  0x62   :  { %p7795_p4 = por %p7794_p3, %p7793_p2 }
  0x64   :  { %p7796_p5 = pnand %p7795_p4, %p7789_p1 }
  0x66   :  { %7799 = shalt.err (!%p7796_p5)
}
  0x67   :  { %80 = dma.hbm_to_vmem [thread:$0]  %s8269_s5, 1024, %s7999_s24, [#allocation9], %s7856_s2, %s7856_s2, %s7857_s22  }
  0x68   :  { %s7864_s25 = smov [#allocation13]   ;;  %s7865_s27 = smov [#allocation14]  }
  0x69   :  { %s98_s26 = sshll.u32 %s7864_s25, 4  ;;  %s111_s28 = sshll.u32 %s7865_s27, 4  ;;  %s99_s26 = int_to_ptr.vmem [resolvable:$true] %s98_s26  ;;  %s112_s28 = int_to_ptr.vmem [resolvable:$true] %s111_s28 }
  0x6a   :  { %s7800_s14 = scalar_lea.hbm %s8272_s8, 1024 }
  0x6b   :  { %p7801_p6 = scmp.ne.s32.totalorder %s8272_s8, %s7800_s14  ;;  %p7804_p7 = scmp.lt.u32.totalorder %s7800_s14, %s8272_s8 }
  0x6d   :  { %p7806_p8 = pnand %p7804_p7, %p7801_p6 }
  0x6f   :  { %7809 = shalt.err (!%p7806_p8)
}
  0x70   :  { %s7810_s5 = scalar_lea.vmem %s99_s26, 1024  ;;  %p7815_p10 = scmp.lt.s32.totalorder %s99_s26, %s99_s26 }
  0x71   :  { %p7811_p9 = scmp.ne.s32.totalorder %s99_s26, %s7810_s5  ;;  %p7816_p11 = scmp.lt.s32.totalorder %s7810_s5, %s7810_s5 }
  0x73   :  { %p7817_p12 = por %p7816_p11, %p7815_p10 }
  0x75   :  { %p7818_p13 = pnand %p7817_p12, %p7811_p9 }
  0x77   :  { %7821 = shalt.err (!%p7818_p13)
}
  0x78   :  { %104 = dma.hbm_to_vmem [thread:$0]  %s8272_s8, 1024, %s99_s26, [#allocation12], %s7856_s2, %s7856_s2, %s7857_s22  }
  0x79   :  { %s7822_s19 = scalar_lea.hbm %s8273_s9, 16 }
  0x7a   :  { %p7823_p0 = scmp.ne.s32.totalorder %s8273_s9, %s7822_s19  ;;  %p7826_p1 = scmp.lt.u32.totalorder %s7822_s19, %s8273_s9 }
  0x7c   :  { %p7828_p2 = pnand %p7826_p1, %p7823_p0 }
  0x7e   :  { %7831 = shalt.err (!%p7828_p2)
}
  0x7f   :  { %s7832_s23 = scalar_lea.vmem %s112_s28, 16  ;;  %s7836_s25 = scalar_lea.vmem %s112_s28, 32 }
  0x80   :  { %p7833_p3 = scmp.ne.s32.totalorder %s112_s28, %s7832_s23  ;;  %p7837_p4 = scmp.lt.s32.totalorder %s112_s28, %s112_s28 }
  0x81   :  { %p7838_p5 = scmp.lt.s32.totalorder %s7836_s25, %s7832_s23 }
  0x83   :  { %p7839_p6 = por %p7838_p5, %p7837_p4 }
  0x85   :  { %p7840_p7 = pnand %p7839_p6, %p7833_p3 }
  0x87   :  { %7843 = shalt.err (!%p7840_p7)
}
  0x88   :  { %114 = dma.hbm_to_vmem [thread:$0]  %s8273_s9, 16, %s112_s28, [#allocation15]  }
  0x89   :  { %7844 = dma.done.wait [#allocation4], 73728  }
  0x8a   :  { %7845 = vsyncadd [#allocation4], 4294893568 }
  0x8b   :  { %7846 = dma.done.wait [#allocation6], 144  }
  0x8c   :  { %7847 = vsyncadd [#allocation6], 4294967152 }
  0x8d   :  { %7848 = dma.done.wait [#allocation9], 9216  }
  0x8e   :  { %7849 = vsyncadd [#allocation9], 4294958080 }
  0x8f   :  { %7850 = dma.done.wait [#allocation12], 1040  }
  0x90   :  { %7851 = vsyncadd [#allocation12], 4294966256 }
  0x91   :  { %7852 = dma.done.wait [#allocation15], 16  }
  0x92   :  { %7853 = vsyncadd [#allocation15], 4294967280  ;;  %v7866_v0 = vmov 0.0   ;;  %vm7867_vm0 = vmmov 0   ;;  %v6739_v1 = vld [vmem:[#allocation13] sm:$0xff]   ;;  %v6743_v4 = vld [vmem:[#allocation13 + $0x8] sm:$0xff]  }
  0x93   :  { %6636 = vmatprep.subr.bf16.mxu0 %v7866_v0  ;;  %6652 = vmatprep.mubr.msk.bf16.mxu0 %vm7867_vm0, %v7866_v0  ;;  %v6740_v2 = vld [vmem:[#allocation3 + $0x4] ss:$36 sps:$4 sm:$0xff]   ;;  %v6744_v5 = vld [vmem:[#allocation3 + $0x4c] ss:$36 sps:$4 sm:$0xff]   ;;  %v6747_v7 = vld [vmem:[#allocation13 + $0x10] sm:$0xff]  }
  0x94   :  { %6637 = vmatpush3.bf16.msra.mxu0 %v6739_v1  ;;  %v6742_v3 = vld [vmem:[#allocation3] ss:$36 sps:$4 sm:$0xff]   ;;  %3948 = vmatprep.subr.bf16.mxu1 %v6740_v2  ;;  %v6746_v6 = vld [vmem:[#allocation3 + $0x48] ss:$36 sps:$4 sm:$0xff]   ;;  %v6748_v8 = vld [vmem:[#allocation3 + $0x94] ss:$36 sps:$4 sm:$0xff]  }
  0x95   :  { %6638 = vmatprep.subr.bf16.mxu0 %v7866_v0  ;;  %3949 = vmatpush1.bf16.msra.mxu1 %v6742_v3  ;;  %v6750_v9 = vld [vmem:[#allocation3 + $0x90] ss:$36 sps:$4 sm:$0xff]   ;;  %v6752_v10 = vld [vmem:[#allocation3 + $0xdc] ss:$36 sps:$4 sm:$0xff]   ;;  %v6751_v11 = vld [vmem:[#allocation13 + $0x18] sm:$0xff]  }
  0x96   :  { %3950 = vmatprep.subr.bf16.mxu1 %v6744_v5  ;;  %v6754_v12 = vld [vmem:[#allocation3 + $0xd8] ss:$36 sps:$4 sm:$0xff]   ;;  %v6756_v13 = vld [vmem:[#allocation3 + $0x124] ss:$36 sps:$4 sm:$0xff]   ;;  %v6755_v14 = vld [vmem:[#allocation13 + $0x20] sm:$0xff]  }
  0x97   :  { %v6758_v15 = vld [vmem:[#allocation3 + $0x120] ss:$36 sps:$4 sm:$0xff]   ;;  %v6760_v16 = vld [vmem:[#allocation3 + $0x16c] ss:$36 sps:$4 sm:$0xff]   ;;  %v6759_v17 = vld [vmem:[#allocation13 + $0x28] sm:$0xff]  }
  0x98   :  { %6639 = vmatpush3.bf16.msra.mxu0 %v6743_v4  ;;  %v6762_v18 = vld [vmem:[#allocation3 + $0x168] ss:$36 sps:$4 sm:$0xff]   ;;  %v6764_v19 = vld [vmem:[#allocation3 + $0x1b4] ss:$36 sps:$4 sm:$0xff]   ;;  %v6763_v20 = vld [vmem:[#allocation13 + $0x30] sm:$0xff]  }
  0x99   :  { %6640 = vmatprep.subr.bf16.mxu0 %v7866_v0  ;;  %3951 = vmatpush1.bf16.msra.mxu1 %v6746_v6  ;;  %v6766_v21 = vld [vmem:[#allocation3 + $0x1b0] ss:$36 sps:$4 sm:$0xff]   ;;  %v6768_v22 = vld [vmem:[#allocation3 + $0x1fc] ss:$36 sps:$4 sm:$0xff]   ;;  %v6767_v23 = vld [vmem:[#allocation13 + $0x38] sm:$0xff]  }
  0x9a   :  { %3952 = vmatprep.subr.bf16.mxu1 %v6748_v8  ;;  %v6774_v24 = vld [vmem:[#allocation3 + $0xc] ss:$36 sps:$4 sm:$0xff]   ;;  %v6770_v25 = vld [vmem:[#allocation3 + $0x1f8] ss:$36 sps:$4 sm:$0xff]   ;;  %v6771_v26 = vld [vmem:[%s8271_s7] sm:$0xff]  }
  0x9b   :  { %v6775_v27 = vld [vmem:[#allocation3 + $0x244] ss:$36 sps:$4 sm:$0xff]   ;;  %v6780_v29 = vld [vmem:[#allocation3 + $0x54] ss:$36 sps:$4 sm:$0xff]   ;;  %v6781_v31 = vld [vmem:[#allocation3 + $0x28c] ss:$36 sps:$4 sm:$0xff]  }
  0x9c   :  { %6641 = vmatpush3.bf16.msra.mxu0 %v6747_v7  ;;  %v6772_v28 = vld [vmem:[#allocation3 + $0x8] ss:$36 sps:$4 sm:$0xff]   ;;  %v6777_v30 = vld [vmem:[#allocation3 + $0x240] ss:$36 sps:$4 sm:$0xff]   ;;  %v6778_v32 = vld [vmem:[#allocation3 + $0x50] ss:$36 sps:$4 sm:$0xff]  }
  0x9d   :  { %6642 = vmatprep.subr.bf16.mxu0 %v7866_v0  ;;  %3953 = vmatpush1.bf16.msra.mxu1 %v6750_v9  ;;  %v6786_v33 = vld [vmem:[#allocation3 + $0x9c] ss:$36 sps:$4 sm:$0xff]   ;;  %v6783_v34 = vld [vmem:[#allocation3 + $0x288] ss:$36 sps:$4 sm:$0xff]   ;;  %v6787_v35 = vld [vmem:[#allocation3 + $0x2d4] ss:$36 sps:$4 sm:$0xff]  }
  0x9e   :  { %3954 = vmatprep.subr.bf16.mxu1 %v6752_v10  ;;  %v6784_v36 = vld [vmem:[#allocation3 + $0x98] ss:$36 sps:$4 sm:$0xff]   ;;  %v6792_v37 = vld [vmem:[#allocation3 + $0xe4] ss:$36 sps:$4 sm:$0xff]   ;;  %v6789_v38 = vld [vmem:[#allocation3 + $0x2d0] ss:$36 sps:$4 sm:$0xff]  }
  0x9f   :  { %v6793_v39 = vld [vmem:[#allocation3 + $0x31c] ss:$36 sps:$4 sm:$0xff]   ;;  %v6798_v43 = vld [vmem:[#allocation3 + $0x12c] ss:$36 sps:$4 sm:$0xff]   ;;  %v6799_v46 = vld [vmem:[#allocation3 + $0x364] ss:$36 sps:$4 sm:$0xff]  }
  0xa0   :  { %6643 = vmatpush3.bf16.msra.mxu0 %v6751_v11  ;;  %v6790_v40 = vld [vmem:[#allocation3 + $0xe0] ss:$36 sps:$4 sm:$0xff]   ;;  %v6795_v45 = vld [vmem:[#allocation3 + $0x318] ss:$36 sps:$4 sm:$0xff]   ;;  %v6796_v47 = vld [vmem:[#allocation3 + $0x128] ss:$36 sps:$4 sm:$0xff]  }
  0xa1   :  { %6644 = vmatprep.subr.bf16.mxu0 %v7866_v0  ;;  %3955 = vmatpush1.bf16.msra.mxu1 %v6754_v12  ;;  %v316_v41 = vld [vmem:[%s8264_s0] sm:$0xff]  ;;  %v6804_v48 = vld [vmem:[#allocation3 + $0x174] ss:$36 sps:$4 sm:$0xff]   ;;  %v6805_v50 = vld [vmem:[#allocation3 + $0x3ac] ss:$36 sps:$4 sm:$0xff]  }
  0xa2   :  { %3956 = vmatprep.subr.bf16.mxu1 %v6756_v13  ;;  %v320_v42 = vld [vmem:[%s8264_s0 + $0x20] sm:$0xff]  ;;  %v6802_v51 = vld [vmem:[#allocation3 + $0x170] ss:$36 sps:$4 sm:$0xff]   ;;  %v6807_v53 = vld [vmem:[#allocation3 + $0x3a8] ss:$36 sps:$4 sm:$0xff]  }
  0xa3   :  { %v8079_v44 = vcombine.high %v316_v41, %v320_v42  ;;  %v6801_v49 = vld [vmem:[#allocation3 + $0x360] ss:$36 sps:$4 sm:$0xff]   ;;  %v6811_v54 = vld [vmem:[#allocation3 + $0x3f4] ss:$36 sps:$4 sm:$0xff]   ;;  %v6822_v60 = vld [vmem:[#allocation3 + $0x24c] ss:$36 sps:$4 sm:$0xff]   ;;  %v8083_v1 = vcombine.low %v316_v41, %v320_v42 }
  0xa4   :  { %6645 = vmatpush3.bf16.msra.mxu0 %v6755_v14  ;;  %v6810_v52 = vld [vmem:[#allocation3 + $0x1bc] ss:$36 sps:$4 sm:$0xff]   ;;  %v6816_v56 = vld [vmem:[#allocation3 + $0x204] ss:$36 sps:$4 sm:$0xff]   ;;  %v6813_v57 = vld [vmem:[#allocation3 + $0x3f0] ss:$36 sps:$4 sm:$0xff]  }
  0xa5   :  { %6646 = vmatprep.subr.bf16.mxu0 %v7866_v0  ;;  %3957 = vmatpush1.bf16.msra.mxu1 %v6758_v15  ;;  %v6808_v55 = vld [vmem:[#allocation3 + $0x1b8] ss:$36 sps:$4 sm:$0xff]   ;;  %v6814_v59 = vld [vmem:[#allocation3 + $0x200] ss:$36 sps:$4 sm:$0xff]   ;;  %v6820_v63 = vld [vmem:[#allocation3 + $0x248] ss:$36 sps:$4 sm:$0xff]  }
  0xa6   :  { %3958 = vmatprep.subr.bf16.mxu1 %v6760_v16  ;;  %3980 = vmatprep.mubr.bf16.mxu1 %v8079_v44  ;;  %v6817_v58 = vld [vmem:[#allocation3 + $0x43c] ss:$36 sps:$4 sm:$0xff]   ;;  %v6825_v62 = vld [vmem:[#allocation3 + $0x484] ss:$36 sps:$4 sm:$0xff]   ;;  %v6828_v2 = vld [vmem:[#allocation3 + $0x294] ss:$36 sps:$4 sm:$0xff]  }
  0xa7   :  { %v6819_v61 = vld [vmem:[#allocation3 + $0x438] ss:$36 sps:$4 sm:$0xff]   ;;  %v6823_v3 = vld [vmem:[#allocation3 + $0x480] ss:$36 sps:$4 sm:$0xff]   ;;  %v6831_v4 = vld [vmem:[#allocation3 + $0x4cc] ss:$36 sps:$4 sm:$0xff]  }
  0xa8   :  { %6647 = vmatpush3.bf16.msra.mxu0 %v6759_v17  ;;  %v6826_v5 = vld [vmem:[#allocation3 + $0x290] ss:$36 sps:$4 sm:$0xff]   ;;  %v6834_v6 = vld [vmem:[#allocation3 + $0x2dc] ss:$36 sps:$4 sm:$0xff]   ;;  %v6829_v7 = vld [vmem:[#allocation3 + $0x4c8] ss:$36 sps:$4 sm:$0xff]  }
  0xa9   :  { %6648 = vmatprep.subr.bf16.mxu0 %v7866_v0  ;;  %3959 = vmatpush1.bf16.msra.mxu1 %v6762_v18  ;;  %v6837_v8 = vld [vmem:[#allocation3 + $0x514] ss:$36 sps:$4 sm:$0xff]   ;;  %v6840_v10 = vld [vmem:[#allocation3 + $0x324] ss:$36 sps:$4 sm:$0xff]   ;;  %v6843_v12 = vld [vmem:[#allocation3 + $0x55c] ss:$36 sps:$4 sm:$0xff]  }
  0xaa   :  { %3960 = vmatprep.subr.bf16.mxu1 %v6764_v19  ;;  %v6832_v9 = vld [vmem:[#allocation3 + $0x2d8] ss:$36 sps:$4 sm:$0xff]   ;;  %v6835_v11 = vld [vmem:[#allocation3 + $0x510] ss:$36 sps:$4 sm:$0xff]   ;;  %v6838_v13 = vld [vmem:[#allocation3 + $0x320] ss:$36 sps:$4 sm:$0xff]  }
  0xab   :  { %v6846_v14 = vld [vmem:[#allocation3 + $0x36c] ss:$36 sps:$4 sm:$0xff]   ;;  %v6841_v15 = vld [vmem:[#allocation3 + $0x558] ss:$36 sps:$4 sm:$0xff]   ;;  %v6849_v16 = vld [vmem:[#allocation3 + $0x5a4] ss:$36 sps:$4 sm:$0xff]  }
  0xac   :  { %6649 = vmatpush3.bf16.msra.mxu0 %v6763_v20  ;;  %v6844_v17 = vld [vmem:[#allocation3 + $0x368] ss:$36 sps:$4 sm:$0xff]   ;;  %v6852_v18 = vld [vmem:[#allocation3 + $0x3b4] ss:$36 sps:$4 sm:$0xff]   ;;  %v6847_v19 = vld [vmem:[#allocation3 + $0x5a0] ss:$36 sps:$4 sm:$0xff]  }
  0xad   :  { %6650 = vmatprep.subr.bf16.mxu0 %v7866_v0  ;;  %3961 = vmatpush1.bf16.msra.mxu1 %v6766_v21  ;;  %v6855_v20 = vld [vmem:[#allocation3 + $0x5ec] ss:$36 sps:$4 sm:$0xff]   ;;  %v6882_v41 = vld [vmem:[#allocation3 + $0x51c] ss:$36 sps:$4 sm:$0xff]  }
  0xae   :  { %3962 = vmatprep.subr.bf16.mxu1 %v6768_v22  ;;  %v6850_v21 = vld [vmem:[#allocation3 + $0x3b0] ss:$36 sps:$4 sm:$0xff]   ;;  %v6858_v22 = vld [vmem:[#allocation3 + $0x3fc] ss:$36 sps:$4 sm:$0xff]   ;;  %v6877_v42 = vld [vmem:[#allocation3 + $0x708] ss:$36 sps:$4 sm:$0xff]  }
  0xb0   :  { %6651 = vmatpush3.bf16.msra.mxu0 %v6767_v23  ;;  %v6853_v23 = vld [vmem:[#allocation3 + $0x5e8] ss:$36 sps:$4 sm:$0xff]  }
  0xb1   :  { %4120 = vmatprep.subr.bf16.mxu0 %v6774_v24  ;;  %3963 = vmatpush1.bf16.msra.mxu1 %v6770_v25  ;;  %v6856_v24 = vld [vmem:[#allocation3 + $0x3f8] ss:$36 sps:$4 sm:$0xff]  }
  0xb2   :  { %3964 = vmatprep.subr.bf16.mxu1 %v6775_v27  ;;  %v6861_v25 = vld [vmem:[#allocation3 + $0x634] ss:$36 sps:$4 sm:$0xff]   ;;  %v8094_v27 = vld [vmem:[%s8264_s0 + $0x28] sm:$0xff] }
  0xb3   :  { %6653 = vmatmul.mubr.bf16.vlgmr.msra.gmra.mrb[0].mxu0 %v6771_v26  ;;  %v8089_v26 = vld [vmem:[%s8264_s0 + $0x8] sm:$0xff] }
  0xb4   :  { %4121 = vmatpush1.bf16.msra.mxu0 %v6772_v28  ;;  %4152 = vmatprep.mubr.bf16.mxu0 %v8079_v44  ;;  %v6864_v28 = vld [vmem:[#allocation3 + $0x444] ss:$36 sps:$4 sm:$0xff]  }
  0xb5   :  { %4122 = vmatprep.subr.bf16.mxu0 %v6780_v29  ;;  %3965 = vmatpush1.bf16.msra.mxu1 %v6777_v30  ;;  %v8098_v29 = vcombine.high %v8089_v26, %v8094_v27  ;;  %v6859_v30 = vld [vmem:[#allocation3 + $0x630] ss:$36 sps:$4 sm:$0xff]  }
  0xb6   :  { %3966 = vmatprep.subr.bf16.mxu1 %v6781_v31  ;;  %v6867_v31 = vld [vmem:[#allocation3 + $0x67c] ss:$36 sps:$4 sm:$0xff]  }
  0xb8   :  { %4123 = vmatpush1.bf16.msra.mxu0 %v6778_v32  ;;  %v6862_v32 = vld [vmem:[#allocation3 + $0x440] ss:$36 sps:$4 sm:$0xff]  }
  0xb9   :  { %4124 = vmatprep.subr.bf16.mxu0 %v6786_v33  ;;  %3967 = vmatpush1.bf16.msra.mxu1 %v6783_v34  ;;  %v6870_v33 = vld [vmem:[#allocation3 + $0x48c] ss:$36 sps:$4 sm:$0xff]   ;;  %v6865_v34 = vld [vmem:[#allocation3 + $0x678] ss:$36 sps:$4 sm:$0xff]  }
  0xba   :  { %3968 = vmatprep.subr.bf16.mxu1 %v6787_v35  ;;  %v6873_v35 = vld [vmem:[#allocation3 + $0x6c4] ss:$36 sps:$4 sm:$0xff]  }
  0xbc   :  { %4125 = vmatpush1.bf16.msra.mxu0 %v6784_v36  ;;  %v6868_v36 = vld [vmem:[#allocation3 + $0x488] ss:$36 sps:$4 sm:$0xff]  }
  0xbd   :  { %4126 = vmatprep.subr.bf16.mxu0 %v6792_v37  ;;  %3969 = vmatpush1.bf16.msra.mxu1 %v6789_v38  ;;  %v6876_v37 = vld [vmem:[#allocation3 + $0x4d4] ss:$36 sps:$4 sm:$0xff]   ;;  %v6871_v38 = vld [vmem:[#allocation3 + $0x6c0] ss:$36 sps:$4 sm:$0xff]  }
  0xbe   :  { %3970 = vmatprep.subr.bf16.mxu1 %v6793_v39  ;;  %v6879_v39 = vld [vmem:[#allocation3 + $0x70c] ss:$36 sps:$4 sm:$0xff]  }
  0xc0   :  { %4127 = vmatpush1.bf16.msra.mxu0 %v6790_v40  ;;  %v6874_v40 = vld [vmem:[#allocation3 + $0x4d0] ss:$36 sps:$4 sm:$0xff]  }
  0xc1   :  { %4128 = vmatprep.subr.bf16.mxu0 %v6798_v43  ;;  %3971 = vmatpush1.bf16.msra.mxu1 %v6795_v45  ;;  %v6885_v43 = vld [vmem:[#allocation3 + $0x754] ss:$36 sps:$4 sm:$0xff]  }
  0xc2   :  { %3972 = vmatprep.subr.bf16.mxu1 %v6799_v46  ;;  %v6880_v45 = vld [vmem:[#allocation3 + $0x518] ss:$36 sps:$4 sm:$0xff]   ;;  %v6888_v46 = vld [vmem:[#allocation3 + $0x564] ss:$36 sps:$4 sm:$0xff]  }
  0xc4   :  { %4129 = vmatpush1.bf16.msra.mxu0 %v6796_v47  ;;  %v6883_v47 = vld [vmem:[#allocation3 + $0x750] ss:$36 sps:$4 sm:$0xff]  }
  0xc5   :  { %4130 = vmatprep.subr.bf16.mxu0 %v6804_v48  ;;  %3973 = vmatpush1.bf16.msra.mxu1 %v6801_v49  ;;  %v6891_v48 = vld [vmem:[#allocation3 + $0x79c] ss:$36 sps:$4 sm:$0xff]  }
  0xc6   :  { %3974 = vmatprep.subr.bf16.mxu1 %v6805_v50  ;;  %v6886_v49 = vld [vmem:[#allocation3 + $0x560] ss:$36 sps:$4 sm:$0xff]   ;;  %v6894_v50 = vld [vmem:[#allocation3 + $0x5ac] ss:$36 sps:$4 sm:$0xff]  }
  0xc8   :  { %4131 = vmatpush1.bf16.msra.mxu0 %v6802_v51  ;;  %v6889_v51 = vld [vmem:[#allocation3 + $0x798] ss:$36 sps:$4 sm:$0xff]  }
  0xc9   :  { %4132 = vmatprep.subr.bf16.mxu0 %v6810_v52  ;;  %3975 = vmatpush1.bf16.msra.mxu1 %v6807_v53  ;;  %v6897_v52 = vld [vmem:[#allocation3 + $0x7e4] ss:$36 sps:$4 sm:$0xff]  }
  0xca   :  { %3976 = vmatprep.subr.bf16.mxu1 %v6811_v54  ;;  %v6892_v53 = vld [vmem:[#allocation3 + $0x5a8] ss:$36 sps:$4 sm:$0xff]   ;;  %v6900_v54 = vld [vmem:[#allocation3 + $0x5f4] ss:$36 sps:$4 sm:$0xff]  }
  0xcc   :  { %4133 = vmatpush1.bf16.msra.mxu0 %v6808_v55  ;;  %v6895_v55 = vld [vmem:[#allocation3 + $0x7e0] ss:$36 sps:$4 sm:$0xff]  }
  0xcd   :  { %4134 = vmatprep.subr.bf16.mxu0 %v6816_v56  ;;  %3977 = vmatpush1.bf16.msra.mxu1 %v6813_v57  ;;  %v6903_v56 = vld [vmem:[#allocation3 + $0x82c] ss:$36 sps:$4 sm:$0xff]  }
  0xce   :  { %3978 = vmatprep.subr.bf16.mxu1 %v6817_v58  ;;  %v6898_v57 = vld [vmem:[#allocation3 + $0x5f0] ss:$36 sps:$4 sm:$0xff]   ;;  %v6906_v58 = vld [vmem:[#allocation3 + $0x63c] ss:$36 sps:$4 sm:$0xff]  }
  0xd0   :  { %4135 = vmatpush1.bf16.msra.mxu0 %v6814_v59  ;;  %v6901_v59 = vld [vmem:[#allocation3 + $0x828] ss:$36 sps:$4 sm:$0xff]  }
  0xd1   :  { %4136 = vmatprep.subr.bf16.mxu0 %v6822_v60  ;;  %3979 = vmatpush1.bf16.msra.mxu1 %v6819_v61  ;;  %v6909_v60 = vld [vmem:[#allocation3 + $0x874] ss:$36 sps:$4 sm:$0xff]  }
  0xd2   :  { %3991 = vmatprep.subr.bf16.mxu1 %v6825_v62  ;;  %v6904_v61 = vld [vmem:[#allocation3 + $0x638] ss:$36 sps:$4 sm:$0xff]   ;;  %v6912_v62 = vld [vmem:[#allocation3 + $0x684] ss:$36 sps:$4 sm:$0xff]  }
  0xd4   :  { %4137 = vmatpush1.bf16.msra.mxu0 %v6820_v63  ;;  %3981 = vmatmul.mubr.bf16.vlgmr.msra.gmra.mrb[0].mxu1 %v8083_v1  ;;  %v6907_v63 = vld [vmem:[#allocation3 + $0x870] ss:$36 sps:$4 sm:$0xff]  }
  0xd5   :  { %4138 = vmatprep.subr.bf16.mxu0 %v6828_v2  ;;  %3992 = vmatpush1.bf16.msra.mxu1 %v6823_v3  ;;  %v6915_v2 = vld [vmem:[#allocation3 + $0x8bc] ss:$36 sps:$4 sm:$0xff]  }
  0xd6   :  { %3993 = vmatprep.subr.bf16.mxu1 %v6831_v4  ;;  %4023 = vmatprep.mubr.bf16.mxu1 %v8098_v29  ;;  %v6910_v3 = vld [vmem:[#allocation3 + $0x680] ss:$36 sps:$4 sm:$0xff]   ;;  %v6918_v4 = vld [vmem:[#allocation3 + $0x6cc] ss:$36 sps:$4 sm:$0xff]  }
  0xd8   :  { %4139 = vmatpush1.bf16.msra.mxu0 %v6826_v5  ;;  %v6913_v5 = vld [vmem:[#allocation3 + $0x8b8] ss:$36 sps:$4 sm:$0xff]  }
  0xd9   :  { %4140 = vmatprep.subr.bf16.mxu0 %v6834_v6  ;;  %3994 = vmatpush1.bf16.msra.mxu1 %v6829_v7  ;;  %v6921_v6 = vld [vmem:[#allocation3 + $0x904] ss:$36 sps:$4 sm:$0xff]  }
  0xda   :  { %3995 = vmatprep.subr.bf16.mxu1 %v6837_v8  ;;  %v6916_v7 = vld [vmem:[#allocation3 + $0x6c8] ss:$36 sps:$4 sm:$0xff]   ;;  %v8105_v8 = vcombine.low %v8089_v26, %v8094_v27 }
  0xdb   :  { %v6945_v26 = vld [vmem:[#allocation3 + $0xa24] ss:$36 sps:$4 sm:$0xff]  }
  0xdc   :  { %4141 = vmatpush1.bf16.msra.mxu0 %v6832_v9  ;;  %v6924_v9 = vld [vmem:[#allocation3 + $0x714] ss:$36 sps:$4 sm:$0xff]   ;;  %v6940_v27 = vld [vmem:[#allocation3 + $0x7e8] ss:$36 sps:$4 sm:$0xff]  }
  0xdd   :  { %4142 = vmatprep.subr.bf16.mxu0 %v6840_v10  ;;  %3996 = vmatpush1.bf16.msra.mxu1 %v6835_v11  ;;  %v6919_v10 = vld [vmem:[#allocation3 + $0x900] ss:$36 sps:$4 sm:$0xff]   ;;  %v6927_v11 = vld [vmem:[#allocation3 + $0x94c] ss:$36 sps:$4 sm:$0xff]  }
  0xde   :  { %3997 = vmatprep.subr.bf16.mxu1 %v6843_v12  ;;  %v8110_v12 = vld [vmem:[%s8264_s0 + $0x10] sm:$0xff] }
  0xe0   :  { %4143 = vmatpush1.bf16.msra.mxu0 %v6838_v13  ;;  %v8115_v13 = vld [vmem:[%s8264_s0 + $0x30] sm:$0xff] }
  0xe1   :  { %4144 = vmatprep.subr.bf16.mxu0 %v6846_v14  ;;  %3998 = vmatpush1.bf16.msra.mxu1 %v6841_v15  ;;  %v6922_v14 = vld [vmem:[#allocation3 + $0x710] ss:$36 sps:$4 sm:$0xff]   ;;  %v8119_v15 = vcombine.high %v8110_v12, %v8115_v13 }
  0xe2   :  { %3999 = vmatprep.subr.bf16.mxu1 %v6849_v16  ;;  %v6930_v16 = vld [vmem:[#allocation3 + $0x75c] ss:$36 sps:$4 sm:$0xff]  }
  0xe4   :  { %4145 = vmatpush1.bf16.msra.mxu0 %v6844_v17  ;;  %v6925_v17 = vld [vmem:[#allocation3 + $0x948] ss:$36 sps:$4 sm:$0xff]  }
  0xe5   :  { %4146 = vmatprep.subr.bf16.mxu0 %v6852_v18  ;;  %4000 = vmatpush1.bf16.msra.mxu1 %v6847_v19  ;;  %v6933_v18 = vld [vmem:[#allocation3 + $0x994] ss:$36 sps:$4 sm:$0xff]  }
  0xe6   :  { %4001 = vmatprep.subr.bf16.mxu1 %v6855_v20  ;;  %v6928_v19 = vld [vmem:[#allocation3 + $0x758] ss:$36 sps:$4 sm:$0xff]   ;;  %v6936_v20 = vld [vmem:[#allocation3 + $0x7a4] ss:$36 sps:$4 sm:$0xff]  }
  0xe8   :  { %4147 = vmatpush1.bf16.msra.mxu0 %v6850_v21  ;;  %v6931_v21 = vld [vmem:[#allocation3 + $0x990] ss:$36 sps:$4 sm:$0xff]  }
  0xe9   :  { %4148 = vmatprep.subr.bf16.mxu0 %v6858_v22  ;;  %4002 = vmatpush1.bf16.msra.mxu1 %v6853_v23  ;;  %v6939_v22 = vld [vmem:[#allocation3 + $0x9dc] ss:$36 sps:$4 sm:$0xff]  }
  0xea   :  { %4003 = vmatprep.subr.bf16.mxu1 %v6861_v25  ;;  %v6934_v23 = vld [vmem:[#allocation3 + $0x7a0] ss:$36 sps:$4 sm:$0xff]   ;;  %v6937_v25 = vld [vmem:[#allocation3 + $0x9d8] ss:$36 sps:$4 sm:$0xff]  }
  0xec   :  { %4149 = vmatpush1.bf16.msra.mxu0 %v6856_v24  ;;  %v6942_v24 = vld [vmem:[#allocation3 + $0x7ec] ss:$36 sps:$4 sm:$0xff]  }
  0xed   :  { %4150 = vmatprep.subr.bf16.mxu0 %v6864_v28  ;;  %4004 = vmatpush1.bf16.msra.mxu1 %v6859_v30  ;;  %v6948_v28 = vld [vmem:[#allocation3 + $0x834] ss:$36 sps:$4 sm:$0xff]   ;;  %v6943_v30 = vld [vmem:[#allocation3 + $0xa20] ss:$36 sps:$4 sm:$0xff]  }
  0xee   :  { %4005 = vmatprep.subr.bf16.mxu1 %v6867_v31  ;;  %v6951_v31 = vld [vmem:[#allocation3 + $0xa6c] ss:$36 sps:$4 sm:$0xff]  }
  0xf0   :  { %4151 = vmatpush1.bf16.msra.mxu0 %v6862_v32  ;;  %v6946_v32 = vld [vmem:[#allocation3 + $0x830] ss:$36 sps:$4 sm:$0xff]  }
  0xf1   :  { %4163 = vmatprep.subr.bf16.mxu0 %v6870_v33  ;;  %4006 = vmatpush1.bf16.msra.mxu1 %v6865_v34  ;;  %v6954_v33 = vld [vmem:[#allocation3 + $0x87c] ss:$36 sps:$4 sm:$0xff]   ;;  %v6949_v34 = vld [vmem:[#allocation3 + $0xa68] ss:$36 sps:$4 sm:$0xff]  }
  0xf2   :  { %4007 = vmatprep.subr.bf16.mxu1 %v6873_v35  ;;  %v6957_v35 = vld [vmem:[#allocation3 + $0xab4] ss:$36 sps:$4 sm:$0xff]  }
  0xf3   :  { %4153 = vmatmul.mubr.bf16.vlgmr.msra.gmra.mrb[4].mxu0 %v8083_v1 }
  0xf4   :  { %4164 = vmatpush1.bf16.msra.mxu0 %v6868_v36  ;;  %4195 = vmatprep.mubr.bf16.mxu0 %v8098_v29  ;;  %v6952_v36 = vld [vmem:[#allocation3 + $0x878] ss:$36 sps:$4 sm:$0xff]  }
  0xf5   :  { %4165 = vmatprep.subr.bf16.mxu0 %v6876_v37  ;;  %4008 = vmatpush1.bf16.msra.mxu1 %v6871_v38  ;;  %v6960_v37 = vld [vmem:[#allocation3 + $0x8c4] ss:$36 sps:$4 sm:$0xff]   ;;  %v6955_v38 = vld [vmem:[#allocation3 + $0xab0] ss:$36 sps:$4 sm:$0xff]  }
  0xf6   :  { %4009 = vmatprep.subr.bf16.mxu1 %v6879_v39  ;;  %v6963_v39 = vld [vmem:[#allocation3 + $0xafc] ss:$36 sps:$4 sm:$0xff]  }
  0xf8   :  { %4166 = vmatpush1.bf16.msra.mxu0 %v6874_v40  ;;  %v6958_v40 = vld [vmem:[#allocation3 + $0x8c0] ss:$36 sps:$4 sm:$0xff]  }
  0xf9   :  { %4167 = vmatprep.subr.bf16.mxu0 %v6882_v41  ;;  %4010 = vmatpush1.bf16.msra.mxu1 %v6877_v42  ;;  %v6966_v41 = vld [vmem:[#allocation3 + $0x90c] ss:$36 sps:$4 sm:$0xff]   ;;  %v6961_v42 = vld [vmem:[#allocation3 + $0xaf8] ss:$36 sps:$4 sm:$0xff]  }
  0xfa   :  { %4011 = vmatprep.subr.bf16.mxu1 %v6885_v43  ;;  %v6969_v43 = vld [vmem:[#allocation3 + $0xb44] ss:$36 sps:$4 sm:$0xff]  }
  0xfc   :  { %4168 = vmatpush1.bf16.msra.mxu0 %v6880_v45  ;;  %v6964_v45 = vld [vmem:[#allocation3 + $0x908] ss:$36 sps:$4 sm:$0xff]  }
  0xfd   :  { %4169 = vmatprep.subr.bf16.mxu0 %v6888_v46  ;;  %4012 = vmatpush1.bf16.msra.mxu1 %v6883_v47  ;;  %v6972_v46 = vld [vmem:[#allocation3 + $0x954] ss:$36 sps:$4 sm:$0xff]   ;;  %v6967_v47 = vld [vmem:[#allocation3 + $0xb40] ss:$36 sps:$4 sm:$0xff]  }
  0xfe   :  { %4013 = vmatprep.subr.bf16.mxu1 %v6891_v48  ;;  %v6975_v48 = vld [vmem:[#allocation3 + $0xb8c] ss:$36 sps:$4 sm:$0xff]  }
 0x100   :  { %4170 = vmatpush1.bf16.msra.mxu0 %v6886_v49  ;;  %v6970_v49 = vld [vmem:[#allocation3 + $0x950] ss:$36 sps:$4 sm:$0xff]  }
 0x101   :  { %4171 = vmatprep.subr.bf16.mxu0 %v6894_v50  ;;  %4014 = vmatpush1.bf16.msra.mxu1 %v6889_v51  ;;  %v6978_v50 = vld [vmem:[#allocation3 + $0x99c] ss:$36 sps:$4 sm:$0xff]   ;;  %v6973_v51 = vld [vmem:[#allocation3 + $0xb88] ss:$36 sps:$4 sm:$0xff]  }
 0x102   :  { %4015 = vmatprep.subr.bf16.mxu1 %v6897_v52  ;;  %v6981_v52 = vld [vmem:[#allocation3 + $0xbd4] ss:$36 sps:$4 sm:$0xff]  }
 0x104   :  { %4172 = vmatpush1.bf16.msra.mxu0 %v6892_v53  ;;  %v6976_v53 = vld [vmem:[#allocation3 + $0x998] ss:$36 sps:$4 sm:$0xff]  }
 0x105   :  { %4173 = vmatprep.subr.bf16.mxu0 %v6900_v54  ;;  %4016 = vmatpush1.bf16.msra.mxu1 %v6895_v55  ;;  %v6984_v54 = vld [vmem:[#allocation3 + $0x9e4] ss:$36 sps:$4 sm:$0xff]   ;;  %v6979_v55 = vld [vmem:[#allocation3 + $0xbd0] ss:$36 sps:$4 sm:$0xff]  }
 0x106   :  { %4017 = vmatprep.subr.bf16.mxu1 %v6903_v56  ;;  %v6987_v56 = vld [vmem:[#allocation3 + $0xc1c] ss:$36 sps:$4 sm:$0xff]  }
 0x108   :  { %4174 = vmatpush1.bf16.msra.mxu0 %v6898_v57  ;;  %v6982_v57 = vld [vmem:[#allocation3 + $0x9e0] ss:$36 sps:$4 sm:$0xff]  }
 0x109   :  { %4175 = vmatprep.subr.bf16.mxu0 %v6906_v58  ;;  %4018 = vmatpush1.bf16.msra.mxu1 %v6901_v59  ;;  %v6990_v58 = vld [vmem:[#allocation3 + $0xa2c] ss:$36 sps:$4 sm:$0xff]   ;;  %v6985_v59 = vld [vmem:[#allocation3 + $0xc18] ss:$36 sps:$4 sm:$0xff]  }
 0x10a   :  { %4019 = vmatprep.subr.bf16.mxu1 %v6909_v60  ;;  %v6993_v60 = vld [vmem:[#allocation3 + $0xc64] ss:$36 sps:$4 sm:$0xff]  }
 0x10c   :  { %4176 = vmatpush1.bf16.msra.mxu0 %v6904_v61  ;;  %v6988_v61 = vld [vmem:[#allocation3 + $0xa28] ss:$36 sps:$4 sm:$0xff]  }
 0x10d   :  { %4177 = vmatprep.subr.bf16.mxu0 %v6912_v62  ;;  %4020 = vmatpush1.bf16.msra.mxu1 %v6907_v63  ;;  %v6996_v62 = vld [vmem:[#allocation3 + $0xa74] ss:$36 sps:$4 sm:$0xff]   ;;  %v6991_v63 = vld [vmem:[#allocation3 + $0xc60] ss:$36 sps:$4 sm:$0xff]  }
 0x10e   :  { %4021 = vmatprep.subr.bf16.mxu1 %v6915_v2  ;;  %v6999_v2 = vld [vmem:[#allocation3 + $0xcac] ss:$36 sps:$4 sm:$0xff]  }
 0x110   :  { %4178 = vmatpush1.bf16.msra.mxu0 %v6910_v3  ;;  %v6994_v3 = vld [vmem:[#allocation3 + $0xa70] ss:$36 sps:$4 sm:$0xff]  }
 0x111   :  { %4179 = vmatprep.subr.bf16.mxu0 %v6918_v4  ;;  %4022 = vmatpush1.bf16.msra.mxu1 %v6913_v5  ;;  %v7002_v4 = vld [vmem:[#allocation3 + $0xabc] ss:$36 sps:$4 sm:$0xff]   ;;  %v6997_v5 = vld [vmem:[#allocation3 + $0xca8] ss:$36 sps:$4 sm:$0xff]  }
 0x112   :  { %4034 = vmatprep.subr.bf16.mxu1 %v6921_v6  ;;  %v7005_v6 = vld [vmem:[#allocation3 + $0xcf4] ss:$36 sps:$4 sm:$0xff]  }
 0x114   :  { %4180 = vmatpush1.bf16.msra.mxu0 %v6916_v7  ;;  %4024 = vmatmul.mubr.bf16.vlgmr.msra.gmra.mrb[0].mxu1 %v8105_v8  ;;  %v7000_v7 = vld [vmem:[#allocation3 + $0xab8] ss:$36 sps:$4 sm:$0xff]  }
 0x115   :  { %4181 = vmatprep.subr.bf16.mxu0 %v6924_v9  ;;  %4035 = vmatpush1.bf16.msra.mxu1 %v6919_v10  ;;  %v7008_v9 = vld [vmem:[#allocation3 + $0xb04] ss:$36 sps:$4 sm:$0xff]   ;;  %v7003_v10 = vld [vmem:[#allocation3 + $0xcf0] ss:$36 sps:$4 sm:$0xff]  }
 0x116   :  { %4066 = vmatprep.mubr.bf16.mxu1 %v8119_v15  ;;  %4036 = vmatprep.subr.bf16.mxu1 %v6927_v11  ;;  %v7011_v11 = vld [vmem:[#allocation3 + $0xd3c] ss:$36 sps:$4 sm:$0xff]  }
 0x118   :  { %4182 = vmatpush1.bf16.msra.mxu0 %v6922_v14  ;;  %v7006_v14 = vld [vmem:[#allocation3 + $0xb00] ss:$36 sps:$4 sm:$0xff]  }
 0x119   :  { %4183 = vmatprep.subr.bf16.mxu0 %v6930_v16  ;;  %4037 = vmatpush1.bf16.msra.mxu1 %v6925_v17  ;;  %v7009_v16 = vld [vmem:[#allocation3 + $0xd38] ss:$36 sps:$4 sm:$0xff]   ;;  %v7014_v17 = vld [vmem:[#allocation3 + $0xb4c] ss:$36 sps:$4 sm:$0xff]  }
 0x11a   :  { %4038 = vmatprep.subr.bf16.mxu1 %v6933_v18  ;;  %v7017_v18 = vld [vmem:[#allocation3 + $0xd84] ss:$36 sps:$4 sm:$0xff]  }
 0x11c   :  { %4184 = vmatpush1.bf16.msra.mxu0 %v6928_v19  ;;  %v8128_v19 = vld [vmem:[%s8264_s0 + $0x18] sm:$0xff] }
 0x11d   :  { %4185 = vmatprep.subr.bf16.mxu0 %v6936_v20  ;;  %4039 = vmatpush1.bf16.msra.mxu1 %v6931_v21  ;;  %v8133_v20 = vld [vmem:[%s8264_s0 + $0x38] sm:$0xff]  ;;  %v7012_v21 = vld [vmem:[#allocation3 + $0xb48] ss:$36 sps:$4 sm:$0xff]  }
 0x11e   :  { %4040 = vmatprep.subr.bf16.mxu1 %v6939_v22  ;;  %v8137_v22 = vcombine.low %v8110_v12, %v8115_v13  ;;  %v7029_v12 = vld [vmem:[#allocation3 + $0xe14] ss:$36 sps:$4 sm:$0xff]  }
 0x11f   :  { %v7024_v13 = vld [vmem:[#allocation3 + $0xbd8] ss:$36 sps:$4 sm:$0xff]  }
 0x120   :  { %4186 = vmatpush1.bf16.msra.mxu0 %v6934_v23  ;;  %v7020_v23 = vld [vmem:[#allocation3 + $0xb94] ss:$36 sps:$4 sm:$0xff]  }
 0x121   :  { %4187 = vmatprep.subr.bf16.mxu0 %v6942_v24  ;;  %4041 = vmatpush1.bf16.msra.mxu1 %v6937_v25  ;;  %v7015_v24 = vld [vmem:[#allocation3 + $0xd80] ss:$36 sps:$4 sm:$0xff]   ;;  %v8141_v25 = vcombine.high %v8128_v19, %v8133_v20 }
 0x122   :  { %4042 = vmatprep.subr.bf16.mxu1 %v6945_v26  ;;  %v7023_v26 = vld [vmem:[#allocation3 + $0xdcc] ss:$36 sps:$4 sm:$0xff]  }
 0x124   :  { %4188 = vmatpush1.bf16.msra.mxu0 %v6940_v27  ;;  %v7018_v27 = vld [vmem:[#allocation3 + $0xb90] ss:$36 sps:$4 sm:$0xff]  }
 0x125   :  { %4189 = vmatprep.subr.bf16.mxu0 %v6948_v28  ;;  %4043 = vmatpush1.bf16.msra.mxu1 %v6943_v30  ;;  %v7026_v28 = vld [vmem:[#allocation3 + $0xbdc] ss:$36 sps:$4 sm:$0xff]   ;;  %v7021_v30 = vld [vmem:[#allocation3 + $0xdc8] ss:$36 sps:$4 sm:$0xff]  }
 0x126   :  { %4044 = vmatprep.subr.bf16.mxu1 %v6951_v31  ;;  %v7032_v31 = vld [vmem:[#allocation3 + $0xc24] ss:$36 sps:$4 sm:$0xff]  }
 0x128   :  { %4190 = vmatpush1.bf16.msra.mxu0 %v6946_v32  ;;  %v7027_v32 = vld [vmem:[#allocation3 + $0xe10] ss:$36 sps:$4 sm:$0xff]  }
 0x129   :  { %4191 = vmatprep.subr.bf16.mxu0 %v6954_v33  ;;  %4045 = vmatpush1.bf16.msra.mxu1 %v6949_v34  ;;  %v7035_v33 = vld [vmem:[#allocation3 + $0xe5c] ss:$36 sps:$4 sm:$0xff]  }
 0x12a   :  { %4046 = vmatprep.subr.bf16.mxu1 %v6957_v35  ;;  %v7030_v34 = vld [vmem:[#allocation3 + $0xc20] ss:$36 sps:$4 sm:$0xff]   ;;  %v7038_v35 = vld [vmem:[#allocation3 + $0xc6c] ss:$36 sps:$4 sm:$0xff]  }
 0x12c   :  { %4192 = vmatpush1.bf16.msra.mxu0 %v6952_v36  ;;  %v7033_v36 = vld [vmem:[#allocation3 + $0xe58] ss:$36 sps:$4 sm:$0xff]  }
 0x12d   :  { %4193 = vmatprep.subr.bf16.mxu0 %v6960_v37  ;;  %4047 = vmatpush1.bf16.msra.mxu1 %v6955_v38  ;;  %v7041_v37 = vld [vmem:[#allocation3 + $0xea4] ss:$36 sps:$4 sm:$0xff]  }
 0x12e   :  { %4048 = vmatprep.subr.bf16.mxu1 %v6963_v39  ;;  %v7036_v38 = vld [vmem:[#allocation3 + $0xc68] ss:$36 sps:$4 sm:$0xff]   ;;  %v7044_v39 = vld [vmem:[#allocation3 + $0xcb4] ss:$36 sps:$4 sm:$0xff]  }
 0x130   :  { %4194 = vmatpush1.bf16.msra.mxu0 %v6958_v40  ;;  %v7039_v40 = vld [vmem:[#allocation3 + $0xea0] ss:$36 sps:$4 sm:$0xff]  }
 0x131   :  { %4206 = vmatprep.subr.bf16.mxu0 %v6966_v41  ;;  %4049 = vmatpush1.bf16.msra.mxu1 %v6961_v42  ;;  %v7047_v41 = vld [vmem:[#allocation3 + $0xeec] ss:$36 sps:$4 sm:$0xff]  }
 0x132   :  { %4050 = vmatprep.subr.bf16.mxu1 %v6969_v43  ;;  %v7042_v42 = vld [vmem:[#allocation3 + $0xcb0] ss:$36 sps:$4 sm:$0xff]   ;;  %v7050_v43 = vld [vmem:[#allocation3 + $0xcfc] ss:$36 sps:$4 sm:$0xff]  }
 0x133   :  { %4196 = vmatmul.mubr.bf16.vlgmr.msra.gmra.mrb[4].mxu0 %v8105_v8 }
 0x134   :  { %4207 = vmatpush1.bf16.msra.mxu0 %v6964_v45  ;;  %4238 = vmatprep.mubr.bf16.mxu0 %v8119_v15  ;;  %v7045_v45 = vld [vmem:[#allocation3 + $0xee8] ss:$36 sps:$4 sm:$0xff]  }
 0x135   :  { %4208 = vmatprep.subr.bf16.mxu0 %v6972_v46  ;;  %4051 = vmatpush1.bf16.msra.mxu1 %v6967_v47  ;;  %v7053_v46 = vld [vmem:[#allocation3 + $0xf34] ss:$36 sps:$4 sm:$0xff]  }
 0x136   :  { %4052 = vmatprep.subr.bf16.mxu1 %v6975_v48  ;;  %v7048_v47 = vld [vmem:[#allocation3 + $0xcf8] ss:$36 sps:$4 sm:$0xff]   ;;  %v7056_v48 = vld [vmem:[#allocation3 + $0xd44] ss:$36 sps:$4 sm:$0xff]  }
 0x138   :  { %4209 = vmatpush1.bf16.msra.mxu0 %v6970_v49  ;;  %v7051_v49 = vld [vmem:[#allocation3 + $0xf30] ss:$36 sps:$4 sm:$0xff]  }
 0x139   :  { %4210 = vmatprep.subr.bf16.mxu0 %v6978_v50  ;;  %4053 = vmatpush1.bf16.msra.mxu1 %v6973_v51  ;;  %v7059_v50 = vld [vmem:[#allocation3 + $0xf7c] ss:$36 sps:$4 sm:$0xff]  }
 0x13a   :  { %4054 = vmatprep.subr.bf16.mxu1 %v6981_v52  ;;  %v7054_v51 = vld [vmem:[#allocation3 + $0xd40] ss:$36 sps:$4 sm:$0xff]   ;;  %v7062_v52 = vld [vmem:[#allocation3 + $0xd8c] ss:$36 sps:$4 sm:$0xff]  }
 0x13c   :  { %4211 = vmatpush1.bf16.msra.mxu0 %v6976_v53  ;;  %v7057_v53 = vld [vmem:[#allocation3 + $0xf78] ss:$36 sps:$4 sm:$0xff]  }
 0x13d   :  { %4212 = vmatprep.subr.bf16.mxu0 %v6984_v54  ;;  %4055 = vmatpush1.bf16.msra.mxu1 %v6979_v55  ;;  %v7065_v54 = vld [vmem:[#allocation3 + $0xfc4] ss:$36 sps:$4 sm:$0xff]  }
 0x13e   :  { %4056 = vmatprep.subr.bf16.mxu1 %v6987_v56  ;;  %v7060_v55 = vld [vmem:[#allocation3 + $0xd88] ss:$36 sps:$4 sm:$0xff]   ;;  %v7068_v56 = vld [vmem:[#allocation3 + $0xdd4] ss:$36 sps:$4 sm:$0xff]  }
 0x140   :  { %4213 = vmatpush1.bf16.msra.mxu0 %v6982_v57  ;;  %v7063_v57 = vld [vmem:[#allocation3 + $0xfc0] ss:$36 sps:$4 sm:$0xff]  }
 0x141   :  { %4214 = vmatprep.subr.bf16.mxu0 %v6990_v58  ;;  %4057 = vmatpush1.bf16.msra.mxu1 %v6985_v59  ;;  %v7071_v58 = vld [vmem:[#allocation3 + $0x100c] ss:$36 sps:$4 sm:$0xff]  }
 0x142   :  { %4058 = vmatprep.subr.bf16.mxu1 %v6993_v60  ;;  %v7066_v59 = vld [vmem:[#allocation3 + $0xdd0] ss:$36 sps:$4 sm:$0xff]   ;;  %v7074_v60 = vld [vmem:[#allocation3 + $0xe1c] ss:$36 sps:$4 sm:$0xff]  }
 0x144   :  { %4215 = vmatpush1.bf16.msra.mxu0 %v6988_v61  ;;  %v7069_v61 = vld [vmem:[#allocation3 + $0x1008] ss:$36 sps:$4 sm:$0xff]  }
 0x145   :  { %4216 = vmatprep.subr.bf16.mxu0 %v6996_v62  ;;  %4059 = vmatpush1.bf16.msra.mxu1 %v6991_v63  ;;  %v7077_v62 = vld [vmem:[#allocation3 + $0x1054] ss:$36 sps:$4 sm:$0xff]  }
 0x146   :  { %4060 = vmatprep.subr.bf16.mxu1 %v6999_v2  ;;  %v7072_v63 = vld [vmem:[#allocation3 + $0xe18] ss:$36 sps:$4 sm:$0xff]   ;;  %v7080_v2 = vld [vmem:[#allocation3 + $0xe64] ss:$36 sps:$4 sm:$0xff]  }
 0x148   :  { %4217 = vmatpush1.bf16.msra.mxu0 %v6994_v3  ;;  %v7075_v3 = vld [vmem:[#allocation3 + $0x1050] ss:$36 sps:$4 sm:$0xff]  }
 0x149   :  { %4218 = vmatprep.subr.bf16.mxu0 %v7002_v4  ;;  %4061 = vmatpush1.bf16.msra.mxu1 %v6997_v5  ;;  %v7083_v4 = vld [vmem:[#allocation3 + $0x109c] ss:$36 sps:$4 sm:$0xff]  }
 0x14a   :  { %4062 = vmatprep.subr.bf16.mxu1 %v7005_v6  ;;  %v7078_v5 = vld [vmem:[#allocation3 + $0xe60] ss:$36 sps:$4 sm:$0xff]   ;;  %v7086_v6 = vld [vmem:[#allocation3 + $0xeac] ss:$36 sps:$4 sm:$0xff]  }
 0x14c   :  { %4219 = vmatpush1.bf16.msra.mxu0 %v7000_v7  ;;  %v7081_v7 = vld [vmem:[#allocation3 + $0x1098] ss:$36 sps:$4 sm:$0xff]  }
 0x14d   :  { %4220 = vmatprep.subr.bf16.mxu0 %v7008_v9  ;;  %4063 = vmatpush1.bf16.msra.mxu1 %v7003_v10  ;;  %v7089_v9 = vld [vmem:[#allocation3 + $0x10e4] ss:$36 sps:$4 sm:$0xff]  }
 0x14e   :  { %4064 = vmatprep.subr.bf16.mxu1 %v7011_v11  ;;  %v7084_v10 = vld [vmem:[#allocation3 + $0xea8] ss:$36 sps:$4 sm:$0xff]   ;;  %v7092_v11 = vld [vmem:[#allocation3 + $0xef4] ss:$36 sps:$4 sm:$0xff]  }
 0x150   :  { %4221 = vmatpush1.bf16.msra.mxu0 %v7006_v14  ;;  %v7087_v14 = vld [vmem:[#allocation3 + $0x10e0] ss:$36 sps:$4 sm:$0xff]  }
 0x151   :  { %4222 = vmatprep.subr.bf16.mxu0 %v7014_v17  ;;  %4065 = vmatpush1.bf16.msra.mxu1 %v7009_v16  ;;  %v7095_v16 = vld [vmem:[#allocation3 + $0x112c] ss:$36 sps:$4 sm:$0xff]  }
 0x152   :  { %4077 = vmatprep.subr.bf16.mxu1 %v7017_v18  ;;  %v5770_v17 = vld [vmem:[#allocation14] ss:$0 sm:$0xff]  ;;  %v7090_v18 = vld [vmem:[#allocation3 + $0xef0] ss:$36 sps:$4 sm:$0xff]  }
 0x154   :  { %4223 = vmatpush1.bf16.msra.mxu0 %v7012_v21  ;;  %4067 = vmatmul.mubr.bf16.vlgmr.msra.gmra.mrb[0].mxu1 %v8137_v22  ;;  %v7098_v21 = vld [vmem:[#allocation3 + $0xf3c] ss:$36 sps:$4 sm:$0xff]  }
 0x155   :  { %4224 = vmatprep.subr.bf16.mxu0 %v7020_v23  ;;  %4078 = vmatpush1.bf16.msra.mxu1 %v7015_v24  ;;  %v7093_v24 = vld [vmem:[#allocation3 + $0x1128] ss:$36 sps:$4 sm:$0xff]  }
 0x156   :  { %4109 = vmatprep.mubr.bf16.mxu1 %v8141_v25  ;;  %4079 = vmatprep.subr.bf16.mxu1 %v7023_v26 }
 0x158   :  { %4225 = vmatpush1.bf16.msra.mxu0 %v7018_v27 }
 0x159   :  { %4226 = vmatprep.subr.bf16.mxu0 %v7026_v28  ;;  %4080 = vmatpush1.bf16.msra.mxu1 %v7021_v30  ;;  %v7101_v28 = vld [vmem:[#allocation3 + $0x1174] ss:$36 sps:$4 sm:$0xff]  }
 0x15a   :  { %4081 = vmatprep.subr.bf16.mxu1 %v7029_v12  ;;  %v7096_v12 = vld [vmem:[#allocation3 + $0xf38] ss:$36 sps:$4 sm:$0xff]  }
 0x15c   :  { %4227 = vmatpush1.bf16.msra.mxu0 %v7024_v13 }
 0x15d   :  { %4228 = vmatprep.subr.bf16.mxu0 %v7032_v31  ;;  %4082 = vmatpush1.bf16.msra.mxu1 %v7027_v32  ;;  %v7104_v32 = vld [vmem:[#allocation3 + $0xf84] ss:$36 sps:$4 sm:$0xff]  }
 0x15e   :  { %4083 = vmatprep.subr.bf16.mxu1 %v7035_v33  ;;  %v7099_v33 = vld [vmem:[#allocation3 + $0x1170] ss:$36 sps:$4 sm:$0xff]  }
 0x160   :  { %4229 = vmatpush1.bf16.msra.mxu0 %v7030_v34  ;;  %v7107_v34 = vld [vmem:[#allocation3 + $0x11bc] ss:$36 sps:$4 sm:$0xff]  }
 0x161   :  { %4230 = vmatprep.subr.bf16.mxu0 %v7038_v35  ;;  %4084 = vmatpush1.bf16.msra.mxu1 %v7033_v36  ;;  %v7102_v35 = vld [vmem:[#allocation3 + $0xf80] ss:$36 sps:$4 sm:$0xff]   ;;  %v7110_v36 = vld [vmem:[#allocation3 + $0xfcc] ss:$36 sps:$4 sm:$0xff]  }
 0x162   :  { %4085 = vmatprep.subr.bf16.mxu1 %v7041_v37  ;;  %v7105_v37 = vld [vmem:[#allocation3 + $0x11b8] ss:$36 sps:$4 sm:$0xff]  }
 0x164   :  { %4231 = vmatpush1.bf16.msra.mxu0 %v7036_v38  ;;  %v7113_v38 = vld [vmem:[#allocation3 + $0x14] ss:$36 sps:$4 sm:$0xff]  }
 0x165   :  { %4232 = vmatprep.subr.bf16.mxu0 %v7044_v39  ;;  %4086 = vmatpush1.bf16.msra.mxu1 %v7039_v40  ;;  %v7108_v39 = vld [vmem:[#allocation3 + $0xfc8] ss:$36 sps:$4 sm:$0xff]   ;;  %v8149_v40 = vcombine.low %v8128_v19, %v8133_v20  ;;  %v7117_v19 = vld [vmem:[#allocation3 + $0x58] ss:$36 sps:$4 sm:$0xff]  }
 0x166   :  { %4087 = vmatprep.subr.bf16.mxu1 %v7047_v41  ;;  %v7116_v41 = vld [vmem:[#allocation3 + $0x1014] ss:$36 sps:$4 sm:$0xff]   ;;  %v7125_v20 = vld [vmem:[#allocation3 + $0xa4] ss:$36 sps:$4 sm:$0xff]  }
 0x168   :  { %4233 = vmatpush1.bf16.msra.mxu0 %v7042_v42  ;;  %v7111_v42 = vld [vmem:[#allocation3 + $0x10] ss:$36 sps:$4 sm:$0xff]  }
 0x169   :  { %4234 = vmatprep.subr.bf16.mxu0 %v7050_v43  ;;  %4088 = vmatpush1.bf16.msra.mxu1 %v7045_v45  ;;  %v7119_v45 = vld [vmem:[#allocation3 + $0x5c] ss:$36 sps:$4 sm:$0xff]  }
 0x16a   :  { %4089 = vmatprep.subr.bf16.mxu1 %v7053_v46 }
 0x16c   :  { %4235 = vmatpush1.bf16.msra.mxu0 %v7048_v47  ;;  %v7114_v47 = vld [vmem:[#allocation3 + $0x1010] ss:$36 sps:$4 sm:$0xff]  }
 0x16d   :  { %4236 = vmatprep.subr.bf16.mxu0 %v7056_v48  ;;  %4090 = vmatpush1.bf16.msra.mxu1 %v7051_v49  ;;  %v7122_v49 = vld [vmem:[#allocation3 + $0x105c] ss:$36 sps:$4 sm:$0xff]  }
 0x16e   :  { %4091 = vmatprep.subr.bf16.mxu1 %v7059_v50 }
 0x170   :  { %4237 = vmatpush1.bf16.msra.mxu0 %v7054_v51  ;;  %v7120_v51 = vld [vmem:[#allocation3 + $0x1058] ss:$36 sps:$4 sm:$0xff]  }
 0x171   :  { %4249 = vmatprep.subr.bf16.mxu0 %v7062_v52  ;;  %4092 = vmatpush1.bf16.msra.mxu1 %v7057_v53  ;;  %v7128_v52 = vld [vmem:[#allocation3 + $0x10a4] ss:$36 sps:$4 sm:$0xff]  }
 0x172   :  { %4093 = vmatprep.subr.bf16.mxu1 %v7065_v54  ;;  %v7123_v53 = vld [vmem:[#allocation3 + $0xa0] ss:$36 sps:$4 sm:$0xff]  }
 0x173   :  { %4239 = vmatmul.mubr.bf16.vlgmr.msra.gmra.mrb[4].mxu0 %v8137_v22  ;;  %v7126_v54 = vld [vmem:[#allocation3 + $0x10a0] ss:$36 sps:$4 sm:$0xff]  }
 0x174   :  { %4250 = vmatpush1.bf16.msra.mxu0 %v7060_v55  ;;  %4281 = vmatprep.mubr.bf16.mxu0 %v8141_v25  ;;  %v7131_v55 = vld [vmem:[#allocation3 + $0xec] ss:$36 sps:$4 sm:$0xff]  }
 0x175   :  { %4251 = vmatprep.subr.bf16.mxu0 %v7068_v56  ;;  %4094 = vmatpush1.bf16.msra.mxu1 %v7063_v57  ;;  %v7134_v56 = vld [vmem:[#allocation3 + $0x10ec] ss:$36 sps:$4 sm:$0xff]  }
 0x176   :  { %4095 = vmatprep.subr.bf16.mxu1 %v7071_v58  ;;  %v7129_v57 = vld [vmem:[#allocation3 + $0xe8] ss:$36 sps:$4 sm:$0xff]  }
 0x177   :  { %v7132_v58 = vld [vmem:[#allocation3 + $0x10e8] ss:$36 sps:$4 sm:$0xff]  }
 0x178   :  { %4252 = vmatpush1.bf16.msra.mxu0 %v7066_v59  ;;  %v7137_v59 = vld [vmem:[#allocation3 + $0x134] ss:$36 sps:$4 sm:$0xff]  }
 0x179   :  { %4253 = vmatprep.subr.bf16.mxu0 %v7074_v60  ;;  %4096 = vmatpush1.bf16.msra.mxu1 %v7069_v61  ;;  %v7140_v60 = vld [vmem:[#allocation3 + $0x1134] ss:$36 sps:$4 sm:$0xff]  }
 0x17a   :  { %4097 = vmatprep.subr.bf16.mxu1 %v7077_v62  ;;  %v7135_v61 = vld [vmem:[#allocation3 + $0x130] ss:$36 sps:$4 sm:$0xff]  }
 0x17b   :  { %v7138_v62 = vld [vmem:[#allocation3 + $0x1130] ss:$36 sps:$4 sm:$0xff]  }
 0x17c   :  { %4254 = vmatpush1.bf16.msra.mxu0 %v7072_v63  ;;  %v7143_v63 = vld [vmem:[#allocation3 + $0x17c] ss:$36 sps:$4 sm:$0xff]  }
 0x17d   :  { %4255 = vmatprep.subr.bf16.mxu0 %v7080_v2  ;;  %4098 = vmatpush1.bf16.msra.mxu1 %v7075_v3  ;;  %v7146_v2 = vld [vmem:[#allocation3 + $0x117c] ss:$36 sps:$4 sm:$0xff]  }
 0x17e   :  { %4099 = vmatprep.subr.bf16.mxu1 %v7083_v4  ;;  %v7141_v3 = vld [vmem:[#allocation3 + $0x178] ss:$36 sps:$4 sm:$0xff]  }
 0x17f   :  { %v7144_v4 = vld [vmem:[#allocation3 + $0x1178] ss:$36 sps:$4 sm:$0xff]  }
 0x180   :  { %4256 = vmatpush1.bf16.msra.mxu0 %v7078_v5  ;;  %v7149_v5 = vld [vmem:[#allocation3 + $0x1c4] ss:$36 sps:$4 sm:$0xff]  }
 0x181   :  { %4257 = vmatprep.subr.bf16.mxu0 %v7086_v6  ;;  %4100 = vmatpush1.bf16.msra.mxu1 %v7081_v7  ;;  %v7152_v6 = vld [vmem:[#allocation3 + $0x11c4] ss:$36 sps:$4 sm:$0xff]  }
 0x182   :  { %4101 = vmatprep.subr.bf16.mxu1 %v7089_v9  ;;  %v7147_v7 = vld [vmem:[#allocation3 + $0x1c0] ss:$36 sps:$4 sm:$0xff]  }
 0x183   :  { %v7150_v9 = vld [vmem:[#allocation3 + $0x11c0] ss:$36 sps:$4 sm:$0xff]  }
 0x184   :  { %4258 = vmatpush1.bf16.msra.mxu0 %v7084_v10  ;;  %v7155_v10 = vld [vmem:[#allocation3 + $0x20c] ss:$36 sps:$4 sm:$0xff]  }
 0x185   :  { %4259 = vmatprep.subr.bf16.mxu0 %v7092_v11  ;;  %4102 = vmatpush1.bf16.msra.mxu1 %v7087_v14  ;;  %v7158_v11 = vld [vmem:[#allocation3 + $0x1c] ss:$36 sps:$4 sm:$0xff]   ;;  %v7153_v14 = vld [vmem:[#allocation3 + $0x208] ss:$36 sps:$4 sm:$0xff]  }
 0x186   :  { %v275_v23 = vpop.f32.mrb[0].mxu0  ;;  %4103 = vmatprep.subr.bf16.mxu1 %v7095_v16  ;;  %v7156_v16 = vld [vmem:[#allocation3 + $0x18] ss:$36 sps:$4 sm:$0xff]  }
 0x187   :  { %v276_v26 = vadd.f32 %v5770_v17, %v275_v23  ;;  %v6654_v27 = vpop.f32.mrb[1].mxu0  ;;  %v7162_v23 = vld [vmem:[#allocation3 + $0x60] ss:$36 sps:$4 sm:$0xff]  }
 0x188   :  { %v278_v30 = vpop.f32.mrb[2].mxu0  ;;  %4260 = vmatpush1.bf16.msra.mxu0 %v7090_v18  ;;  %v7164_v18 = vld [vmem:[#allocation3 + $0x64] ss:$36 sps:$4 sm:$0xff]   ;;  %v7165_v27 = vld [vmem:[#allocation3 + $0x298] ss:$36 sps:$4 sm:$0xff]  }
 0x189   :  { %7652 = vtanh.f32 %v276_v26  ;;  %v279_v13 = vadd.f32 %v5770_v17, %v278_v30  ;;  %v6655_v31 = vpop.f32.mrb[3].mxu0  ;;  %4261 = vmatprep.subr.bf16.mxu0 %v7098_v21  ;;  %4104 = vmatpush1.bf16.msra.mxu1 %v7093_v24  ;;  %v7161_v17 = vld [vmem:[#allocation3 + $0x254] ss:$36 sps:$4 sm:$0xff]   ;;  %v7167_v24 = vld [vmem:[#allocation3 + $0x29c] ss:$36 sps:$4 sm:$0xff]  }
 0x18a   :  { %4105 = vmatprep.subr.bf16.mxu1 %v7101_v28  ;;  %v7159_v21 = vld [vmem:[#allocation3 + $0x250] ss:$36 sps:$4 sm:$0xff]   ;;  %v7168_v28 = vld [vmem:[#allocation3 + $0xa8] ss:$36 sps:$4 sm:$0xff]  }
 0x18b   :  { %7654 = vtanh.f32 %v279_v13  ;;  %v7170_v26 = vld [vmem:[#allocation3 + $0xac] ss:$36 sps:$4 sm:$0xff]   ;;  %v7173_v30 = vld [vmem:[#allocation3 + $0x2e4] ss:$36 sps:$4 sm:$0xff]  }
 0x18c   :  { %4262 = vmatpush1.bf16.msra.mxu0 %v7096_v12  ;;  %v7176_v12 = vld [vmem:[#allocation3 + $0xf4] ss:$36 sps:$4 sm:$0xff]   ;;  %v7171_v13 = vld [vmem:[#allocation3 + $0x2e0] ss:$36 sps:$4 sm:$0xff]  }
 0x18d   :  { %4263 = vmatprep.subr.bf16.mxu0 %v7104_v32  ;;  %4106 = vmatpush1.bf16.msra.mxu1 %v7099_v33  ;;  %v7174_v31 = vld [vmem:[#allocation3 + $0xf0] ss:$36 sps:$4 sm:$0xff]   ;;  %v7182_v33 = vld [vmem:[#allocation3 + $0x13c] ss:$36 sps:$4 sm:$0xff]  }
 0x18e   :  { %4107 = vmatprep.subr.bf16.mxu1 %v7107_v34  ;;  %v7179_v32 = vld [vmem:[#allocation3 + $0x32c] ss:$36 sps:$4 sm:$0xff]  }
 0x18f   :  { %v7177_v34 = vld [vmem:[#allocation3 + $0x328] ss:$36 sps:$4 sm:$0xff]  }
 0x190   :  { %4264 = vmatpush1.bf16.msra.mxu0 %v7102_v35  ;;  %v7180_v35 = vld [vmem:[#allocation3 + $0x138] ss:$36 sps:$4 sm:$0xff]  }
 0x191   :  { %4265 = vmatprep.subr.bf16.mxu0 %v7110_v36  ;;  %4108 = vmatpush1.bf16.msra.mxu1 %v7105_v37  ;;  %v7185_v36 = vld [vmem:[#allocation3 + $0x374] ss:$36 sps:$4 sm:$0xff]   ;;  %v7188_v37 = vld [vmem:[#allocation3 + $0x184] ss:$36 sps:$4 sm:$0xff]  }
 0x192   :  { %4292 = vmatprep.subr.bf16.mxu1 %v7113_v38  ;;  %v7183_v38 = vld [vmem:[#allocation3 + $0x370] ss:$36 sps:$4 sm:$0xff]  }
 0x193   :  { %v8151_v43 = vpop.eup %7652 }
 0x194   :  { %4266 = vmatpush1.bf16.msra.mxu0 %v7108_v39  ;;  %v284_v46 = vmul.f32 %v8151_v43, %v8151_v43  ;;  %4110 = vmatmul.mubr.bf16.vlgmr.msra.gmra.mrb[0].mxu1 %v8149_v40  ;;  %v7186_v39 = vld [vmem:[#allocation3 + $0x180] ss:$36 sps:$4 sm:$0xff]  }
 0x195   :  { %v8155_v48 = vpop.eup %7654  ;;  %4267 = vmatprep.subr.bf16.mxu0 %v7116_v41  ;;  %4293 = vmatpush1.bf16.msra.mxu1 %v7111_v42  ;;  %v7191_v41 = vld [vmem:[#allocation3 + $0x3bc] ss:$36 sps:$4 sm:$0xff]   ;;  %v7194_v42 = vld [vmem:[#allocation3 + $0x1cc] ss:$36 sps:$4 sm:$0xff]  }
 0x196   :  { %286 = vadd.xlane.f32.xlu1 %v284_v46  ;;  %4294 = vmatprep.subr.bf16.mxu1 %v7119_v45  ;;  %v285_v50 = vmul.f32 %v8155_v48, %v8155_v48  ;;  %v7189_v45 = vld [vmem:[#allocation3 + $0x3b8] ss:$36 sps:$4 sm:$0xff]   ;;  %v7192_v46 = vld [vmem:[#allocation3 + $0x1c8] ss:$36 sps:$4 sm:$0xff]  }
 0x197   :  { %4324 = vmatprep.mubr.bf16.mxu1 %v8079_v44 }
 0x198   :  { %4268 = vmatpush1.bf16.msra.mxu0 %v7114_v47  ;;  %v7197_v47 = vld [vmem:[#allocation3 + $0x404] ss:$36 sps:$4 sm:$0xff]  }
 0x199   :  { %4269 = vmatprep.subr.bf16.mxu0 %v7122_v49  ;;  %4295 = vmatpush1.bf16.msra.mxu1 %v7117_v19  ;;  %v7200_v49 = vld [vmem:[#allocation3 + $0x214] ss:$36 sps:$4 sm:$0xff]   ;;  %v7195_v19 = vld [vmem:[#allocation3 + $0x400] ss:$36 sps:$4 sm:$0xff]  }
 0x19a   :  { %288 = vadd.xlane.f32.xlu1 %v285_v50  ;;  %4296 = vmatprep.subr.bf16.mxu1 %v7125_v20  ;;  %v7198_v20 = vld [vmem:[#allocation3 + $0x210] ss:$36 sps:$4 sm:$0xff]  }
 0x19b   :  { %v7203_v50 = vld [vmem:[#allocation3 + $0x44c] ss:$36 sps:$4 sm:$0xff]  }
 0x19c   :  { %4270 = vmatpush1.bf16.msra.mxu0 %v7120_v51  ;;  %v7206_v51 = vld [vmem:[#allocation3 + $0x25c] ss:$36 sps:$4 sm:$0xff]  }
 0x19d   :  { %4271 = vmatprep.subr.bf16.mxu0 %v7128_v52  ;;  %4297 = vmatpush1.bf16.msra.mxu1 %v7123_v53  ;;  %v7201_v52 = vld [vmem:[#allocation3 + $0x448] ss:$36 sps:$4 sm:$0xff]   ;;  %v7204_v53 = vld [vmem:[#allocation3 + $0x258] ss:$36 sps:$4 sm:$0xff]  }
 0x19e   :  { %4298 = vmatprep.subr.bf16.mxu1 %v7131_v55  ;;  %v7212_v55 = vld [vmem:[#allocation3 + $0x2a4] ss:$36 sps:$4 sm:$0xff]  }
 0x1a0   :  { %4272 = vmatpush1.bf16.msra.mxu0 %v7126_v54  ;;  %v7209_v54 = vld [vmem:[#allocation3 + $0x494] ss:$36 sps:$4 sm:$0xff]  }
 0x1a1   :  { %4273 = vmatprep.subr.bf16.mxu0 %v7134_v56  ;;  %4299 = vmatpush1.bf16.msra.mxu1 %v7129_v57  ;;  %v7207_v56 = vld [vmem:[#allocation3 + $0x490] ss:$36 sps:$4 sm:$0xff]   ;;  %v7210_v57 = vld [vmem:[#allocation3 + $0x2a0] ss:$36 sps:$4 sm:$0xff]  }
 0x1a2   :  { %4300 = vmatprep.subr.bf16.mxu1 %v7137_v59  ;;  %v7218_v59 = vld [vmem:[#allocation3 + $0x2ec] ss:$36 sps:$4 sm:$0xff]  }
 0x1a4   :  { %4274 = vmatpush1.bf16.msra.mxu0 %v7132_v58  ;;  %v7215_v58 = vld [vmem:[#allocation3 + $0x4dc] ss:$36 sps:$4 sm:$0xff]  }
 0x1a5   :  { %4275 = vmatprep.subr.bf16.mxu0 %v7140_v60  ;;  %4301 = vmatpush1.bf16.msra.mxu1 %v7135_v61  ;;  %v7213_v60 = vld [vmem:[#allocation3 + $0x4d8] ss:$36 sps:$4 sm:$0xff]   ;;  %v7216_v61 = vld [vmem:[#allocation3 + $0x2e8] ss:$36 sps:$4 sm:$0xff]  }
 0x1a6   :  { %4302 = vmatprep.subr.bf16.mxu1 %v7143_v63  ;;  %v7224_v63 = vld [vmem:[#allocation3 + $0x334] ss:$36 sps:$4 sm:$0xff]  }
 0x1a8   :  { %4276 = vmatpush1.bf16.msra.mxu0 %v7138_v62  ;;  %v7221_v62 = vld [vmem:[#allocation3 + $0x524] ss:$36 sps:$4 sm:$0xff]  }
 0x1a9   :  { %4277 = vmatprep.subr.bf16.mxu0 %v7146_v2  ;;  %4303 = vmatpush1.bf16.msra.mxu1 %v7141_v3  ;;  %v7219_v2 = vld [vmem:[#allocation3 + $0x520] ss:$36 sps:$4 sm:$0xff]   ;;  %v7222_v3 = vld [vmem:[#allocation3 + $0x330] ss:$36 sps:$4 sm:$0xff]  }
 0x1aa   :  { %4304 = vmatprep.subr.bf16.mxu1 %v7149_v5  ;;  %v7230_v5 = vld [vmem:[#allocation3 + $0x37c] ss:$36 sps:$4 sm:$0xff]  }
 0x1ac   :  { %4278 = vmatpush1.bf16.msra.mxu0 %v7144_v4  ;;  %v7227_v4 = vld [vmem:[#allocation3 + $0x56c] ss:$36 sps:$4 sm:$0xff]  }
 0x1ad   :  { %4279 = vmatprep.subr.bf16.mxu0 %v7152_v6  ;;  %4305 = vmatpush1.bf16.msra.mxu1 %v7147_v7  ;;  %v7225_v6 = vld [vmem:[#allocation3 + $0x568] ss:$36 sps:$4 sm:$0xff]   ;;  %v7228_v7 = vld [vmem:[#allocation3 + $0x378] ss:$36 sps:$4 sm:$0xff]  }
 0x1ae   :  { %4306 = vmatprep.subr.bf16.mxu1 %v7155_v10  ;;  %v7236_v10 = vld [vmem:[#allocation3 + $0x3c4] ss:$36 sps:$4 sm:$0xff]  }
 0x1b0   :  { %4280 = vmatpush1.bf16.msra.mxu0 %v7150_v9  ;;  %v7233_v9 = vld [vmem:[#allocation3 + $0x5b4] ss:$36 sps:$4 sm:$0xff]  }
 0x1b1   :  { %4464 = vmatprep.subr.bf16.mxu0 %v7158_v11  ;;  %4307 = vmatpush1.bf16.msra.mxu1 %v7153_v14  ;;  %v7231_v11 = vld [vmem:[#allocation3 + $0x5b0] ss:$36 sps:$4 sm:$0xff]   ;;  %v7234_v14 = vld [vmem:[#allocation3 + $0x3c0] ss:$36 sps:$4 sm:$0xff]  }
 0x1b2   :  { %4308 = vmatprep.subr.bf16.mxu1 %v7161_v17  ;;  %v7242_v17 = vld [vmem:[#allocation3 + $0x40c] ss:$36 sps:$4 sm:$0xff]  }
 0x1b3   :  { %4282 = vmatmul.mubr.bf16.vlgmr.msra.gmra.mrb[4].mxu0 %v8149_v40 }
 0x1b4   :  { %4465 = vmatpush1.bf16.msra.mxu0 %v7156_v16  ;;  %4496 = vmatprep.mubr.bf16.mxu0 %v8079_v44  ;;  %v7239_v16 = vld [vmem:[#allocation3 + $0x5fc] ss:$36 sps:$4 sm:$0xff]  }
 0x1b5   :  { %4466 = vmatprep.subr.bf16.mxu0 %v7164_v18  ;;  %4309 = vmatpush1.bf16.msra.mxu1 %v7159_v21  ;;  %v7237_v18 = vld [vmem:[#allocation3 + $0x5f8] ss:$36 sps:$4 sm:$0xff]   ;;  %v7245_v21 = vld [vmem:[#allocation3 + $0x644] ss:$36 sps:$4 sm:$0xff]  }
 0x1b6   :  { %4310 = vmatprep.subr.bf16.mxu1 %v7167_v24  ;;  %v7248_v24 = vld [vmem:[#allocation3 + $0x454] ss:$36 sps:$4 sm:$0xff]  }
 0x1b8   :  { %4467 = vmatpush1.bf16.msra.mxu0 %v7162_v23  ;;  %v7240_v23 = vld [vmem:[#allocation3 + $0x408] ss:$36 sps:$4 sm:$0xff]  }
 0x1b9   :  { %4468 = vmatprep.subr.bf16.mxu0 %v7170_v26  ;;  %4311 = vmatpush1.bf16.msra.mxu1 %v7165_v27  ;;  %v7243_v26 = vld [vmem:[#allocation3 + $0x640] ss:$36 sps:$4 sm:$0xff]   ;;  %v7246_v27 = vld [vmem:[#allocation3 + $0x450] ss:$36 sps:$4 sm:$0xff]  }
 0x1ba   :  { %4312 = vmatprep.subr.bf16.mxu1 %v7173_v30  ;;  %v7254_v30 = vld [vmem:[#allocation3 + $0x49c] ss:$36 sps:$4 sm:$0xff]  }
 0x1bc   :  { %4469 = vmatpush1.bf16.msra.mxu0 %v7168_v28  ;;  %v7251_v28 = vld [vmem:[#allocation3 + $0x68c] ss:$36 sps:$4 sm:$0xff]  }
 0x1bd   :  { %4470 = vmatprep.subr.bf16.mxu0 %v7176_v12  ;;  %4313 = vmatpush1.bf16.msra.mxu1 %v7171_v13  ;;  %v7249_v12 = vld [vmem:[#allocation3 + $0x688] ss:$36 sps:$4 sm:$0xff]   ;;  %v7252_v13 = vld [vmem:[#allocation3 + $0x498] ss:$36 sps:$4 sm:$0xff]  }
 0x1be   :  { %4314 = vmatprep.subr.bf16.mxu1 %v7179_v32  ;;  %v7260_v32 = vld [vmem:[#allocation3 + $0x4e4] ss:$36 sps:$4 sm:$0xff]  }
 0x1c0   :  { %4471 = vmatpush1.bf16.msra.mxu0 %v7174_v31  ;;  %v7257_v31 = vld [vmem:[#allocation3 + $0x6d4] ss:$36 sps:$4 sm:$0xff]  }
 0x1c1   :  { %4472 = vmatprep.subr.bf16.mxu0 %v7182_v33  ;;  %4315 = vmatpush1.bf16.msra.mxu1 %v7177_v34  ;;  %v7255_v33 = vld [vmem:[#allocation3 + $0x6d0] ss:$36 sps:$4 sm:$0xff]   ;;  %v7258_v34 = vld [vmem:[#allocation3 + $0x4e0] ss:$36 sps:$4 sm:$0xff]  }
 0x1c2   :  { %4316 = vmatprep.subr.bf16.mxu1 %v7185_v36  ;;  %v7266_v36 = vld [vmem:[#allocation3 + $0x52c] ss:$36 sps:$4 sm:$0xff]  }
 0x1c4   :  { %4473 = vmatpush1.bf16.msra.mxu0 %v7180_v35  ;;  %v7263_v35 = vld [vmem:[#allocation3 + $0x71c] ss:$36 sps:$4 sm:$0xff]  }
 0x1c5   :  { %4474 = vmatprep.subr.bf16.mxu0 %v7188_v37  ;;  %4317 = vmatpush1.bf16.msra.mxu1 %v7183_v38  ;;  %v7261_v37 = vld [vmem:[#allocation3 + $0x718] ss:$36 sps:$4 sm:$0xff]   ;;  %v7264_v38 = vld [vmem:[#allocation3 + $0x528] ss:$36 sps:$4 sm:$0xff]  }
 0x1c6   :  { %4318 = vmatprep.subr.bf16.mxu1 %v7191_v41  ;;  %v7272_v41 = vld [vmem:[#allocation3 + $0x574] ss:$36 sps:$4 sm:$0xff]  }
 0x1c8   :  { %4475 = vmatpush1.bf16.msra.mxu0 %v7186_v39  ;;  %v7269_v39 = vld [vmem:[#allocation3 + $0x764] ss:$36 sps:$4 sm:$0xff]  }
 0x1c9   :  { %4476 = vmatprep.subr.bf16.mxu0 %v7194_v42  ;;  %4319 = vmatpush1.bf16.msra.mxu1 %v7189_v45  ;;  %v7267_v42 = vld [vmem:[#allocation3 + $0x760] ss:$36 sps:$4 sm:$0xff]   ;;  %v7270_v45 = vld [vmem:[#allocation3 + $0x570] ss:$36 sps:$4 sm:$0xff]  }
 0x1ca   :  { %4320 = vmatprep.subr.bf16.mxu1 %v7197_v47  ;;  %v7278_v47 = vld [vmem:[#allocation3 + $0x5bc] ss:$36 sps:$4 sm:$0xff]  }
 0x1cc   :  { %4477 = vmatpush1.bf16.msra.mxu0 %v7192_v46  ;;  %v7275_v46 = vld [vmem:[#allocation3 + $0x7ac] ss:$36 sps:$4 sm:$0xff]  }
 0x1cd   :  { %4478 = vmatprep.subr.bf16.mxu0 %v7200_v49  ;;  %4321 = vmatpush1.bf16.msra.mxu1 %v7195_v19  ;;  %v7273_v49 = vld [vmem:[#allocation3 + $0x7a8] ss:$36 sps:$4 sm:$0xff]   ;;  %v7276_v19 = vld [vmem:[#allocation3 + $0x5b8] ss:$36 sps:$4 sm:$0xff]  }
 0x1ce   :  { %4322 = vmatprep.subr.bf16.mxu1 %v7203_v50  ;;  %v7284_v50 = vld [vmem:[#allocation3 + $0x604] ss:$36 sps:$4 sm:$0xff]  }
 0x1d0   :  { %4479 = vmatpush1.bf16.msra.mxu0 %v7198_v20  ;;  %v7281_v20 = vld [vmem:[#allocation3 + $0x7f4] ss:$36 sps:$4 sm:$0xff]  }
 0x1d1   :  { %4480 = vmatprep.subr.bf16.mxu0 %v7206_v51  ;;  %4323 = vmatpush1.bf16.msra.mxu1 %v7201_v52  ;;  %v7279_v51 = vld [vmem:[#allocation3 + $0x7f0] ss:$36 sps:$4 sm:$0xff]   ;;  %v7287_v52 = vld [vmem:[#allocation3 + $0x83c] ss:$36 sps:$4 sm:$0xff]  }
 0x1d2   :  { %4335 = vmatprep.subr.bf16.mxu1 %v7209_v54  ;;  %v7290_v54 = vld [vmem:[#allocation3 + $0x64c] ss:$36 sps:$4 sm:$0xff]  }
 0x1d4   :  { %4481 = vmatpush1.bf16.msra.mxu0 %v7204_v53  ;;  %4325 = vmatmul.mubr.bf16.vlgmr.msra.gmra.mrb[4].mxu1 %v8083_v1  ;;  %v7282_v53 = vld [vmem:[#allocation3 + $0x600] ss:$36 sps:$4 sm:$0xff]  }
 0x1d5   :  { %4482 = vmatprep.subr.bf16.mxu0 %v7212_v55  ;;  %4336 = vmatpush1.bf16.msra.mxu1 %v7207_v56  ;;  %v7285_v55 = vld [vmem:[#allocation3 + $0x838] ss:$36 sps:$4 sm:$0xff]   ;;  %v7288_v56 = vld [vmem:[#allocation3 + $0x648] ss:$36 sps:$4 sm:$0xff]  }
 0x1d6   :  { %4367 = vmatprep.mubr.bf16.mxu1 %v8098_v29  ;;  %4337 = vmatprep.subr.bf16.mxu1 %v7215_v58  ;;  %v7296_v58 = vld [vmem:[#allocation3 + $0x694] ss:$36 sps:$4 sm:$0xff]  }
 0x1d8   :  { %4483 = vmatpush1.bf16.msra.mxu0 %v7210_v57  ;;  %v7293_v57 = vld [vmem:[#allocation3 + $0x884] ss:$36 sps:$4 sm:$0xff]  }
 0x1d9   :  { %4484 = vmatprep.subr.bf16.mxu0 %v7218_v59  ;;  %4338 = vmatpush1.bf16.msra.mxu1 %v7213_v60  ;;  %v7291_v59 = vld [vmem:[#allocation3 + $0x880] ss:$36 sps:$4 sm:$0xff]   ;;  %v7294_v60 = vld [vmem:[#allocation3 + $0x690] ss:$36 sps:$4 sm:$0xff]  }
 0x1da   :  { %4339 = vmatprep.subr.bf16.mxu1 %v7221_v62  ;;  %v7302_v62 = vld [vmem:[#allocation3 + $0x6dc] ss:$36 sps:$4 sm:$0xff]  }
 0x1dc   :  { %4485 = vmatpush1.bf16.msra.mxu0 %v7216_v61  ;;  %v7299_v61 = vld [vmem:[#allocation3 + $0x8cc] ss:$36 sps:$4 sm:$0xff]  }
 0x1dd   :  { %4486 = vmatprep.subr.bf16.mxu0 %v7224_v63  ;;  %4340 = vmatpush1.bf16.msra.mxu1 %v7219_v2  ;;  %v7297_v63 = vld [vmem:[#allocation3 + $0x8c8] ss:$36 sps:$4 sm:$0xff]   ;;  %v7300_v2 = vld [vmem:[#allocation3 + $0x6d8] ss:$36 sps:$4 sm:$0xff]  }
 0x1de   :  { %4341 = vmatprep.subr.bf16.mxu1 %v7227_v4  ;;  %v7308_v4 = vld [vmem:[#allocation3 + $0x724] ss:$36 sps:$4 sm:$0xff]  }
 0x1e0   :  { %4487 = vmatpush1.bf16.msra.mxu0 %v7222_v3  ;;  %v7305_v3 = vld [vmem:[#allocation3 + $0x914] ss:$36 sps:$4 sm:$0xff]  }
 0x1e1   :  { %4488 = vmatprep.subr.bf16.mxu0 %v7230_v5  ;;  %4342 = vmatpush1.bf16.msra.mxu1 %v7225_v6  ;;  %v7303_v5 = vld [vmem:[#allocation3 + $0x910] ss:$36 sps:$4 sm:$0xff]   ;;  %v7306_v6 = vld [vmem:[#allocation3 + $0x720] ss:$36 sps:$4 sm:$0xff]  }
 0x1e2   :  { %4343 = vmatprep.subr.bf16.mxu1 %v7233_v9  ;;  %v7309_v9 = vld [vmem:[#allocation3 + $0x958] ss:$36 sps:$4 sm:$0xff]  }
 0x1e4   :  { %4489 = vmatpush1.bf16.msra.mxu0 %v7228_v7  ;;  %v7311_v7 = vld [vmem:[#allocation3 + $0x95c] ss:$36 sps:$4 sm:$0xff]  }
 0x1e5   :  { %4490 = vmatprep.subr.bf16.mxu0 %v7236_v10  ;;  %4344 = vmatpush1.bf16.msra.mxu1 %v7231_v11  ;;  %v7314_v10 = vld [vmem:[#allocation3 + $0x76c] ss:$36 sps:$4 sm:$0xff]  }
 0x1e6   :  { %4345 = vmatprep.subr.bf16.mxu1 %v7239_v16  ;;  %v7312_v11 = vld [vmem:[#allocation3 + $0x768] ss:$36 sps:$4 sm:$0xff]   ;;  %v7315_v16 = vld [vmem:[#allocation3 + $0x9a0] ss:$36 sps:$4 sm:$0xff]  }
 0x1e8   :  { %4491 = vmatpush1.bf16.msra.mxu0 %v7234_v14  ;;  %v7317_v14 = vld [vmem:[#allocation3 + $0x9a4] ss:$36 sps:$4 sm:$0xff]  }
 0x1e9   :  { %4492 = vmatprep.subr.bf16.mxu0 %v7242_v17  ;;  %4346 = vmatpush1.bf16.msra.mxu1 %v7237_v18  ;;  %v7320_v17 = vld [vmem:[#allocation3 + $0x7b4] ss:$36 sps:$4 sm:$0xff]  }
 0x1ea   :  { %4347 = vmatprep.subr.bf16.mxu1 %v7245_v21  ;;  %v7318_v18 = vld [vmem:[#allocation3 + $0x7b0] ss:$36 sps:$4 sm:$0xff]  }
 0x1eb   :  { %v7323_v21 = vld [vmem:[#allocation3 + $0x9ec] ss:$36 sps:$4 sm:$0xff]  }
 0x1ec   :  { %4493 = vmatpush1.bf16.msra.mxu0 %v7240_v23  ;;  %v7321_v23 = vld [vmem:[#allocation3 + $0x9e8] ss:$36 sps:$4 sm:$0xff]  }
 0x1ed   :  { %4494 = vmatprep.subr.bf16.mxu0 %v7248_v24  ;;  %4348 = vmatpush1.bf16.msra.mxu1 %v7243_v26  ;;  %v7326_v24 = vld [vmem:[#allocation3 + $0x7fc] ss:$36 sps:$4 sm:$0xff]  }
 0x1ee   :  { %4349 = vmatprep.subr.bf16.mxu1 %v7251_v28  ;;  %v7324_v26 = vld [vmem:[#allocation3 + $0x7f8] ss:$36 sps:$4 sm:$0xff]   ;;  %v7327_v28 = vld [vmem:[#allocation3 + $0xa30] ss:$36 sps:$4 sm:$0xff]  }
 0x1f0   :  { %4495 = vmatpush1.bf16.msra.mxu0 %v7246_v27  ;;  %v7329_v27 = vld [vmem:[#allocation3 + $0xa34] ss:$36 sps:$4 sm:$0xff]  }
 0x1f1   :  { %4507 = vmatprep.subr.bf16.mxu0 %v7254_v30  ;;  %4350 = vmatpush1.bf16.msra.mxu1 %v7249_v12  ;;  %v7332_v30 = vld [vmem:[#allocation3 + $0x844] ss:$36 sps:$4 sm:$0xff]  }
 0x1f2   :  { %4351 = vmatprep.subr.bf16.mxu1 %v7257_v31  ;;  %v7330_v12 = vld [vmem:[#allocation3 + $0x840] ss:$36 sps:$4 sm:$0xff]  }
 0x1f3   :  { %4497 = vmatmul.mubr.bf16.vlgmr.msra.gmra.mrb[8].mxu0 %v8083_v1 }
 0x1f4   :  { %4508 = vmatpush1.bf16.msra.mxu0 %v7252_v13  ;;  %4539 = vmatprep.mubr.bf16.mxu0 %v8098_v29  ;;  %v7335_v13 = vld [vmem:[#allocation3 + $0xa7c] ss:$36 sps:$4 sm:$0xff]  }
 0x1f5   :  { %4509 = vmatprep.subr.bf16.mxu0 %v7260_v32  ;;  %4352 = vmatpush1.bf16.msra.mxu1 %v7255_v33  ;;  %v7333_v33 = vld [vmem:[#allocation3 + $0xa78] ss:$36 sps:$4 sm:$0xff]  }
 0x1f6   :  { %4353 = vmatprep.subr.bf16.mxu1 %v7263_v35  ;;  %v7336_v35 = vld [vmem:[#allocation3 + $0x888] ss:$36 sps:$4 sm:$0xff]  }
 0x1f8   :  { %4510 = vmatpush1.bf16.msra.mxu0 %v7258_v34  ;;  %v7338_v34 = vld [vmem:[#allocation3 + $0x88c] ss:$36 sps:$4 sm:$0xff]  }
 0x1f9   :  { %4511 = vmatprep.subr.bf16.mxu0 %v7266_v36  ;;  %4354 = vmatpush1.bf16.msra.mxu1 %v7261_v37  ;;  %v7341_v36 = vld [vmem:[#allocation3 + $0xac4] ss:$36 sps:$4 sm:$0xff]  }
 0x1fa   :  { %4355 = vmatprep.subr.bf16.mxu1 %v7269_v39  ;;  %v7339_v39 = vld [vmem:[#allocation3 + $0xac0] ss:$36 sps:$4 sm:$0xff]  }
 0x1fc   :  { %4512 = vmatpush1.bf16.msra.mxu0 %v7264_v38 }
 0x1fd   :  { %4513 = vmatprep.subr.bf16.mxu0 %v7272_v41  ;;  %4356 = vmatpush1.bf16.msra.mxu1 %v7267_v42  ;;  %v7344_v41 = vld [vmem:[#allocation3 + $0x8d4] ss:$36 sps:$4 sm:$0xff]  }
 0x1fe   :  { %4357 = vmatprep.subr.bf16.mxu1 %v7275_v46  ;;  %v7342_v42 = vld [vmem:[#allocation3 + $0x8d0] ss:$36 sps:$4 sm:$0xff]   ;;  %v7345_v46 = vld [vmem:[#allocation3 + $0xb08] ss:$36 sps:$4 sm:$0xff]  }
 0x200   :  { %4514 = vmatpush1.bf16.msra.mxu0 %v7270_v45  ;;  %v7347_v45 = vld [vmem:[#allocation3 + $0xb0c] ss:$36 sps:$4 sm:$0xff]  }
 0x201   :  { %4515 = vmatprep.subr.bf16.mxu0 %v7278_v47  ;;  %4358 = vmatpush1.bf16.msra.mxu1 %v7273_v49  ;;  %v7350_v47 = vld [vmem:[#allocation3 + $0x91c] ss:$36 sps:$4 sm:$0xff]  }
 0x202   :  { %4359 = vmatprep.subr.bf16.mxu1 %v7281_v20  ;;  %v7348_v49 = vld [vmem:[#allocation3 + $0x918] ss:$36 sps:$4 sm:$0xff]  }
 0x204   :  { %4516 = vmatpush1.bf16.msra.mxu0 %v7276_v19  ;;  %v7353_v19 = vld [vmem:[#allocation3 + $0xb54] ss:$36 sps:$4 sm:$0xff]  }
 0x205   :  { %4517 = vmatprep.subr.bf16.mxu0 %v7284_v50  ;;  %4360 = vmatpush1.bf16.msra.mxu1 %v7279_v51  ;;  %v7351_v50 = vld [vmem:[#allocation3 + $0xb50] ss:$36 sps:$4 sm:$0xff]   ;;  %v7356_v51 = vld [vmem:[#allocation3 + $0x964] ss:$36 sps:$4 sm:$0xff]  }
 0x206   :  { %4361 = vmatprep.subr.bf16.mxu1 %v7287_v52 }
 0x208   :  { %4518 = vmatpush1.bf16.msra.mxu0 %v7282_v53  ;;  %v7354_v53 = vld [vmem:[#allocation3 + $0x960] ss:$36 sps:$4 sm:$0xff]  }
 0x209   :  { %4519 = vmatprep.subr.bf16.mxu0 %v7290_v54  ;;  %4362 = vmatpush1.bf16.msra.mxu1 %v7285_v55  ;;  %v7359_v54 = vld [vmem:[#allocation3 + $0xb9c] ss:$36 sps:$4 sm:$0xff]  }
 0x20a   :  { %4363 = vmatprep.subr.bf16.mxu1 %v7293_v57 }
 0x20c   :  { %4520 = vmatpush1.bf16.msra.mxu0 %v7288_v56  ;;  %v7357_v56 = vld [vmem:[#allocation3 + $0xb98] ss:$36 sps:$4 sm:$0xff]  }
 0x20d   :  { %4521 = vmatprep.subr.bf16.mxu0 %v7296_v58  ;;  %4364 = vmatpush1.bf16.msra.mxu1 %v7291_v59  ;;  %v7360_v58 = vld [vmem:[#allocation3 + $0x9a8] ss:$36 sps:$4 sm:$0xff]  }
 0x20e   :  { %4365 = vmatprep.subr.bf16.mxu1 %v7299_v61  ;;  %v7365_v59 = vld [vmem:[#allocation3 + $0xbe4] ss:$36 sps:$4 sm:$0xff]   ;;  %v7368_v61 = vld [vmem:[#allocation3 + $0x9f4] ss:$36 sps:$4 sm:$0xff]  }
 0x210   :  { %4522 = vmatpush1.bf16.msra.mxu0 %v7294_v60  ;;  %v7363_v60 = vld [vmem:[#allocation3 + $0xbe0] ss:$36 sps:$4 sm:$0xff]  }
 0x211   :  { %4523 = vmatprep.subr.bf16.mxu0 %v7302_v62  ;;  %4366 = vmatpush1.bf16.msra.mxu1 %v7297_v63  ;;  %v7366_v62 = vld [vmem:[#allocation3 + $0x9f0] ss:$36 sps:$4 sm:$0xff]  }
 0x212   :  { %4378 = vmatprep.subr.bf16.mxu1 %v7305_v3  ;;  %v7371_v63 = vld [vmem:[#allocation3 + $0xc2c] ss:$36 sps:$4 sm:$0xff]   ;;  %v7372_v3 = vld [vmem:[#allocation3 + $0xa38] ss:$36 sps:$4 sm:$0xff]  }
 0x214   :  { %4524 = vmatpush1.bf16.msra.mxu0 %v7300_v2  ;;  %4368 = vmatmul.mubr.bf16.vlgmr.msra.gmra.mrb[4].mxu1 %v8105_v8  ;;  %v7374_v2 = vld [vmem:[#allocation3 + $0xa3c] ss:$36 sps:$4 sm:$0xff]  }
 0x215   :  { %4525 = vmatprep.subr.bf16.mxu0 %v7308_v4  ;;  %4379 = vmatpush1.bf16.msra.mxu1 %v7303_v5  ;;  %v7377_v4 = vld [vmem:[#allocation3 + $0xc74] ss:$36 sps:$4 sm:$0xff]  }
 0x216   :  { %4410 = vmatprep.mubr.bf16.mxu1 %v8119_v15  ;;  %4380 = vmatprep.subr.bf16.mxu1 %v7311_v7  ;;  %v7375_v5 = vld [vmem:[#allocation3 + $0xc70] ss:$36 sps:$4 sm:$0xff]   ;;  %v7378_v7 = vld [vmem:[#allocation3 + $0xa80] ss:$36 sps:$4 sm:$0xff]  }
 0x218   :  { %4526 = vmatpush1.bf16.msra.mxu0 %v7306_v6  ;;  %v7380_v6 = vld [vmem:[#allocation3 + $0xa84] ss:$36 sps:$4 sm:$0xff]  }
 0x219   :  { %4527 = vmatprep.subr.bf16.mxu0 %v7314_v10  ;;  %4381 = vmatpush1.bf16.msra.mxu1 %v7309_v9  ;;  %v7383_v9 = vld [vmem:[#allocation3 + $0xcbc] ss:$36 sps:$4 sm:$0xff]  }
 0x21a   :  { %4382 = vmatprep.subr.bf16.mxu1 %v7317_v14  ;;  %v7381_v10 = vld [vmem:[#allocation3 + $0xcb8] ss:$36 sps:$4 sm:$0xff]   ;;  %v7384_v14 = vld [vmem:[#allocation3 + $0xac8] ss:$36 sps:$4 sm:$0xff]  }
 0x21c   :  { %4528 = vmatpush1.bf16.msra.mxu0 %v7312_v11  ;;  %v7386_v11 = vld [vmem:[#allocation3 + $0xacc] ss:$36 sps:$4 sm:$0xff]  }
 0x21d   :  { %4529 = vmatprep.subr.bf16.mxu0 %v7320_v17  ;;  %4383 = vmatpush1.bf16.msra.mxu1 %v7315_v16  ;;  %v7389_v16 = vld [vmem:[#allocation3 + $0xd04] ss:$36 sps:$4 sm:$0xff]  }
 0x21e   :  { %4384 = vmatprep.subr.bf16.mxu1 %v7323_v21  ;;  %v7387_v17 = vld [vmem:[#allocation3 + $0xd00] ss:$36 sps:$4 sm:$0xff]   ;;  %v7390_v21 = vld [vmem:[#allocation3 + $0xb10] ss:$36 sps:$4 sm:$0xff]  }
 0x220   :  { %4530 = vmatpush1.bf16.msra.mxu0 %v7318_v18  ;;  %v7392_v18 = vld [vmem:[#allocation3 + $0xb14] ss:$36 sps:$4 sm:$0xff]  }
 0x221   :  { %4531 = vmatprep.subr.bf16.mxu0 %v7326_v24  ;;  %4385 = vmatpush1.bf16.msra.mxu1 %v7321_v23  ;;  %v7395_v23 = vld [vmem:[#allocation3 + $0xd4c] ss:$36 sps:$4 sm:$0xff]  }
 0x222   :  { %4386 = vmatprep.subr.bf16.mxu1 %v7329_v27  ;;  %v7393_v24 = vld [vmem:[#allocation3 + $0xd48] ss:$36 sps:$4 sm:$0xff]   ;;  %v7396_v27 = vld [vmem:[#allocation3 + $0xb58] ss:$36 sps:$4 sm:$0xff]  }
 0x223   :  { %v287_v31 = vpop.xlane.xlu1 %286 }
 0x224   :  { %v290_v32 = vmax.f32 %v287_v31, 1e-24  ;;  %4532 = vmatpush1.bf16.msra.mxu0 %v7324_v26  ;;  %v7398_v26 = vld [vmem:[#allocation3 + $0xb5c] ss:$36 sps:$4 sm:$0xff]  }
 0x225   :  { %4533 = vmatprep.subr.bf16.mxu0 %v7332_v30  ;;  %4387 = vmatpush1.bf16.msra.mxu1 %v7327_v28  ;;  %v7401_v28 = vld [vmem:[#allocation3 + $0xd94] ss:$36 sps:$4 sm:$0xff]   ;;  %v7407_v31 = vld [vmem:[#allocation3 + $0xddc] ss:$36 sps:$4 sm:$0xff]  }
 0x226   :  { %7656 = vrsqrt.f32 %v290_v32  ;;  %4388 = vmatprep.subr.bf16.mxu1 %v7335_v13  ;;  %v7399_v30 = vld [vmem:[#allocation3 + $0xd90] ss:$36 sps:$4 sm:$0xff]   ;;  %v7402_v13 = vld [vmem:[#allocation3 + $0xba0] ss:$36 sps:$4 sm:$0xff]   ;;  %v7405_v32 = vld [vmem:[#allocation3 + $0xdd8] ss:$36 sps:$4 sm:$0xff]  }
 0x227   :  { %v289_v37 = vpop.xlane.xlu1 %288 }
 0x228   :  { %v291_v38 = vmax.f32 %v289_v37, 1e-24  ;;  %4534 = vmatpush1.bf16.msra.mxu0 %v7330_v12  ;;  %v7404_v12 = vld [vmem:[#allocation3 + $0xba4] ss:$36 sps:$4 sm:$0xff]   ;;  %v7416_v37 = vld [vmem:[#allocation3 + $0xc34] ss:$36 sps:$4 sm:$0xff]  }
 0x229   :  { %4535 = vmatprep.subr.bf16.mxu0 %v7338_v34  ;;  %4389 = vmatpush1.bf16.msra.mxu1 %v7333_v33  ;;  %v7410_v33 = vld [vmem:[#allocation3 + $0xbec] ss:$36 sps:$4 sm:$0xff]   ;;  %v7413_v34 = vld [vmem:[#allocation3 + $0xe24] ss:$36 sps:$4 sm:$0xff]  }
 0x22a   :  { %7658 = vrsqrt.f32 %v291_v38  ;;  %4390 = vmatprep.subr.bf16.mxu1 %v7341_v36  ;;  %v7411_v36 = vld [vmem:[#allocation3 + $0xe20] ss:$36 sps:$4 sm:$0xff]   ;;  %v7419_v38 = vld [vmem:[#allocation3 + $0xe6c] ss:$36 sps:$4 sm:$0xff]  }
 0x22c   :  { %4536 = vmatpush1.bf16.msra.mxu0 %v7336_v35  ;;  %v7408_v35 = vld [vmem:[#allocation3 + $0xbe8] ss:$36 sps:$4 sm:$0xff]  }
 0x22d   :  { %4537 = vmatprep.subr.bf16.mxu0 %v7344_v41  ;;  %4391 = vmatpush1.bf16.msra.mxu1 %v7339_v39  ;;  %v7414_v39 = vld [vmem:[#allocation3 + $0xc30] ss:$36 sps:$4 sm:$0xff]   ;;  %v7417_v41 = vld [vmem:[#allocation3 + $0xe68] ss:$36 sps:$4 sm:$0xff]  }
 0x22e   :  { %4392 = vmatprep.subr.bf16.mxu1 %v7347_v45  ;;  %v7422_v45 = vld [vmem:[#allocation3 + $0xc7c] ss:$36 sps:$4 sm:$0xff]  }
 0x230   :  { %v7657_v20 = vpop.eup %7656  ;;  %4538 = vmatpush1.bf16.msra.mxu0 %v7342_v42  ;;  %v4872_v42 = vlaneseq }
 0x231   :  { %v294_v52 = vmul.f32 %v7657_v20, %v8151_v43  ;;  %4550 = vmatprep.subr.bf16.mxu0 %v7350_v47  ;;  %4393 = vmatpush1.bf16.msra.mxu1 %v7345_v46  ;;  %v7362_v43 = vld [vmem:[#allocation3 + $0x9ac] ss:$36 sps:$4 sm:$0xff]   ;;  %v7425_v46 = vld [vmem:[#allocation3 + $0xeb4] ss:$36 sps:$4 sm:$0xff]   ;;  %v7428_v20 = vld [vmem:[#allocation3 + $0xcc4] ss:$36 sps:$4 sm:$0xff]  }
 0x232   :  { %4394 = vmatprep.subr.bf16.mxu1 %v7353_v19  ;;  %v7420_v47 = vld [vmem:[#allocation3 + $0xc78] ss:$36 sps:$4 sm:$0xff]   ;;  %v8182_v19 = vshrl.u32 %v4872_v42, 7 }
 0x233   :  { %296 = vst [vmem:[%s8275_s11] sm:$0xff] %v294_v52  ;;  %4540 = vmatmul.mubr.bf16.vlgmr.msra.gmra.mrb[8].mxu0 %v8105_v8 }
 0x234   :  { %v7659_v55 = vpop.eup %7658  ;;  %4551 = vmatpush1.bf16.msra.mxu0 %v7348_v49  ;;  %4582 = vmatprep.mubr.bf16.mxu0 %v8119_v15  ;;  %v7423_v49 = vld [vmem:[#allocation3 + $0xeb0] ss:$36 sps:$4 sm:$0xff]   ;;  %v4885_v52 = vsub.s32 0, %v8182_v19 }
 0x235   :  { %v295_v57 = vmul.f32 %v7659_v55, %v8155_v48  ;;  %4552 = vmatprep.subr.bf16.mxu0 %v7356_v51  ;;  %4395 = vmatpush1.bf16.msra.mxu1 %v7351_v50  ;;  %v7369_v48 = vld [vmem:[#allocation3 + $0xc28] ss:$36 sps:$4 sm:$0xff]   ;;  %v7431_v50 = vld [vmem:[#allocation3 + $0xefc] ss:$36 sps:$4 sm:$0xff]  }
 0x236   :  { %4396 = vmatprep.subr.bf16.mxu1 %v7359_v54  ;;  %v7426_v51 = vld [vmem:[#allocation3 + $0xcc0] ss:$36 sps:$4 sm:$0xff]   ;;  %v7434_v54 = vld [vmem:[#allocation3 + $0xd0c] ss:$36 sps:$4 sm:$0xff]  }
 0x237   :  { %297 = vst [vmem:[%s8275_s11 + $0x8] sm:$0xff] %v295_v57  ;;  %v6364_v55 = vld [vmem:[#allocation5] ss:$0 sm:$0xff]  ;;  %v7437_v57 = vld [vmem:[#allocation3 + $0xf44] ss:$36 sps:$4 sm:$0xff]  }
 0x238   :  { %4553 = vmatpush1.bf16.msra.mxu0 %v7354_v53  ;;  %v8185_v53 = vld [vmem:[#allocation7] sm:$0xff] }
 0x239   :  { %4554 = vmatprep.subr.bf16.mxu0 %v7362_v43  ;;  %4397 = vmatpush1.bf16.msra.mxu1 %v7357_v56  ;;  %v7429_v56 = vld [vmem:[#allocation3 + $0xef8] ss:$36 sps:$4 sm:$0xff]  }
 0x23a   :  { %4398 = vmatprep.subr.bf16.mxu1 %v7365_v59  ;;  %v7432_v59 = vld [vmem:[#allocation3 + $0xd08] ss:$36 sps:$4 sm:$0xff]  }
 0x23c   :  { %4555 = vmatpush1.bf16.msra.mxu0 %v7360_v58  ;;  %v4886_v58 = vrot.slane %v8185_v53, %v4885_v52  ;;  %v7485_v52 = vld [vmem:[#allocation3 + $0x1184] ss:$36 sps:$4 sm:$0xff]  }
 0x23d   :  { %4556 = vmatprep.subr.bf16.mxu0 %v7368_v61  ;;  %4399 = vmatpush1.bf16.msra.mxu1 %v7363_v60 }
 0x23e   :  { %4400 = vmatprep.subr.bf16.mxu1 %v7371_v63 }
 0x240   :  { %4557 = vmatpush1.bf16.msra.mxu0 %v7366_v62  ;;  %v7440_v62 = vld [vmem:[#allocation3 + $0xd54] ss:$36 sps:$4 sm:$0xff]  }
 0x241   :  { %4558 = vmatprep.subr.bf16.mxu0 %v7374_v2  ;;  %4401 = vmatpush1.bf16.msra.mxu1 %v7369_v48  ;;  %v7435_v48 = vld [vmem:[#allocation3 + $0xf40] ss:$36 sps:$4 sm:$0xff]  }
 0x242   :  { %4402 = vmatprep.subr.bf16.mxu1 %v7377_v4  ;;  %v7443_v4 = vld [vmem:[#allocation3 + $0xf8c] ss:$36 sps:$4 sm:$0xff]  }
 0x244   :  { %4559 = vmatpush1.bf16.msra.mxu0 %v7372_v3 }
 0x245   :  { %4560 = vmatprep.subr.bf16.mxu0 %v7380_v6  ;;  %4403 = vmatpush1.bf16.msra.mxu1 %v7375_v5 }
 0x246   :  { %4404 = vmatprep.subr.bf16.mxu1 %v7383_v9  ;;  %v7446_v9 = vld [vmem:[#allocation3 + $0xd9c] ss:$36 sps:$4 sm:$0xff]  }
 0x248   :  { %4561 = vmatpush1.bf16.msra.mxu0 %v7378_v7  ;;  %v7438_v7 = vld [vmem:[#allocation3 + $0xd50] ss:$36 sps:$4 sm:$0xff]  }
 0x249   :  { %4562 = vmatprep.subr.bf16.mxu0 %v7386_v11  ;;  %4405 = vmatpush1.bf16.msra.mxu1 %v7381_v10  ;;  %v7441_v11 = vld [vmem:[#allocation3 + $0xf88] ss:$36 sps:$4 sm:$0xff]  }
 0x24a   :  { %4406 = vmatprep.subr.bf16.mxu1 %v7389_v16  ;;  %v7444_v16 = vld [vmem:[#allocation3 + $0xd98] ss:$36 sps:$4 sm:$0xff]  }
 0x24c   :  { %4563 = vmatpush1.bf16.msra.mxu0 %v7384_v14  ;;  %v7449_v14 = vld [vmem:[#allocation3 + $0xfd4] ss:$36 sps:$4 sm:$0xff]  }
 0x24d   :  { %4564 = vmatprep.subr.bf16.mxu0 %v7392_v18  ;;  %4407 = vmatpush1.bf16.msra.mxu1 %v7387_v17  ;;  %v7452_v17 = vld [vmem:[#allocation3 + $0xde4] ss:$36 sps:$4 sm:$0xff]   ;;  %v7447_v18 = vld [vmem:[#allocation3 + $0xfd0] ss:$36 sps:$4 sm:$0xff]  }
 0x24e   :  { %4408 = vmatprep.subr.bf16.mxu1 %v7395_v23  ;;  %v7450_v23 = vld [vmem:[#allocation3 + $0xde0] ss:$36 sps:$4 sm:$0xff]  }
 0x250   :  { %4565 = vmatpush1.bf16.msra.mxu0 %v7390_v21  ;;  %v7455_v21 = vld [vmem:[#allocation3 + $0x101c] ss:$36 sps:$4 sm:$0xff]  }
 0x251   :  { %4566 = vmatprep.subr.bf16.mxu0 %v7398_v26  ;;  %4409 = vmatpush1.bf16.msra.mxu1 %v7393_v24  ;;  %v7458_v24 = vld [vmem:[#allocation3 + $0xe2c] ss:$36 sps:$4 sm:$0xff]   ;;  %v7453_v26 = vld [vmem:[#allocation3 + $0x1018] ss:$36 sps:$4 sm:$0xff]  }
 0x252   :  { %4421 = vmatprep.subr.bf16.mxu1 %v7401_v28  ;;  %v7456_v28 = vld [vmem:[#allocation3 + $0xe28] ss:$36 sps:$4 sm:$0xff]  }
 0x254   :  { %4567 = vmatpush1.bf16.msra.mxu0 %v7396_v27  ;;  %4411 = vmatmul.mubr.bf16.vlgmr.msra.gmra.mrb[4].mxu1 %v8137_v22  ;;  %v7461_v27 = vld [vmem:[#allocation3 + $0x1064] ss:$36 sps:$4 sm:$0xff]  }
 0x255   :  { %4568 = vmatprep.subr.bf16.mxu0 %v7404_v12  ;;  %4422 = vmatpush1.bf16.msra.mxu1 %v7399_v30  ;;  %v7464_v30 = vld [vmem:[#allocation3 + $0xe74] ss:$36 sps:$4 sm:$0xff]   ;;  %v7459_v12 = vld [vmem:[#allocation3 + $0x1060] ss:$36 sps:$4 sm:$0xff]  }
 0x256   :  { %4453 = vmatprep.mubr.bf16.mxu1 %v8141_v25  ;;  %4423 = vmatprep.subr.bf16.mxu1 %v7407_v31  ;;  %v7462_v31 = vld [vmem:[#allocation3 + $0xe70] ss:$36 sps:$4 sm:$0xff]  }
 0x258   :  { %4569 = vmatpush1.bf16.msra.mxu0 %v7402_v13  ;;  %v7467_v13 = vld [vmem:[#allocation3 + $0x10ac] ss:$36 sps:$4 sm:$0xff]  }
 0x259   :  { %4570 = vmatprep.subr.bf16.mxu0 %v7410_v33  ;;  %4424 = vmatpush1.bf16.msra.mxu1 %v7405_v32  ;;  %v7470_v32 = vld [vmem:[#allocation3 + $0xebc] ss:$36 sps:$4 sm:$0xff]   ;;  %v7465_v33 = vld [vmem:[#allocation3 + $0x10a8] ss:$36 sps:$4 sm:$0xff]  }
 0x25a   :  { %4425 = vmatprep.subr.bf16.mxu1 %v7413_v34  ;;  %v7473_v34 = vld [vmem:[#allocation3 + $0x10f4] ss:$36 sps:$4 sm:$0xff]  }
 0x25c   :  { %4571 = vmatpush1.bf16.msra.mxu0 %v7408_v35  ;;  %v7468_v35 = vld [vmem:[#allocation3 + $0xeb8] ss:$36 sps:$4 sm:$0xff]  }
 0x25d   :  { %4572 = vmatprep.subr.bf16.mxu0 %v7416_v37  ;;  %4426 = vmatpush1.bf16.msra.mxu1 %v7411_v36  ;;  %v4889_v36 = vsub.s32 1, %v8182_v19  ;;  %v7476_v37 = vld [vmem:[#allocation3 + $0xf04] ss:$36 sps:$4 sm:$0xff]  }
 0x25e   :  { %4427 = vmatprep.subr.bf16.mxu1 %v7419_v38  ;;  %v7471_v38 = vld [vmem:[#allocation3 + $0x10f0] ss:$36 sps:$4 sm:$0xff]  }
 0x260   :  { %4573 = vmatpush1.bf16.msra.mxu0 %v7414_v39  ;;  %v4893_v39 = vsub.s32 2, %v8182_v19 }
 0x261   :  { %4574 = vmatprep.subr.bf16.mxu0 %v7422_v45  ;;  %4428 = vmatpush1.bf16.msra.mxu1 %v7417_v41  ;;  %v7479_v41 = vld [vmem:[#allocation3 + $0x113c] ss:$36 sps:$4 sm:$0xff]  }
 0x262   :  { %4429 = vmatprep.subr.bf16.mxu1 %v7425_v46  ;;  %v7474_v45 = vld [vmem:[#allocation3 + $0xf00] ss:$36 sps:$4 sm:$0xff]   ;;  %v4890_v46 = vrot.slane %v8185_v53, %v4889_v36  ;;  %v7524_v36 = vld [vmem:[#allocation3 + $0x118c] ss:$36 sps:$4 sm:$0xff]  }
 0x264   :  { %4575 = vmatpush1.bf16.msra.mxu0 %v7420_v47  ;;  %v7482_v47 = vld [vmem:[#allocation3 + $0xf4c] ss:$36 sps:$4 sm:$0xff]  }
 0x265   :  { %4576 = vmatprep.subr.bf16.mxu0 %v7428_v20  ;;  %4430 = vmatpush1.bf16.msra.mxu1 %v7423_v49  ;;  %v4894_v20 = vrot.slane %v8185_v53, %v4893_v39  ;;  %v7522_v39 = vld [vmem:[#allocation3 + $0x1188] ss:$36 sps:$4 sm:$0xff]  }
 0x266   :  { %4431 = vmatprep.subr.bf16.mxu1 %v7431_v50  ;;  %v7477_v50 = vld [vmem:[#allocation3 + $0x1138] ss:$36 sps:$4 sm:$0xff]  }
 0x267   :  { %v4111_v43 = vpop.f32.mrb[0].mxu1 }
 0x268   :  { %4577 = vmatpush1.bf16.msra.mxu0 %v7426_v51  ;;  %v4864_v60 = vadd.f32 %v6364_v55, %v4111_v43  ;;  %v4113_v61 = vpop.f32.mrb[1].mxu1 }
 0x269   :  { %4578 = vmatprep.subr.bf16.mxu0 %v7434_v54  ;;  %v4115_v63 = vpop.f32.mrb[2].mxu1  ;;  %4432 = vmatpush1.bf16.msra.mxu1 %v7429_v56  ;;  %v8191_v5 = vadd.f32 %v4886_v58, %v4113_v61  ;;  %v7483_v61 = vld [vmem:[#allocation3 + $0x1180] ss:$36 sps:$4 sm:$0xff]  }
 0x26a   :  { %4866 = vst [vmem:[%s8276_s12] sm:$0xff] %v4864_v60  ;;  %v4865_v2 = vadd.f32 %v6364_v55, %v4115_v63  ;;  %4868 = vmax.index.xlane.f32.xlu0 %v4864_v60  ;;  %v4117_v3 = vpop.f32.mrb[3].mxu1  ;;  %4433 = vmatprep.subr.bf16.mxu1 %v7437_v57  ;;  %v7480_v55 = vld [vmem:[#allocation3 + $0xf48] ss:$36 sps:$4 sm:$0xff]  }
 0x26b   :  { %v8193_v6 = vadd.f32 %v4886_v58, %v4117_v3  ;;  %v7488_v58 = vld [vmem:[#allocation3 + $0xf94] ss:$36 sps:$4 sm:$0xff]   ;;  %v7491_v63 = vld [vmem:[#allocation3 + $0x11cc] ss:$36 sps:$4 sm:$0xff]   ;;  %v7494_v3 = vld [vmem:[#allocation3 + $0xfdc] ss:$36 sps:$4 sm:$0xff]  }
 0x26c   :  { %4579 = vmatpush1.bf16.msra.mxu0 %v7432_v59  ;;  %4867 = vst [vmem:[%s8276_s12 + $0x8] sm:$0xff] %v4865_v2 }
 0x26d   :  { %4580 = vmatprep.subr.bf16.mxu0 %v7440_v62  ;;  %v4939_v10 = vpack.c.bf16 %v8193_v6, %v8191_v5  ;;  %4434 = vmatpush1.bf16.msra.mxu1 %v7435_v48  ;;  %v7628_v5 = vld [vmem:[#allocation8 + $0x160] sm:$0xff]  }
 0x26e   :  { %4870 = vmax.index.xlane.f32.xlu0 %v4865_v2  ;;  %4435 = vmatprep.subr.bf16.mxu1 %v7443_v4  ;;  %v7486_v2 = vld [vmem:[#allocation3 + $0xf90] ss:$36 sps:$4 sm:$0xff]   ;;  %v7489_v4 = vld [vmem:[#allocation3 + $0x11c8] ss:$36 sps:$4 sm:$0xff]  }
 0x26f   :  { %v7629_v6 = vld [vmem:[#allocation8 + $0x120] sm:$0xff]  }
 0x270   :  { %4581 = vmatpush1.bf16.msra.mxu0 %v7438_v7  ;;  %v7495_v7 = vld [vmem:[#allocation3 + $0x260] ss:$36 sps:$4 sm:$0xff]  }
 0x271   :  { %4593 = vmatprep.subr.bf16.mxu0 %v7446_v9  ;;  %4436 = vmatpush1.bf16.msra.mxu1 %v7441_v11  ;;  %v7492_v9 = vld [vmem:[#allocation3 + $0xfd8] ss:$36 sps:$4 sm:$0xff]   ;;  %v7499_v11 = vld [vmem:[#allocation3 + $0x1024] ss:$36 sps:$4 sm:$0xff]  }
 0x272   :  { %4437 = vmatprep.subr.bf16.mxu1 %v7449_v14  ;;  %v7496_v14 = vld [vmem:[#allocation3 + $0x20] ss:$36 sps:$4 sm:$0xff]  }
 0x273   :  { %4583 = vmatmul.mubr.bf16.vlgmr.msra.gmra.mrb[8].mxu0 %v8137_v22 }
 0x274   :  { %4594 = vmatpush1.bf16.msra.mxu0 %v7444_v16  ;;  %4625 = vmatprep.mubr.bf16.mxu0 %v8141_v25  ;;  %v7500_v16 = vld [vmem:[#allocation3 + $0x2a8] ss:$36 sps:$4 sm:$0xff]  }
 0x275   :  { %4595 = vmatprep.subr.bf16.mxu0 %v7452_v17  ;;  %4438 = vmatpush1.bf16.msra.mxu1 %v7447_v18  ;;  %v7497_v17 = vld [vmem:[#allocation3 + $0x1020] ss:$36 sps:$4 sm:$0xff]   ;;  %v7504_v18 = vld [vmem:[#allocation3 + $0x106c] ss:$36 sps:$4 sm:$0xff]  }
 0x276   :  { %4439 = vmatprep.subr.bf16.mxu1 %v7455_v21  ;;  %v7501_v21 = vld [vmem:[#allocation3 + $0x68] ss:$36 sps:$4 sm:$0xff]  }
 0x278   :  { %4596 = vmatpush1.bf16.msra.mxu0 %v7450_v23  ;;  %v7505_v23 = vld [vmem:[#allocation3 + $0x2f0] ss:$36 sps:$4 sm:$0xff]  }
 0x279   :  { %4597 = vmatprep.subr.bf16.mxu0 %v7458_v24  ;;  %4440 = vmatpush1.bf16.msra.mxu1 %v7453_v26  ;;  %v7502_v24 = vld [vmem:[#allocation3 + $0x1068] ss:$36 sps:$4 sm:$0xff]   ;;  %v7509_v26 = vld [vmem:[#allocation3 + $0x10b4] ss:$36 sps:$4 sm:$0xff]  }
 0x27a   :  { %4441 = vmatprep.subr.bf16.mxu1 %v7461_v27  ;;  %v7506_v27 = vld [vmem:[#allocation3 + $0xb0] ss:$36 sps:$4 sm:$0xff]  }
 0x27c   :  { %4598 = vmatpush1.bf16.msra.mxu0 %v7456_v28  ;;  %v7510_v28 = vld [vmem:[#allocation3 + $0x338] ss:$36 sps:$4 sm:$0xff]  }
 0x27d   :  { %4599 = vmatprep.subr.bf16.mxu0 %v7464_v30  ;;  %4442 = vmatpush1.bf16.msra.mxu1 %v7459_v12  ;;  %v7507_v30 = vld [vmem:[#allocation3 + $0x10b0] ss:$36 sps:$4 sm:$0xff]   ;;  %v7514_v12 = vld [vmem:[#allocation3 + $0x10fc] ss:$36 sps:$4 sm:$0xff]  }
 0x27e   :  { %4443 = vmatprep.subr.bf16.mxu1 %v7467_v13  ;;  %v7511_v13 = vld [vmem:[#allocation3 + $0xf8] ss:$36 sps:$4 sm:$0xff]  }
 0x280   :  { %4600 = vmatpush1.bf16.msra.mxu0 %v7462_v31  ;;  %v7515_v31 = vld [vmem:[#allocation3 + $0x380] ss:$36 sps:$4 sm:$0xff]  }
 0x281   :  { %4601 = vmatprep.subr.bf16.mxu0 %v7470_v32  ;;  %4444 = vmatpush1.bf16.msra.mxu1 %v7465_v33  ;;  %v7519_v32 = vld [vmem:[#allocation3 + $0x1144] ss:$36 sps:$4 sm:$0xff]  }
 0x282   :  { %4445 = vmatprep.subr.bf16.mxu1 %v7473_v34  ;;  %v7516_v33 = vld [vmem:[#allocation3 + $0x140] ss:$36 sps:$4 sm:$0xff]   ;;  %v7520_v34 = vld [vmem:[#allocation3 + $0x3c8] ss:$36 sps:$4 sm:$0xff]  }
 0x284   :  { %4602 = vmatpush1.bf16.msra.mxu0 %v7468_v35  ;;  %v7517_v35 = vld [vmem:[#allocation3 + $0x1140] ss:$36 sps:$4 sm:$0xff]  }
 0x285   :  { %4603 = vmatprep.subr.bf16.mxu0 %v7476_v37  ;;  %4446 = vmatpush1.bf16.msra.mxu1 %v7471_v38  ;;  %v7521_v37 = vld [vmem:[#allocation3 + $0x188] ss:$36 sps:$4 sm:$0xff]   ;;  %v7525_v38 = vld [vmem:[#allocation3 + $0x410] ss:$36 sps:$4 sm:$0xff]  }
 0x286   :  { %v4283_v49 = vpop.f32.mrb[4].mxu0  ;;  %4447 = vmatprep.subr.bf16.mxu1 %v7479_v41  ;;  %v7529_v41 = vld [vmem:[#allocation3 + $0x11d4] ss:$36 sps:$4 sm:$0xff]  }
 0x287   :  { %v4285_v51 = vpop.f32.mrb[5].mxu0  ;;  %v8206_v56 = vadd.f32 %v4890_v46, %v4283_v49  ;;  %v7532_v49 = vld [vmem:[#allocation3 + $0x6e0] ss:$36 sps:$4 sm:$0xff]  }
 0x288   :  { %v4287_v54 = vpop.f32.mrb[6].mxu0  ;;  %4604 = vmatpush1.bf16.msra.mxu0 %v7474_v45  ;;  %v8210_v59 = vadd.f32 %v4894_v20, %v4285_v51  ;;  %v7526_v45 = vld [vmem:[#allocation3 + $0x1d0] ss:$36 sps:$4 sm:$0xff]   ;;  %v7533_v51 = vld [vmem:[#allocation3 + $0x4a0] ss:$36 sps:$4 sm:$0xff]  }
 0x289   :  { %v8208_v57 = vadd.f32 %v4890_v46, %v4287_v54  ;;  %v4289_v43 = vpop.f32.mrb[7].mxu0  ;;  %4605 = vmatprep.subr.bf16.mxu0 %v7482_v47  ;;  %4448 = vmatpush1.bf16.msra.mxu1 %v7477_v50  ;;  %v7530_v46 = vld [vmem:[#allocation3 + $0x458] ss:$36 sps:$4 sm:$0xff]   ;;  %v7527_v47 = vld [vmem:[#allocation3 + $0x11d0] ss:$36 sps:$4 sm:$0xff]  }
 0x28a   :  { %v8212_v60 = vadd.f32 %v4894_v20, %v4289_v43  ;;  %4449 = vmatprep.subr.bf16.mxu1 %v7485_v52  ;;  %v7531_v20 = vld [vmem:[#allocation3 + $0x218] ss:$36 sps:$4 sm:$0xff]   ;;  %v7534_v50 = vld [vmem:[#allocation3 + $0xb60] ss:$36 sps:$4 sm:$0xff]   ;;  %v7536_v52 = vld [vmem:[#allocation3 + $0x728] ss:$36 sps:$4 sm:$0xff]  }
 0x28b   :  { %v4940_v62 = vpack.c.bf16 %v8208_v57, %v8206_v56  ;;  %v7535_v54 = vld [vmem:[#allocation3 + $0x920] ss:$36 sps:$4 sm:$0xff]   ;;  %v7537_v43 = vld [vmem:[#allocation3 + $0x4e8] ss:$36 sps:$4 sm:$0xff]   ;;  %v7606_v56 = vld [vmem:[#allocation8 + $0xc8] sm:$0xff]  }
 0x28c   :  { %v4941_v48 = vpack.c.bf16 %v8212_v60, %v8210_v59  ;;  %4606 = vmatpush1.bf16.msra.mxu0 %v7480_v55  ;;  %v7538_v55 = vld [vmem:[#allocation3 + $0xba8] ss:$36 sps:$4 sm:$0xff]   ;;  %v7868_v57 = vmov 1.0|1.0   ;;  %v7647_v59 = vld [vmem:[#allocation8 + $0x1a8] sm:$0xff]   ;;  %v4909_v60 = vsub.s32 6, %v8182_v19 }
 0x28d   :  { %4607 = vmatprep.subr.bf16.mxu0 %v7488_v58  ;;  %4450 = vmatpush1.bf16.msra.mxu1 %v7483_v61  ;;  %v7540_v58 = vld [vmem:[#allocation3 + $0x770] ss:$36 sps:$4 sm:$0xff]   ;;  %v7539_v61 = vld [vmem:[#allocation3 + $0x968] ss:$36 sps:$4 sm:$0xff]  }
 0x28e   :  { %4451 = vmatprep.subr.bf16.mxu1 %v7491_v63  ;;  %v7542_v63 = vld [vmem:[#allocation3 + $0xbf0] ss:$36 sps:$4 sm:$0xff]  }
 0x290   :  { %4608 = vmatpush1.bf16.msra.mxu0 %v7486_v2  ;;  %v7541_v2 = vld [vmem:[#allocation3 + $0x530] ss:$36 sps:$4 sm:$0xff]  }
 0x291   :  { %4609 = vmatprep.subr.bf16.mxu0 %v7494_v3  ;;  %4452 = vmatpush1.bf16.msra.mxu1 %v7489_v4  ;;  %v7544_v3 = vld [vmem:[#allocation3 + $0x7b8] ss:$36 sps:$4 sm:$0xff]   ;;  %v7543_v4 = vld [vmem:[#allocation3 + $0x9b0] ss:$36 sps:$4 sm:$0xff]  }
 0x292   :  { %6451 = vmatprep.subr.bf16.mxu1 %v7495_v7  ;;  %v7546_v7 = vld [vmem:[#allocation3 + $0xc38] ss:$36 sps:$4 sm:$0xff]  }
 0x294   :  { %4610 = vmatpush1.bf16.msra.mxu0 %v7492_v9  ;;  %4454 = vmatmul.mubr.bf16.vlgmr.msra.gmra.mrb[4].mxu1 %v8149_v40  ;;  %v7547_v9 = vld [vmem:[#allocation3 + $0x9f8] ss:$36 sps:$4 sm:$0xff]  }
 0x295   :  { %4611 = vmatprep.subr.bf16.mxu0 %v7499_v11  ;;  %6452 = vmatpush3.bf16.msra.mxu1 %v7496_v14  ;;  %v7550_v11 = vld [vmem:[#allocation3 + $0xc80] ss:$36 sps:$4 sm:$0xff]   ;;  %v7552_v14 = vld [vmem:[#allocation3 + $0x848] ss:$36 sps:$4 sm:$0xff]  }
 0x296   :  { %4668 = vmatprep.mubr.bf16.mxu1 %v8079_v44  ;;  %6453 = vmatprep.subr.bf16.mxu1 %v7500_v16  ;;  %v7512_v44 = vld [vmem:[#allocation3 + $0x10f8] ss:$36 sps:$4 sm:$0xff]   ;;  %v7551_v16 = vld [vmem:[#allocation3 + $0xa40] ss:$36 sps:$4 sm:$0xff]  }
 0x298   :  { %4612 = vmatpush1.bf16.msra.mxu0 %v7497_v17  ;;  %v7554_v17 = vld [vmem:[#allocation3 + $0xcc8] ss:$36 sps:$4 sm:$0xff]  }
 0x299   :  { %4613 = vmatprep.subr.bf16.mxu0 %v7504_v18  ;;  %6454 = vmatpush3.bf16.msra.mxu1 %v7501_v21  ;;  %v7553_v18 = vld [vmem:[#allocation3 + $0x608] ss:$36 sps:$4 sm:$0xff]   ;;  %v7556_v21 = vld [vmem:[#allocation3 + $0x890] ss:$36 sps:$4 sm:$0xff]  }
 0x29a   :  { %6455 = vmatprep.subr.bf16.mxu1 %v7505_v23  ;;  %v7555_v23 = vld [vmem:[#allocation3 + $0xa88] ss:$36 sps:$4 sm:$0xff]  }
 0x29c   :  { %4614 = vmatpush1.bf16.msra.mxu0 %v7502_v24  ;;  %v7558_v24 = vld [vmem:[#allocation3 + $0xd10] ss:$36 sps:$4 sm:$0xff]  }
 0x29d   :  { %4615 = vmatprep.subr.bf16.mxu0 %v7509_v26  ;;  %6456 = vmatpush3.bf16.msra.mxu1 %v7506_v27  ;;  %v7557_v26 = vld [vmem:[#allocation3 + $0x650] ss:$36 sps:$4 sm:$0xff]   ;;  %v7560_v27 = vld [vmem:[#allocation3 + $0x8d8] ss:$36 sps:$4 sm:$0xff]  }
 0x29e   :  { %6457 = vmatprep.subr.bf16.mxu1 %v7510_v28  ;;  %v7559_v28 = vld [vmem:[#allocation3 + $0xad0] ss:$36 sps:$4 sm:$0xff]  }
 0x2a0   :  { %4616 = vmatpush1.bf16.msra.mxu0 %v7507_v30  ;;  %v7562_v30 = vld [vmem:[#allocation3 + $0xd58] ss:$36 sps:$4 sm:$0xff]  }
 0x2a1   :  { %4617 = vmatprep.subr.bf16.mxu0 %v7514_v12  ;;  %6458 = vmatpush3.bf16.msra.mxu1 %v7511_v13  ;;  %v7561_v12 = vld [vmem:[#allocation3 + $0x698] ss:$36 sps:$4 sm:$0xff]   ;;  %v7564_v13 = vld [vmem:[#allocation3 + $0xfe0] ss:$36 sps:$4 sm:$0xff]  }
 0x2a2   :  { %6459 = vmatprep.subr.bf16.mxu1 %v7515_v31  ;;  %v7563_v31 = vld [vmem:[#allocation3 + $0xb18] ss:$36 sps:$4 sm:$0xff]  }
 0x2a4   :  { %4618 = vmatpush1.bf16.msra.mxu0 %v7512_v44  ;;  %v7565_v44 = vld [vmem:[#allocation3 + $0xda0] ss:$36 sps:$4 sm:$0xff]  }
 0x2a5   :  { %4619 = vmatprep.subr.bf16.mxu0 %v7519_v32  ;;  %6460 = vmatpush3.bf16.msra.mxu1 %v7516_v33  ;;  %v7566_v32 = vld [vmem:[#allocation3 + $0x1028] ss:$36 sps:$4 sm:$0xff]  }
 0x2a6   :  { %6461 = vmatprep.subr.bf16.mxu1 %v7520_v34  ;;  %v7571_v33 = vld [vmem:[#allocation10] sm:$0xff]  }
 0x2a7   :  { %v7567_v34 = vld [vmem:[#allocation3 + $0xde8] ss:$36 sps:$4 sm:$0xff]  }
 0x2a8   :  { %4620 = vmatpush1.bf16.msra.mxu0 %v7517_v35  ;;  %v7568_v35 = vld [vmem:[#allocation3 + $0x1070] ss:$36 sps:$4 sm:$0xff]  }
 0x2a9   :  { %4621 = vmatprep.subr.bf16.mxu0 %v7524_v36  ;;  %6462 = vmatpush3.bf16.msra.mxu1 %v7521_v37  ;;  %v7574_v36 = vld [vmem:[#allocation10 + $0x8] sm:$0xff]  }
 0x2aa   :  { %6463 = vmatprep.subr.bf16.mxu1 %v7525_v38  ;;  %v7569_v37 = vld [vmem:[#allocation3 + $0xe30] ss:$36 sps:$4 sm:$0xff]   ;;  %v7577_v38 = vld [vmem:[#allocation10 + $0x10] sm:$0xff]  }
 0x2ac   :  { %4622 = vmatpush1.bf16.msra.mxu0 %v7522_v39  ;;  %v7580_v39 = vld [vmem:[#allocation10 + $0x18] sm:$0xff]  }
 0x2ad   :  { %4623 = vmatprep.subr.bf16.mxu0 %v7529_v41  ;;  %6464 = vmatpush3.bf16.msra.mxu1 %v7526_v45  ;;  %v7575_v41 = vld [vmem:[#allocation3 + $0xec0] ss:$36 sps:$4 sm:$0xff]   ;;  %v7576_v45 = vld [vmem:[#allocation3 + $0x1148] ss:$36 sps:$4 sm:$0xff]  }
 0x2ae   :  { %6465 = vmatprep.subr.bf16.mxu1 %v7530_v46  ;;  %v7583_v46 = vld [vmem:[#allocation10 + $0x20] sm:$0xff]  }
 0x2b0   :  { %4624 = vmatpush1.bf16.msra.mxu0 %v7527_v47  ;;  %v7578_v47 = vld [vmem:[#allocation3 + $0xf08] ss:$36 sps:$4 sm:$0xff]  }
 0x2b1   :  { %6473 = vmatprep.subr.bf16.mxu0 %v7532_v49  ;;  %6466 = vmatpush3.bf16.msra.mxu1 %v7531_v20  ;;  %v7579_v49 = vld [vmem:[#allocation3 + $0x1190] ss:$36 sps:$4 sm:$0xff]  }
 0x2b2   :  { %6495 = vmatprep.subr.bf16.mxu1 %v7534_v50  ;;  %v7585_v20 = vld [vmem:[#allocation10 + $0x28] sm:$0xff]  }
 0x2b3   :  { %4626 = vmatmul.mubr.bf16.vlgmr.msra.gmra.mrb[8].mxu0 %v8149_v40  ;;  %v7581_v50 = vld [vmem:[#allocation3 + $0xf50] ss:$36 sps:$4 sm:$0xff]  }
 0x2b4   :  { %6474 = vmatpush3.bf16.msra.mxu0 %v7533_v51  ;;  %4709 = vmatprep.mubr.bf16.mxu0 %v8098_v29  ;;  %v7545_v29 = vld [vmem:[#allocation3 + $0x578] ss:$36 sps:$4 sm:$0xff]  }
 0x2b5   :  { %4669 = vmatmul.mubr.bf16.vlgmr.msra.gmra.mrb[8].mxu1 %v8083_v1  ;;  %6475 = vmatprep.subr.bf16.mxu0 %v7536_v52  ;;  %v7548_v1 = vld [vmem:[#allocation3 + $0x800] ss:$36 sps:$4 sm:$0xff]   ;;  %v7582_v51 = vld [vmem:[#allocation3 + $0x11d8] ss:$36 sps:$4 sm:$0xff]  }
 0x2b6   :  { %6496 = vmatpush3.bf16.msra.mxu1 %v7535_v54  ;;  %4750 = vmatprep.mubr.bf16.mxu1 %v8119_v15  ;;  %v7549_v15 = vld [vmem:[#allocation3 + $0x5c0] ss:$36 sps:$4 sm:$0xff]   ;;  %v7584_v54 = vld [vmem:[#allocation3 + $0xf98] ss:$36 sps:$4 sm:$0xff]  }
 0x2b7   :  { %6497 = vmatprep.subr.bf16.mxu1 %v7538_v55  ;;  %v7588_v52 = vld [vmem:[#allocation10 + $0x30] sm:$0xff]   ;;  %v7586_v55 = vld [vmem:[#allocation8 + $0x40] sm:$0xff]  }
 0x2b8   :  { %6476 = vmatpush3.bf16.msra.mxu0 %v7537_v43  ;;  %v7591_v43 = vld [vmem:[#allocation10 + $0x38] sm:$0xff]  }
 0x2b9   :  { %6477 = vmatprep.subr.bf16.mxu0 %v7540_v58  ;;  %v7604_v58 = vld [vmem:[#allocation8 + $0xc0] sm:$0xff]  }
 0x2ba   :  { %6498 = vmatpush3.bf16.msra.mxu1 %v7539_v61  ;;  %v7587_v61 = vld [vmem:[#allocation8] sm:$0xff]  }
 0x2bb   :  { %6499 = vmatprep.subr.bf16.mxu1 %v7542_v63  ;;  %v7589_v63 = vld [vmem:[#allocation8 + $0x48] sm:$0xff]  }
 0x2bc   :  { %6478 = vmatpush3.bf16.msra.mxu0 %v7541_v2  ;;  %v7590_v2 = vld [vmem:[#allocation8 + $0x8] sm:$0xff]  }
 0x2bd   :  { %6479 = vmatprep.subr.bf16.mxu0 %v7544_v3  ;;  %v7592_v3 = vld [vmem:[#allocation8 + $0x50] sm:$0xff]  }
 0x2be   :  { %6500 = vmatpush3.bf16.msra.mxu1 %v7543_v4 }
 0x2bf   :  { %6501 = vmatprep.subr.bf16.mxu1 %v7546_v7  ;;  %v4873_v7 = vand.u32 127, %v4872_v42  ;;  %v7598_v42 = vld [vmem:[#allocation8 + $0x68] sm:$0xff]  }
 0x2c0   :  { %6480 = vmatpush3.bf16.msra.mxu0 %v7545_v29  ;;  %v7594_v29 = vld [vmem:[#allocation8 + $0x58] sm:$0xff]  }
 0x2c1   :  { %6481 = vmatprep.subr.bf16.mxu0 %v7548_v1 }
 0x2c2   :  { %6502 = vmatpush3.bf16.msra.mxu1 %v7547_v9  ;;  %v7595_v9 = vld [vmem:[#allocation8 + $0x18] sm:$0xff]  }
 0x2c3   :  { %6503 = vmatprep.subr.bf16.mxu1 %v7550_v11  ;;  %v7596_v11 = vld [vmem:[#allocation8 + $0x60] sm:$0xff]  }
 0x2c4   :  { %6482 = vmatpush3.bf16.msra.mxu0 %v7549_v15  ;;  %v7607_v15 = vld [vmem:[#allocation8 + $0x88] sm:$0xff]  }
 0x2c5   :  { %6483 = vmatprep.subr.bf16.mxu0 %v7552_v14  ;;  %v7608_v14 = vld [vmem:[#allocation8 + $0xd0] sm:$0xff]  }
 0x2c6   :  { %6504 = vmatpush3.bf16.msra.mxu1 %v7551_v16  ;;  %v7599_v16 = vld [vmem:[#allocation8 + $0x28] sm:$0xff]  }
 0x2c7   :  { %6505 = vmatprep.subr.bf16.mxu1 %v7554_v17  ;;  %v7609_v17 = vld [vmem:[#allocation8 + $0x90] sm:$0xff]  }
 0x2c8   :  { %6484 = vmatpush3.bf16.msra.mxu0 %v7553_v18  ;;  %v7600_v18 = vld [vmem:[#allocation8 + $0x70] sm:$0xff]  }
 0x2c9   :  { %6485 = vmatprep.subr.bf16.mxu0 %v7556_v21  ;;  %v7610_v21 = vld [vmem:[#allocation8 + $0xd8] sm:$0xff]  }
 0x2ca   :  { %6506 = vmatpush3.bf16.msra.mxu1 %v7555_v23  ;;  %v7601_v23 = vld [vmem:[#allocation8 + $0x30] sm:$0xff]  }
 0x2cb   :  { %6507 = vmatprep.subr.bf16.mxu1 %v7558_v24  ;;  %v7611_v24 = vld [vmem:[#allocation8 + $0x98] sm:$0xff]  }
 0x2cc   :  { %6486 = vmatpush3.bf16.msra.mxu0 %v7557_v26  ;;  %v7602_v26 = vld [vmem:[#allocation8 + $0x78] sm:$0xff]  }
 0x2cd   :  { %6487 = vmatprep.subr.bf16.mxu0 %v7560_v27  ;;  %v7612_v27 = vld [vmem:[#allocation8 + $0xe0] sm:$0xff]  }
 0x2ce   :  { %6508 = vmatpush3.bf16.msra.mxu1 %v7559_v28  ;;  %v7603_v28 = vld [vmem:[#allocation8 + $0x38] sm:$0xff]  }
 0x2cf   :  { %6509 = vmatprep.subr.bf16.mxu1 %v7562_v30  ;;  %v7613_v30 = vld [vmem:[#allocation8 + $0xa0] sm:$0xff]  }
 0x2d0   :  { %6488 = vmatpush3.bf16.msra.mxu0 %v7561_v12  ;;  %v7614_v12 = vld [vmem:[#allocation8 + $0xe8] sm:$0xff]  }
 0x2d1   :  { %6517 = vmatprep.subr.bf16.mxu0 %v7564_v13  ;;  %v7620_v13 = vld [vmem:[#allocation8 + $0x140] sm:$0xff]  }
 0x2d2   :  { %6510 = vmatpush3.bf16.msra.mxu1 %v7563_v31  ;;  %v7615_v31 = vld [vmem:[#allocation8 + $0xa8] sm:$0xff]  }
 0x2d3   :  { %4710 = vmatmul.mubr.bf16.vlgmr.msra.gmra.mrb[12].mxu0 %v8105_v8  ;;  %6656 = vmatprep.subr.bf16.mxu1 %v7866_v0  ;;  %v7570_v8 = vld [vmem:[#allocation3 + $0x10b8] ss:$36 sps:$4 sm:$0xff]  }
 0x2d4   :  { %6518 = vmatpush3.bf16.msra.mxu0 %v7565_v44  ;;  %4791 = vmatprep.mubr.bf16.mxu0 %v8141_v25  ;;  %v7572_v25 = vld [vmem:[#allocation3 + $0xe78] ss:$36 sps:$4 sm:$0xff]   ;;  %v7621_v44 = vld [vmem:[#allocation8 + $0x100] sm:$0xff]  }
 0x2d5   :  { %4751 = vmatmul.mubr.bf16.vlgmr.msra.gmra.mrb[12].mxu1 %v8137_v22  ;;  %6519 = vmatprep.subr.bf16.mxu0 %v7566_v32  ;;  %v7573_v22 = vld [vmem:[#allocation3 + $0x1100] ss:$36 sps:$4 sm:$0xff]  }
 0x2d6   :  { %6657 = vmatpush3.bf16.msra.mxu1 %v7571_v33  ;;  %6672 = vmatprep.mubr.msk.bf16.mxu1 %vm7867_vm0, %v7866_v0  ;;  %v7616_v32 = vld [vmem:[#allocation8 + $0xf0] sm:$0xff]   ;;  %v7622_v33 = vld [vmem:[#allocation8 + $0x148] sm:$0xff]  }
 0x2d7   :  { %6658 = vmatprep.subr.bf16.mxu1 %v7866_v0 }
 0x2d8   :  { %6520 = vmatpush3.bf16.msra.mxu0 %v7567_v34  ;;  %v7617_v34 = vld [vmem:[#allocation8 + $0xb0] sm:$0xff]  }
 0x2d9   :  { %6521 = vmatprep.subr.bf16.mxu0 %v7568_v35  ;;  %v7623_v35 = vld [vmem:[#allocation8 + $0x108] sm:$0xff]  }
 0x2da   :  { %6659 = vmatpush3.bf16.msra.mxu1 %v7574_v36  ;;  %v7618_v36 = vld [vmem:[#allocation8 + $0xf8] sm:$0xff]  }
 0x2db   :  { %6660 = vmatprep.subr.bf16.mxu1 %v7866_v0 }
 0x2dc   :  { %6522 = vmatpush3.bf16.msra.mxu0 %v7569_v37  ;;  %v7624_v37 = vld [vmem:[#allocation8 + $0x150] sm:$0xff]  }
 0x2dd   :  { %6523 = vmatprep.subr.bf16.mxu0 %v7570_v8  ;;  %v7619_v8 = vld [vmem:[#allocation8 + $0xb8] sm:$0xff]  }
 0x2de   :  { %6661 = vmatpush3.bf16.msra.mxu1 %v7577_v38  ;;  %v7625_v38 = vld [vmem:[#allocation8 + $0x110] sm:$0xff]  }
 0x2df   :  { %6662 = vmatprep.subr.bf16.mxu1 %v7866_v0 }
 0x2e0   :  { %6524 = vmatpush3.bf16.msra.mxu0 %v7572_v25  ;;  %v7626_v25 = vld [vmem:[#allocation8 + $0x158] sm:$0xff]  }
 0x2e1   :  { %6525 = vmatprep.subr.bf16.mxu0 %v7573_v22  ;;  %v7627_v22 = vld [vmem:[#allocation8 + $0x118] sm:$0xff]  }
 0x2e2   :  { %6663 = vmatpush3.bf16.msra.mxu1 %v7580_v39  ;;  %v7631_v39 = vld [vmem:[#allocation8 + $0x128] sm:$0xff]  }
 0x2e3   :  { %6664 = vmatprep.subr.bf16.mxu1 %v7866_v0 }
 0x2e4   :  { %6526 = vmatpush3.bf16.msra.mxu0 %v7575_v41  ;;  %v7632_v41 = vld [vmem:[#allocation8 + $0x170] sm:$0xff]  }
 0x2e5   :  { %6527 = vmatprep.subr.bf16.mxu0 %v7576_v45  ;;  %v7633_v45 = vld [vmem:[#allocation8 + $0x130] sm:$0xff]  }
 0x2e6   :  { %6665 = vmatpush3.bf16.msra.mxu1 %v7583_v46  ;;  %v7634_v46 = vld [vmem:[#allocation8 + $0x178] sm:$0xff]  }
 0x2e7   :  { %6666 = vmatprep.subr.bf16.mxu1 %v7866_v0 }
 0x2e8   :  { %6528 = vmatpush3.bf16.msra.mxu0 %v7578_v47  ;;  %v7635_v47 = vld [vmem:[#allocation8 + $0x138] sm:$0xff]  }
 0x2e9   :  { %6529 = vmatprep.subr.bf16.mxu0 %v7579_v49  ;;  %v7636_v49 = vld [vmem:[#allocation8 + $0x1c0] sm:$0xff]  }
 0x2ea   :  { %6667 = vmatpush3.bf16.msra.mxu1 %v7585_v20  ;;  %v4897_v20 = vsub.s32 3, %v8182_v19 }
 0x2eb   :  { %6668 = vmatprep.subr.bf16.mxu1 %v7866_v0 }
 0x2ec   :  { %6530 = vmatpush3.bf16.msra.mxu0 %v7581_v50  ;;  %v4901_v50 = vsub.s32 4, %v8182_v19 }
 0x2ed   :  { %6531 = vmatprep.subr.bf16.mxu0 %v7582_v51  ;;  %v4898_v51 = vrot.slane %v8185_v53, %v4897_v20 }
 0x2ee   :  { %6669 = vmatpush3.bf16.msra.mxu1 %v7588_v52 }
 0x2ef   :  { %6670 = vmatprep.subr.bf16.mxu1 %v7866_v0  ;;  %v7593_v0 = vld [vmem:[#allocation8 + $0x10] sm:$0xff]  }
 0x2f0   :  { %6532 = vmatpush3.bf16.msra.mxu0 %v7584_v54  ;;  %v4902_v54 = vrot.slane %v8185_v53, %v4901_v50 }
 0x2f1   :  { %6548 = vmatprep.subr.bf16.mxu0 %v7586_v55 }
 0x2f2   :  { %6671 = vmatpush3.bf16.msra.mxu1 %v7591_v43 }
 0x2f3   :  { %4792 = vmatmul.mubr.bf16.vlgmr.msra.gmra.mrb[16].mxu0 %v8149_v40  ;;  %6570 = vmatprep.subr.bf16.mxu1 %v7604_v58  ;;  %v7605_v40 = vld [vmem:[#allocation8 + $0x80] sm:$0xff]  }
 0x2f4   :  { %6549 = vmatpush3.bf16.msra.mxu0 %v7587_v61  ;;  %5596 = vmatprep.mubr.bf16.mxu0 %v4940_v62  ;;  %v7597_v62 = vld [vmem:[#allocation8 + $0x20] sm:$0xff]  }
 0x2f5   :  { %6550 = vmatprep.subr.bf16.mxu0 %v7589_v63 }
 0x2f7   :  { %v4869_v4 = vpop.xlane.xlu0 %4868 }
 0x2f8   :  { %6551 = vmatpush3.bf16.msra.mxu0 %v7590_v2  ;;  %vm4874_vm1 = vcmp.eq.s32.totalorder %v4873_v7, %v4869_v4 }
 0x2f9   :  { %6552 = vmatprep.subr.bf16.mxu0 %v7592_v3 }
 0x2fb   :  { %v4871_v1 = vpop.xlane.xlu0 %4870 }
 0x2fc   :  { %6553 = vmatpush3.bf16.msra.mxu0 %v7593_v0  ;;  %vm4875_vm2 = vcmp.eq.s32.totalorder %v4873_v7, %v4871_v1  ;;  %v7637_v0 = vld [vmem:[#allocation8 + $0x180] sm:$0xff]   ;;  %v7639_v1 = vld [vmem:[#allocation8 + $0x188] sm:$0xff]  }
 0x2fd   :  { %6554 = vmatprep.subr.bf16.mxu0 %v7594_v29  ;;  %vm6375_vm3 = vmpackc.low %vm4875_vm2, %vm4874_vm1  ;;  %v7638_v29 = vld [vmem:[#allocation8 + $0x1c8] sm:$0xff]  }
 0x2fe   :  { %6673 = vmatmul.mubr.msk.bf16.vlgmr.msra.gmra.mrb[16].mxu1 %vm6375_vm3, %v7868_v57  ;;  %v7644_v57 = vld [vmem:[#allocation8 + $0x1e0] sm:$0xff]  }
 0x2ff   :  { %6571 = vmatpush3.bf16.msra.mxu1 %v7605_v40  ;;  %v7641_v40 = vld [vmem:[#allocation8 + $0x190] sm:$0xff]  }
 0x300   :  { %6555 = vmatpush3.bf16.msra.mxu0 %v7595_v9  ;;  %6572 = vmatprep.subr.bf16.mxu1 %v7606_v56  ;;  %v7640_v9 = vld [vmem:[#allocation8 + $0x1d0] sm:$0xff]   ;;  %v7643_v56 = vld [vmem:[#allocation8 + $0x198] sm:$0xff]  }
 0x301   :  { %6556 = vmatprep.subr.bf16.mxu0 %v7596_v11  ;;  %v7642_v11 = vld [vmem:[#allocation8 + $0x1d8] sm:$0xff]  }
 0x303   :  { %6573 = vmatpush3.bf16.msra.mxu1 %v7607_v15  ;;  %v7646_v15 = vld [vmem:[#allocation8 + $0x1e8] sm:$0xff]  }
 0x304   :  { %6557 = vmatpush3.bf16.msra.mxu0 %v7597_v62  ;;  %6574 = vmatprep.subr.bf16.mxu1 %v7608_v14  ;;  %v7645_v62 = vld [vmem:[#allocation8 + $0x1a0] sm:$0xff]  }
 0x305   :  { %6558 = vmatprep.subr.bf16.mxu0 %v7598_v42  ;;  %v4905_v42 = vsub.s32 5, %v8182_v19 }
 0x307   :  { %6575 = vmatpush3.bf16.msra.mxu1 %v7609_v17  ;;  %v4906_v14 = vrot.slane %v8185_v53, %v4905_v42 }
 0x308   :  { %6559 = vmatpush3.bf16.msra.mxu0 %v7599_v16  ;;  %6576 = vmatprep.subr.bf16.mxu1 %v7610_v21  ;;  %v7649_v16 = vld [vmem:[#allocation8 + $0x1b0] sm:$0xff]   ;;  %v7650_v21 = vld [vmem:[#allocation8 + $0x1f8] sm:$0xff]  }
 0x309   :  { %6560 = vmatprep.subr.bf16.mxu0 %v7600_v18  ;;  %v4910_v18 = vrot.slane %v8185_v53, %v4909_v60 }
 0x30b   :  { %6577 = vmatpush3.bf16.msra.mxu1 %v7611_v24 }
 0x30c   :  { %6561 = vmatpush3.bf16.msra.mxu0 %v7601_v23  ;;  %6578 = vmatprep.subr.bf16.mxu1 %v7612_v27 }
 0x30d   :  { %6562 = vmatprep.subr.bf16.mxu0 %v7602_v26 }
 0x30f   :  { %6579 = vmatpush3.bf16.msra.mxu1 %v7613_v30 }
 0x310   :  { %6563 = vmatpush3.bf16.msra.mxu0 %v7603_v28  ;;  %6580 = vmatprep.subr.bf16.mxu1 %v7614_v12 }
 0x311   :  { %6592 = vmatprep.subr.bf16.mxu0 %v7620_v13  ;;  %v7651_v13 = vld [vmem:[#allocation8 + $0x1b8] sm:$0xff]  }
 0x313   :  { %5597 = vmatmul.mubr.bf16.vlgmr.msra.gmra.mrb[20].mxu0 %v4939_v10  ;;  %6581 = vmatpush3.bf16.msra.mxu1 %v7615_v31  ;;  %v7630_v10 = vld [vmem:[#allocation8 + $0x168] sm:$0xff]  }
 0x314   :  { %6593 = vmatpush3.bf16.msra.mxu0 %v7621_v44  ;;  %6582 = vmatprep.subr.bf16.mxu1 %v7616_v32 }
 0x315   :  { %6594 = vmatprep.subr.bf16.mxu0 %v7622_v33 }
 0x317   :  { %6583 = vmatpush3.bf16.msra.mxu1 %v7617_v34 }
 0x318   :  { %6595 = vmatpush3.bf16.msra.mxu0 %v7623_v35  ;;  %6584 = vmatprep.subr.bf16.mxu1 %v7618_v36 }
 0x319   :  { %6596 = vmatprep.subr.bf16.mxu0 %v7624_v37 }
 0x31b   :  { %6585 = vmatpush3.bf16.msra.mxu1 %v7619_v8 }
 0x31c   :  { %6597 = vmatpush3.bf16.msra.mxu0 %v7625_v38  ;;  %6614 = vmatprep.subr.bf16.mxu1 %v7636_v49 }
 0x31d   :  { %6598 = vmatprep.subr.bf16.mxu0 %v7626_v25 }
 0x320   :  { %6599 = vmatpush3.bf16.msra.mxu0 %v7627_v22 }
 0x321   :  { %6600 = vmatprep.subr.bf16.mxu0 %v7628_v5 }
 0x324   :  { %6601 = vmatpush3.bf16.msra.mxu0 %v7629_v6 }
 0x325   :  { %6602 = vmatprep.subr.bf16.mxu0 %v7630_v10 }
 0x328   :  { %6603 = vmatpush3.bf16.msra.mxu0 %v7631_v39 }
 0x329   :  { %6604 = vmatprep.subr.bf16.mxu0 %v7632_v41 }
 0x32c   :  { %6605 = vmatpush3.bf16.msra.mxu0 %v7633_v45 }
 0x32d   :  { %6606 = vmatprep.subr.bf16.mxu0 %v7634_v46 }
 0x330   :  { %6607 = vmatpush3.bf16.msra.mxu0 %v7635_v47 }
 0x367   :  { %v4455_v52 = vpop.f32.mrb[4].mxu1 }
 0x368   :  { %v4457_v55 = vpop.f32.mrb[5].mxu1  ;;  %v4926_v58 = vadd.f32 %v4898_v51, %v4455_v52 }
 0x369   :  { %v4459_v43 = vpop.f32.mrb[6].mxu1  ;;  %v4927_v2 = vadd.f32 %v4902_v54, %v4457_v55 }
 0x36a   :  { %v4934_v61 = vadd.f32 %v4898_v51, %v4459_v43  ;;  %v4461_v63 = vpop.f32.mrb[7].mxu1 }
 0x36b   :  { %v4935_v3 = vadd.f32 %v4902_v54, %v4461_v63  ;;  %v4913_v54 = vsub.s32 7, %v8182_v19 }
 0x36c   :  { %v4942_v4 = vpack.c.bf16 %v4934_v61, %v4926_v58 }
 0x36d   :  { %v4943_v7 = vpack.c.bf16 %v4935_v3, %v4927_v2  ;;  %v4914_v2 = vrot.slane %v8185_v53, %v4913_v54 }
 0x36e   :  { %5637 = vmatprep.mubr.bf16.mxu1 %v4942_v4 }
 0x36f   :  { %5638 = vmatmul.mubr.bf16.vlgmr.msra.gmra.mrb[20].mxu1 %v4941_v48  ;;  %v7648_v48 = vld [vmem:[#allocation8 + $0x1f0] sm:$0xff]  }
 0x370   :  { %6615 = vmatpush3.bf16.msra.mxu1 %v7637_v0 }
 0x371   :  { %6616 = vmatprep.subr.bf16.mxu1 %v7638_v29 }
 0x374   :  { %6617 = vmatpush3.bf16.msra.mxu1 %v7639_v1 }
 0x375   :  { %6618 = vmatprep.subr.bf16.mxu1 %v7640_v9 }
 0x378   :  { %6619 = vmatpush3.bf16.msra.mxu1 %v7641_v40 }
 0x379   :  { %6620 = vmatprep.subr.bf16.mxu1 %v7642_v11 }
 0x37c   :  { %6621 = vmatpush3.bf16.msra.mxu1 %v7643_v56 }
 0x37d   :  { %6622 = vmatprep.subr.bf16.mxu1 %v7644_v57 }
 0x380   :  { %6623 = vmatpush3.bf16.msra.mxu1 %v7645_v62 }
 0x381   :  { %6624 = vmatprep.subr.bf16.mxu1 %v7646_v15 }
 0x384   :  { %6625 = vmatpush3.bf16.msra.mxu1 %v7647_v59 }
 0x385   :  { %6626 = vmatprep.subr.bf16.mxu1 %v7648_v48 }
 0x386   :  { %v4627_v17 = vpop.f32.mrb[8].mxu0 }
 0x387   :  { %v4629_v23 = vpop.f32.mrb[9].mxu0  ;;  %v4928_v27 = vadd.f32 %v4906_v14, %v4627_v17 }
 0x388   :  { %v4631_v24 = vpop.f32.mrb[10].mxu0  ;;  %v6467_v26 = vpop.f32.mrb[8].mxu1  ;;  %6627 = vmatpush3.bf16.msra.mxu1 %v7649_v16  ;;  %v4929_v31 = vadd.f32 %v4910_v18, %v4629_v23 }
 0x389   :  { %v4936_v28 = vadd.f32 %v4906_v14, %v4631_v24  ;;  %v4633_v30 = vpop.f32.mrb[11].mxu0  ;;  %v6468_v12 = vpop.f32.mrb[9].mxu1  ;;  %6628 = vmatprep.subr.bf16.mxu1 %v7650_v21 }
 0x38a   :  { %v4937_v44 = vadd.f32 %v4910_v18, %v4633_v30  ;;  %v6469_v32 = vadd.f32 %v6468_v12, %v6467_v26  ;;  %v6470_v33 = vpop.f32.mrb[10].mxu1 }
 0x38b   :  { %v4944_v34 = vpack.c.bf16 %v4936_v28, %v4928_v27  ;;  %v6471_v35 = vpop.f32.mrb[11].mxu1 }
 0x38c   :  { %v4945_v36 = vpack.c.bf16 %v4937_v44, %v4929_v31  ;;  %v6472_v37 = vadd.f32 %v6471_v35, %v6470_v33  ;;  %6629 = vmatpush3.bf16.msra.mxu1 %v7651_v13  ;;  %v6441_v35 = vld [vmem:[#allocation11] ss:$0 sm:$0xff] }
 0x38d   :  { %5678 = vmatprep.mubr.bf16.mxu0 %v4944_v34 }
 0x38e   :  { %5679 = vmatmul.mubr.bf16.vlgmr.msra.gmra.mrb[24].mxu0 %v4943_v7 }
 0x3a6   :  { %v6489_v8 = vpop.f32.mrb[12].mxu0 }
 0x3a7   :  { %v6490_v38 = vpop.f32.mrb[13].mxu0 }
 0x3a8   :  { %v6491_v25 = vadd.f32 %v6490_v38, %v6489_v8  ;;  %v6492_v22 = vpop.f32.mrb[14].mxu0  ;;  %v6511_v5 = vpop.f32.mrb[12].mxu1 }
 0x3a9   :  { %v6493_v6 = vpop.f32.mrb[15].mxu0  ;;  %v6512_v10 = vpop.f32.mrb[13].mxu1 }
 0x3aa   :  { %v4712_v39 = vadd.f32 %v6491_v25, %v6469_v32  ;;  %v6494_v41 = vadd.f32 %v6493_v6, %v6492_v22  ;;  %v6513_v45 = vadd.f32 %v6512_v10, %v6511_v5  ;;  %v6514_v46 = vpop.f32.mrb[14].mxu1 }
 0x3ab   :  { %v6515_v47 = vpop.f32.mrb[15].mxu1 }
 0x3ac   :  { %v4715_v49 = vadd.f32 %v6494_v41, %v6472_v37  ;;  %v4753_v20 = vadd.f32 %v6513_v45, %v4712_v39  ;;  %v6516_v50 = vadd.f32 %v6515_v47, %v6514_v46 }
 0x3ae   :  { %v4756_v51 = vadd.f32 %v6516_v50, %v4715_v49 }
 0x3c6   :  { %v6533_v52 = vpop.f32.mrb[16].mxu0 }
 0x3c7   :  { %v6534_v55 = vpop.f32.mrb[17].mxu0 }
 0x3c8   :  { %v6535_v43 = vadd.f32 %v6534_v55, %v6533_v52  ;;  %v6536_v58 = vpop.f32.mrb[18].mxu0 }
 0x3c9   :  { %v6537_v61 = vpop.f32.mrb[19].mxu0 }
 0x3ca   :  { %v4794_v63 = vadd.f32 %v6535_v43, %v4753_v20  ;;  %v6538_v3 = vadd.f32 %v6537_v61, %v6536_v58 }
 0x3cc   :  { %v4797_v4 = vadd.f32 %v6538_v3, %v4756_v51  ;;  %v4930_v0 = vadd.f32 %v4914_v2, %v4794_v63 }
 0x3ce   :  { %v4938_v7 = vadd.f32 %v4914_v2, %v4797_v4 }
 0x3d0   :  { %v4946_v29 = vpack.c.bf16 %v4938_v7, %v4930_v0 }
 0x3d1   :  { %v5173_v1 = vpop.f32.mrb[16].mxu1 }
 0x3d2   :  { %5719 = vmatprep.mubr.bf16.mxu1 %v4946_v29  ;;  %v6674_v9 = vpop.f32.mrb[17].mxu1 }
 0x3d3   :  { %5720 = vmatmul.mubr.bf16.vlgmr.msra.gmra.mrb[24].mxu1 %v4945_v36  ;;  %v5176_v40 = vpop.f32.mrb[18].mxu1 }
 0x3d4   :  { %v6675_v11 = vpop.f32.mrb[19].mxu1 }
 0x3e6   :  { %v6564_v56 = vpop.f32.mrb[20].mxu0 }
 0x3e7   :  { %v6565_v19 = vpop.f32.mrb[21].mxu0 }
 0x3e8   :  { %v6566_v57 = vadd.f32 %v6565_v19, %v6564_v56  ;;  %v6567_v62 = vpop.f32.mrb[22].mxu0 }
 0x3e9   :  { %v6568_v15 = vpop.f32.mrb[23].mxu0 }
 0x3ea   :  { %v5599_v42 = vadd.f32 %v6566_v57, %v5173_v1  ;;  %v6569_v59 = vadd.f32 %v6568_v15, %v6567_v62 }
 0x3ec   :  { %v5602_v60 = vadd.f32 %v6569_v59, %v5176_v40 }
 0x442   :  { %v6586_v53 = vpop.f32.mrb[20].mxu1 }
 0x443   :  { %v6587_v48 = vpop.f32.mrb[21].mxu1 }
 0x444   :  { %v6588_v14 = vadd.f32 %v6587_v48, %v6586_v53  ;;  %v6589_v16 = vpop.f32.mrb[22].mxu1 }
 0x445   :  { %v6590_v17 = vpop.f32.mrb[23].mxu1 }
 0x446   :  { %v5640_v18 = vadd.f32 %v6588_v14, %v5599_v42  ;;  %v6591_v21 = vadd.f32 %v6590_v17, %v6589_v16 }
 0x448   :  { %v5643_v23 = vadd.f32 %v6591_v21, %v5602_v60 }
 0x461   :  { %v6608_v24 = vpop.f32.mrb[24].mxu0 }
 0x462   :  { %v6609_v26 = vpop.f32.mrb[25].mxu0 }
 0x463   :  { %v6610_v27 = vadd.f32 %v6609_v26, %v6608_v24  ;;  %v6611_v28 = vpop.f32.mrb[26].mxu0 }
 0x464   :  { %v6612_v30 = vpop.f32.mrb[27].mxu0 }
 0x465   :  { %v5681_v12 = vadd.f32 %v6610_v27, %v5640_v18  ;;  %v6613_v13 = vadd.f32 %v6612_v30, %v6611_v28 }
 0x467   :  { %v5684_v31 = vadd.f32 %v6613_v13, %v5643_v23 }
 0x4a6   :  { %v6630_v44 = vpop.f32.mrb[24].mxu1 }
 0x4a7   :  { %v6631_v32 = vpop.f32.mrb[25].mxu1 }
 0x4a8   :  { %v6632_v33 = vadd.f32 %v6631_v32, %v6630_v44  ;;  %v6633_v34 = vpop.f32.mrb[26].mxu1 }
 0x4a9   :  { %v6634_v36 = vpop.f32.mrb[27].mxu1 }
 0x4aa   :  { %v5722_v37 = vadd.f32 %v6632_v33, %v5681_v12  ;;  %v6635_v8 = vadd.f32 %v6634_v36, %v6633_v34 }
 0x4ac   :  { %v5735_v38 = vadd.f32 %v6441_v35, %v5722_v37  ;;  %v5725_v25 = vadd.f32 %v6635_v8, %v5684_v31 }
 0x4ae   :  { %7660 = vtanh.f32 %v5735_v38  ;;  %v5736_v22 = vadd.f32 %v6441_v35, %v5725_v25 }
 0x4b0   :  { %7662 = vtanh.f32 %v5736_v22 }
 0x4b8   :  { %v7661_v5 = vpop.eup %7660 }
 0x4b9   :  { %v5739_v6 = vmul.f32 %v7661_v5, %v7661_v5 }
 0x4ba   :  { %v7663_v10 = vpop.eup %7662 }
 0x4bb   :  { %5741 = vadd.xlane.f32.xlu0 %v5739_v6  ;;  %v5740_v39 = vmul.f32 %v7663_v10, %v7663_v10 }
 0x4bd   :  { %5743 = vadd.xlane.f32.xlu1 %v5740_v39 }
 0x548   :  { %v5742_v41 = vpop.xlane.xlu0 %5741 }
 0x549   :  { %v5745_v45 = vmax.f32 %v5742_v41, 1e-24 }
 0x54a   :  { %v5744_v46 = vpop.xlane.xlu1 %5743 }
 0x54b   :  { %7664 = vrsqrt.f32 %v5745_v45  ;;  %v5746_v47 = vmax.f32 %v5744_v46, 1e-24 }
 0x54d   :  { %7666 = vrsqrt.f32 %v5746_v47 }
 0x555   :  { %v7665_v49 = vpop.eup %7664 }
 0x556   :  { %v5749_v20 = vmul.f32 %v7665_v49, %v7661_v5 }
 0x557   :  { %v7667_v50 = vpop.eup %7666 }
 0x558   :  { %5751 = vst [vmem:[%s8274_s10] sm:$0xff] %v5749_v20  ;;  %v5750_v51 = vmul.f32 %v7667_v50, %v7663_v10 }
 0x55a   :  { %5752 = vst [vmem:[%s8274_s10 + $0x8] sm:$0xff] %v5750_v51 }
 0x55b   :  { %5765 = vsyncpa [#allocation4], 1 }
 0x55c   :  { %5766 = vsyncpa [#allocation6], 1 }
 0x55d   :  { %5767 = vsyncpa [#allocation9], 1 }
 0x55e   :  { %5768 = vsyncpa [#allocation12], 1 }
 0x55f   :  { %5769 = vsyncpa [#allocation15], 1 }

</bundles_post_ra>
